<compile_context>
chip_gen: v7x
topology: tpu7x:2x2x1
jax: 0.10.0
libtpu: 0.0.40
codegen_flags: <defaults>
</compile_context>

<pallas_src>
import jax
import jax.numpy as jnp
from jax import lax
from jax.experimental import pallas as pl
from jax.experimental.pallas import tpu as pltpu


# ---------------------------------------------------------------------------
# In-kernel helpers
# ---------------------------------------------------------------------------

def _zero_halo(dst_ref):
    """Zero the invariant halo of a staged conv-input buffer (once, at k==0).

    dst_ref: (H+2, N, W, 3*C).  Halo rows (h==0, h==H+1), the left edge of the
    kw=0 tap and the right edge of the kw=2 tap are the only regions the
    per-step interior staging never rewrites.
    """
    H2, N, W, K3 = dst_ref.shape
    H = H2 - 2
    C = K3 // 3
    zrow = jnp.zeros((1, N, W, K3), dst_ref.dtype)
    dst_ref[0:1, :, :, :] = zrow
    dst_ref[H + 1:H + 2, :, :, :] = zrow
    zcol = jnp.zeros((H, N, 1, C), dst_ref.dtype)
    dst_ref[1:H + 1, :, 0:1, 0:C] = zcol                    # kw=0 tap, x == 0
    dst_ref[1:H + 1, :, W - 1:W, 2 * C:3 * C] = zcol        # kw=2 tap, x == W-1


def _stage_interior(dst_ref, v):
    """Write the interior of a staged conv input with three direct stores.

    dst[h+1, n, x, kw*C + c] = v[h, n, x + kw - 1, c]   (halo stays zero)
    No concatenates; tap (kh, kw) later becomes the aligned leading-axis slice
    dst[kh:kh+H] with its kw block already side-by-side on the lane axis.
    """
    H, N, W, C = v.shape
    dst_ref[1:H + 1, :, :, C:2 * C] = v                           # kw = 1 (center)
    dst_ref[1:H + 1, :, 1:W, 0:C] = v[:, :, :W - 1, :]            # kw = 0 (x-1)
    dst_ref[1:H + 1, :, 0:W - 1, 2 * C:3 * C] = v[:, :, 1:, :]    # kw = 2 (x+1)


def _conv3x3(src_ref, w_ref, H):
    """3x3 'same' conv from a staged input: 3 MXU matmuls, K = 3*Cin.

    src_ref: (H+2, N, W, 3*Ci) bf16.  The leading-axis slice keeps the
    (M, 3*Ci) flatten a contiguous view (W multiple of 8) -> no relayout copy.
    w_ref:   (1, 3, 3*Ci, Co) bf16, layout (kh, kw*Ci+ci, co).
    Returns  (H*N*W, Co) float32.
    """
    _, N, W, K3 = src_ref.shape
    Co = w_ref.shape[-1]
    acc = jnp.zeros((H * N * W, Co), jnp.float32)
    for kh in range(3):
        patch = src_ref[kh:kh + H].reshape(H * N * W, K3)
        acc = acc + jnp.dot(patch, w_ref[0, kh],
                            preferred_element_type=jnp.float32)
    return acc


def _bn_train(y, gamma, beta, eps=1e-5):
    """Training-mode BatchNorm over rows of (M, C); one fused scale+shift."""
    inv_m = 1.0 / y.shape[0]
    mean = jnp.sum(y, axis=0, keepdims=True) * inv_m
    var = jnp.sum(y * y, axis=0, keepdims=True) * inv_m - mean * mean
    var = jnp.maximum(var, 0.0)                  # guard one-pass cancellation
    scale = gamma * lax.rsqrt(var + eps)         # EUP slot
    return y * scale + (beta - mean * scale)


# ---------------------------------------------------------------------------
# Kernel
# ---------------------------------------------------------------------------

def _resnet_block_body(x_ref, w1_ref, g1_ref, be1_ref, w2_ref, g2_ref, be2_ref,
                       o_ref, xst_ref, yst_ref, acc2_ref):
    H2, N, W, _ = xst_ref.shape
    H = H2 - 2
    Cin = x_ref.shape[-1]
    c_blk = w1_ref.shape[-1]
    Cout = o_ref.shape[-1]
    M = H * N * W
    k = pl.program_id(0)

    # ---- once: zero halos, stage x for conv1's taps, zero conv2 accumulator ----
    @pl.when(k == 0)
    def _init():
        _zero_halo(xst_ref)
        _zero_halo(yst_ref)
        _stage_interior(xst_ref, x_ref[...])           # x already bf16
        if acc2_ref is not None:
            acc2_ref[...] = jnp.zeros(acc2_ref.shape, acc2_ref.dtype)

    # ---- conv1 (this block of output channels) -> BN1 -> ReLU ----
    # (conv bias omitted: exactly absorbed by training-mode BN mean subtraction)
    y1 = _bn_train(_conv3x3(xst_ref, w1_ref, H), g1_ref[...], be1_ref[...])
    y1 = jnp.maximum(y1, 0.0)

    # ---- stage relu(bn1) interior (halo already zero) and run conv2 block ----
    _stage_interior(yst_ref, y1.astype(jnp.bfloat16).reshape(H, N, W, c_blk))
    y2 = _conv3x3(yst_ref, w2_ref, H)

    def _finalize(y2_full):
        y2n = _bn_train(y2_full, g2_ref[...], be2_ref[...])
        identity = x_ref[...].astype(jnp.float32).reshape(M, Cin)   # f32 add
        out = jnp.maximum(y2n + identity, 0.0)
        o_ref[...] = out.reshape(H, N, W, Cout).astype(o_ref.dtype)

    if acc2_ref is None:
        # Single channel block: no accumulator, no read-modify-write pass.
        _finalize(y2)
    else:
        acc2_ref[...] += y2

        @pl.when(k == pl.num_programs(0) - 1)
        def _fin():
            _finalize(acc2_ref[...])


def _make_kernel(n_blk):
    if n_blk == 1:
        def kernel(x_ref, w1_ref, g1_ref, be1_ref, w2_ref, g2_ref, be2_ref,
                   o_ref, xst_ref, yst_ref):
            _resnet_block_body(x_ref, w1_ref, g1_ref, be1_ref, w2_ref, g2_ref,
                               be2_ref, o_ref, xst_ref, yst_ref, None)
    else:
        def kernel(x_ref, w1_ref, g1_ref, be1_ref, w2_ref, g2_ref, be2_ref,
                   o_ref, xst_ref, yst_ref, acc2_ref):
            _resnet_block_body(x_ref, w1_ref, g1_ref, be1_ref, w2_ref, g2_ref,
                               be2_ref, o_ref, xst_ref, yst_ref, acc2_ref)
    return kernel


# ---------------------------------------------------------------------------
# Wrapper
# ---------------------------------------------------------------------------

def _derived_vmem_limit(block_bytes):
    cap = 64 * 1024 * 1024
    try:
        info = pltpu.get_tpu_info()
        cap = int(getattr(info, "vmem_capacity_bytes", cap))
    except Exception:
        pass
    want = max(2 * block_bytes, 32 * 1024 * 1024)
    return int(min(want, int(cap * 0.75)))


def resnet_block(x_nchw, params):
    """Forward pass matching the PyTorch ResNetBlock (train-mode BN).

    x_nchw: (N, C, H, W) float32, same convention as the PyTorch module.
    params: (w1, b1, g1, be1, w2, b2, g2, be2).  Conv biases are accepted but
    not used: a bias before training-mode BN is exactly cancelled by it.
    """
    w1, _b1, g1, be1, w2, _b2, g2, be2 = params
    N, Cin, H, W = x_nchw.shape
    Cout = w1.shape[0]
    assert Cin == Cout, "residual add requires in_channels == out_channels"
    # Note: W multiple of 8 keeps the staged-slice flattens layout-preserving.

    # BN1 statistics are per-channel, so blocking conv1's output channels
    # (== conv2's contraction channels) is numerically exact.
    c_blk = 128 if Cout % 128 == 0 else Cout
    n_blk = Cout // c_blk

    # (N, C, H, W) -> (H, N, W, C) so H is the leading (tap-slice) axis; bf16.
    x = jnp.transpose(x_nchw, (2, 0, 3, 1)).astype(jnp.bfloat16)

    # Weights: OIHW -> (block, kh, kw*Ci+ci, co_local) bf16, pre-blocked.
    w1_b = jnp.transpose(w1, (2, 3, 1, 0)).reshape(3, 3 * Cin, n_blk, c_blk)
    w1_b = jnp.transpose(w1_b, (2, 0, 1, 3)).astype(jnp.bfloat16)
    w2_b = jnp.transpose(w2, (2, 3, 1, 0)).reshape(3, 3, n_blk, c_blk, Cout)
    w2_b = jnp.transpose(w2_b, (2, 0, 1, 3, 4)).reshape(
        n_blk, 3, 3 * c_blk, Cout).astype(jnp.bfloat16)

    vec = lambda v: jnp.asarray(v, jnp.float32).reshape(1, -1)

    M = N * H * W
    scratch = [pltpu.VMEM((H + 2, N, W, 3 * Cin), jnp.bfloat16),    # staged x
               pltpu.VMEM((H + 2, N, W, 3 * c_blk), jnp.bfloat16)]  # staged relu(bn1)
    if n_blk > 1:
        scratch.append(pltpu.VMEM((M, Cout), jnp.float32))          # conv2 accumulator

    block_bytes = (x.size * 2                       # resident x (bf16)
                   + M * Cout * 4                   # resident out (f32)
                   + (3 * 3 * Cin * c_blk) * 2      # w1 block
                   + (3 * 3 * c_blk * Cout) * 2     # w2 block
                   + (H + 2) * N * W * 3 * Cin * 2  # staged x scratch
                   + (H + 2) * N * W * 3 * c_blk * 2
                   + (M * Cout * 4 if n_blk > 1 else 0)
                   + 4 * Cout * 4)

    flops = 2 * M * 9 * Cin * Cout + 2 * M * 9 * Cout * Cout + 16 * M * Cout
    bytes_accessed = (x.size * 2 + M * Cout * 4
                      + w1_b.size * 2 + w2_b.size * 2 + 4 * Cout * 4)

    out_hnwc = pl.pallas_call(
        _make_kernel(n_blk),
        out_shape=jax.ShapeDtypeStruct((H, N, W, Cout), x_nchw.dtype),
        grid_spec=pltpu.PrefetchScalarGridSpec(
            num_scalar_prefetch=0,
            grid=(n_blk,),
            in_specs=[
                pl.BlockSpec((H, N, W, Cin), lambda k: (0, 0, 0, 0)),           # x (resident)
                pl.BlockSpec((1, 3, 3 * Cin, c_blk), lambda k: (k, 0, 0, 0)),   # w1 block
                pl.BlockSpec((1, c_blk), lambda k: (0, k)),                     # gamma1 block
                pl.BlockSpec((1, c_blk), lambda k: (0, k)),                     # beta1 block
                pl.BlockSpec((1, 3, 3 * c_blk, Cout), lambda k: (k, 0, 0, 0)),  # w2 block
                pl.BlockSpec((1, Cout), lambda k: (0, 0)),                      # gamma2
                pl.BlockSpec((1, Cout), lambda k: (0, 0)),                      # beta2
            ],
            out_specs=pl.BlockSpec((H, N, W, Cout), lambda k: (0, 0, 0, 0)),
            scratch_shapes=scratch),
        compiler_params=pltpu.CompilerParams(
            dimension_semantics=("arbitrary",),     # axis carries conv2 accumulation
            vmem_limit_bytes=_derived_vmem_limit(block_bytes)),
        cost_estimate=pl.CostEstimate(flops=flops, transcendentals=2 * Cout,
                                      bytes_accessed=bytes_accessed),
    )(x, w1_b, vec(g1), vec(be1), w2_b, vec(g2), vec(be2))

    return jnp.transpose(out_hnwc, (1, 3, 0, 2))    # (H,N,W,C) -> (N,C,H,W)


# ---------------------------------------------------------------------------
# Pure-JAX reference (NCHW, includes the conv biases) and self-test
# ---------------------------------------------------------------------------

def resnet_block_reference(x, params):
    w1, b1, g1, be1, w2, b2, g2, be2 = params

    def conv(x, w, b):
        y = lax.conv_general_dilated(
            x, w, window_strides=(1, 1), padding=((1, 1), (1, 1)),
            dimension_numbers=("NCHW", "OIHW", "NCHW"))
        return y + b[None, :, None, None]

    def bn(y, g, be, eps=1e-5):
        m = jnp.mean(y, axis=(0, 2, 3), keepdims=True)
        v = jnp.mean((y - m) ** 2, axis=(0, 2, 3), keepdims=True)
        return (y - m) / jnp.sqrt(v + eps) * g[None, :, None, None] \
               + be[None, :, None, None]

    out = jax.nn.relu(bn(conv(x, w1, b1), g1, be1))
    out = bn(conv(out, w2, b2), g2, be2)
    return jax.nn.relu(out + x)


if __name__ == "__main__":
    key = jax.random.PRNGKey(0)
    kx, kw1, kb1, kw2, kb2 = jax.random.split(key, 5)

    N, C, H, W = 2, 4, 16, 16                      # in_channels = out_channels = 4
    x = jax.random.normal(kx, (N, C, H, W), dtype=jnp.float32)

    fan_in = C * 3 * 3
    bound = 1.0 / (fan_in ** 0.5)                  # PyTorch-style uniform init
    w1 = jax.random.uniform(kw1, (C, C, 3, 3), jnp.float32, -bound, bound)
    b1 = jax.random.uniform(kb1, (C,), jnp.float32, -bound, bound)
    w2 = jax.random.uniform(kw2, (C, C, 3, 3), jnp.float32, -bound, bound)
    b2 = jax.random.uniform(kb2, (C,), jnp.float32, -bound, bound)
    g1 = jnp.ones((C,), jnp.float32); be1 = jnp.zeros((C,), jnp.float32)
    g2 = jnp.ones((C,), jnp.float32); be2 = jnp.zeros((C,), jnp.float32)

    params = (w1, b1, g1, be1, w2, b2, g2, be2)

    out = jax.jit(resnet_block)(x, params)
    out = jax.block_until_ready(out)

    ref = resnet_block_reference(x, params)
    assert out.shape == (N, C, H, W)
    assert jnp.allclose(out, ref, rtol=2e-2, atol=2e-2), \
        f"max abs err {jnp.max(jnp.abs(out - ref))}"

    print("KERNEL_OK")
</pallas_src>

<mosaic_0001>
module attributes {stable_mosaic.version = 11 : i64} {
  func.func @kernel(%arg0: i32, %arg1: memref<16x2x16x4xbf16, #tpu.memory_space<vmem>>, %arg2: memref<1x3x12x4xbf16, #tpu.memory_space<vmem>>, %arg3: memref<1x4xf32, #tpu.memory_space<vmem>>, %arg4: memref<1x4xf32, #tpu.memory_space<vmem>>, %arg5: memref<1x3x12x4xbf16, #tpu.memory_space<vmem>>, %arg6: memref<1x4xf32, #tpu.memory_space<vmem>>, %arg7: memref<1x4xf32, #tpu.memory_space<vmem>>, %arg8: memref<16x2x16x4xf32, #tpu.memory_space<vmem>>, %arg9: memref<18x2x16x12xbf16, #tpu.memory_space<vmem>>, %arg10: memref<18x2x16x12xbf16, #tpu.memory_space<vmem>>) attributes {dimension_semantics = [#tpu.dimension_semantics<arbitrary>], iteration_bounds = array<i64: 1>, scalar_prefetch = 0 : i64, scratch_operands = 2 : i64, tpu.core_type = #tpu.core_type<tc>, window_params = [{pipeline_mode = #tpu.pipeline_mode<synchronous>, transform_indices = @transform_0, window_bounds = array<i64: 16, 2, 16, 4>}, {transform_indices = @transform_1, window_bounds = array<i64: 1, 3, 12, 4>}, {transform_indices = @transform_2, window_bounds = array<i64: 1, 4>}, {transform_indices = @transform_3, window_bounds = array<i64: 1, 4>}, {transform_indices = @transform_4, window_bounds = array<i64: 1, 3, 12, 4>}, {pipeline_mode = #tpu.pipeline_mode<synchronous>, transform_indices = @transform_5, window_bounds = array<i64: 1, 4>}, {pipeline_mode = #tpu.pipeline_mode<synchronous>, transform_indices = @transform_6, window_bounds = array<i64: 1, 4>}, {pipeline_mode = #tpu.pipeline_mode<synchronous>, transform_indices = @transform_7, window_bounds = array<i64: 16, 2, 16, 4>}]} {
    %c0_i32 = arith.constant 0 : i32
    %0 = arith.cmpi eq, %arg0, %c0_i32 : i32
    %1 = arith.extui %0 : i1 to i32
    %c0_i32_0 = arith.constant 0 : i32
    %2 = arith.cmpi ne, %1, %c0_i32_0 : i32
    scf.if %2 {
      %cst_93 = arith.constant 0.000000e+00 : bf16
      %108 = vector.broadcast %cst_93 : bf16 to vector<1x2x16x12xbf16>
      %c0_94 = arith.constant 0 : index
      %c0_95 = arith.constant 0 : index
      %c0_96 = arith.constant 0 : index
      %c0_97 = arith.constant 0 : index
      %109 = vector.load %arg9[%c0_94, %c0_95, %c0_96, %c0_97] : memref<18x2x16x12xbf16, #tpu.memory_space<vmem>>, vector<1x2x16x12xbf16>
      tpu.vector_store %arg9[%c0_94, %c0_95, %c0_96, %c0_97], %108 {strides = array<i32>} : memref<18x2x16x12xbf16, #tpu.memory_space<vmem>>, vector<1x2x16x12xbf16>,
      %c17 = arith.constant 17 : index
      %c0_98 = arith.constant 0 : index
      %c0_99 = arith.constant 0 : index
      %c0_100 = arith.constant 0 : index
      %110 = vector.load %arg9[%c17, %c0_98, %c0_99, %c0_100] : memref<18x2x16x12xbf16, #tpu.memory_space<vmem>>, vector<1x2x16x12xbf16>
      tpu.vector_store %arg9[%c17, %c0_98, %c0_99, %c0_100], %108 {strides = array<i32>} : memref<18x2x16x12xbf16, #tpu.memory_space<vmem>>, vector<1x2x16x12xbf16>,
      %cst_101 = arith.constant 0.000000e+00 : bf16
      %111 = vector.broadcast %cst_101 : bf16 to vector<16x2x1x4xbf16>
      %c1_102 = arith.constant 1 : index
      %c0_103 = arith.constant 0 : index
      %c0_104 = arith.constant 0 : index
      %c0_105 = arith.constant 0 : index
      %112 = vector.load %arg9[%c1_102, %c0_103, %c0_104, %c0_105] : memref<18x2x16x12xbf16, #tpu.memory_space<vmem>>, vector<16x2x1x4xbf16>
      tpu.vector_store %arg9[%c1_102, %c0_103, %c0_104, %c0_105], %111 {strides = array<i32>} : memref<18x2x16x12xbf16, #tpu.memory_space<vmem>>, vector<16x2x1x4xbf16>,
      %c1_106 = arith.constant 1 : index
      %c0_107 = arith.constant 0 : index
      %c15 = arith.constant 15 : index
      %c8_108 = arith.constant 8 : index
      %113 = vector.load %arg9[%c1_106, %c0_107, %c15, %c8_108] : memref<18x2x16x12xbf16, #tpu.memory_space<vmem>>, vector<16x2x1x4xbf16>
      tpu.vector_store %arg9[%c1_106, %c0_107, %c15, %c8_108], %111 {strides = array<i32>} : memref<18x2x16x12xbf16, #tpu.memory_space<vmem>>, vector<16x2x1x4xbf16>,
      %cst_109 = arith.constant 0.000000e+00 : bf16
      %114 = vector.broadcast %cst_109 : bf16 to vector<1x2x16x12xbf16>
      %c0_110 = arith.constant 0 : index
      %c0_111 = arith.constant 0 : index
      %c0_112 = arith.constant 0 : index
      %c0_113 = arith.constant 0 : index
      %115 = vector.load %arg10[%c0_110, %c0_111, %c0_112, %c0_113] : memref<18x2x16x12xbf16, #tpu.memory_space<vmem>>, vector<1x2x16x12xbf16>
      tpu.vector_store %arg10[%c0_110, %c0_111, %c0_112, %c0_113], %114 {strides = array<i32>} : memref<18x2x16x12xbf16, #tpu.memory_space<vmem>>, vector<1x2x16x12xbf16>,
      %c17_114 = arith.constant 17 : index
      %c0_115 = arith.constant 0 : index
      %c0_116 = arith.constant 0 : index
      %c0_117 = arith.constant 0 : index
      %116 = vector.load %arg10[%c17_114, %c0_115, %c0_116, %c0_117] : memref<18x2x16x12xbf16, #tpu.memory_space<vmem>>, vector<1x2x16x12xbf16>
      tpu.vector_store %arg10[%c17_114, %c0_115, %c0_116, %c0_117], %114 {strides = array<i32>} : memref<18x2x16x12xbf16, #tpu.memory_space<vmem>>, vector<1x2x16x12xbf16>,
      %cst_118 = arith.constant 0.000000e+00 : bf16
      %117 = vector.broadcast %cst_118 : bf16 to vector<16x2x1x4xbf16>
      %c1_119 = arith.constant 1 : index
      %c0_120 = arith.constant 0 : index
      %c0_121 = arith.constant 0 : index
      %c0_122 = arith.constant 0 : index
      %118 = vector.load %arg10[%c1_119, %c0_120, %c0_121, %c0_122] : memref<18x2x16x12xbf16, #tpu.memory_space<vmem>>, vector<16x2x1x4xbf16>
      tpu.vector_store %arg10[%c1_119, %c0_120, %c0_121, %c0_122], %117 {strides = array<i32>} : memref<18x2x16x12xbf16, #tpu.memory_space<vmem>>, vector<16x2x1x4xbf16>,
      %c1_123 = arith.constant 1 : index
      %c0_124 = arith.constant 0 : index
      %c15_125 = arith.constant 15 : index
      %c8_126 = arith.constant 8 : index
      %119 = vector.load %arg10[%c1_123, %c0_124, %c15_125, %c8_126] : memref<18x2x16x12xbf16, #tpu.memory_space<vmem>>, vector<16x2x1x4xbf16>
      tpu.vector_store %arg10[%c1_123, %c0_124, %c15_125, %c8_126], %117 {strides = array<i32>} : memref<18x2x16x12xbf16, #tpu.memory_space<vmem>>, vector<16x2x1x4xbf16>,
      %c0_127 = arith.constant 0 : index
      %c0_128 = arith.constant 0 : index
      %c0_129 = arith.constant 0 : index
      %c0_130 = arith.constant 0 : index
      %120 = vector.load %arg1[%c0_127, %c0_128, %c0_129, %c0_130] : memref<16x2x16x4xbf16, #tpu.memory_space<vmem>>, vector<16x2x16x4xbf16>
      %c1_131 = arith.constant 1 : index
      %c0_132 = arith.constant 0 : index
      %c0_133 = arith.constant 0 : index
      %c4_134 = arith.constant 4 : index
      %121 = vector.load %arg9[%c1_131, %c0_132, %c0_133, %c4_134] : memref<18x2x16x12xbf16, #tpu.memory_space<vmem>>, vector<16x2x16x4xbf16>
      tpu.vector_store %arg9[%c1_131, %c0_132, %c0_133, %c4_134], %120 {strides = array<i32>} : memref<18x2x16x12xbf16, #tpu.memory_space<vmem>>, vector<16x2x16x4xbf16>,
      %122 = vector.extract_strided_slice %120 {offsets = [0, 0, 0, 0], sizes = [16, 2, 15, 4], strides = [1, 1, 1, 1]} : vector<16x2x16x4xbf16> to vector<16x2x15x4xbf16>
      %c1_135 = arith.constant 1 : index
      %c0_136 = arith.constant 0 : index
      %c1_137 = arith.constant 1 : index
      %c0_138 = arith.constant 0 : index
      %123 = vector.load %arg9[%c1_135, %c0_136, %c1_137, %c0_138] : memref<18x2x16x12xbf16, #tpu.memory_space<vmem>>, vector<16x2x15x4xbf16>
      tpu.vector_store %arg9[%c1_135, %c0_136, %c1_137, %c0_138], %122 {strides = array<i32>} : memref<18x2x16x12xbf16, #tpu.memory_space<vmem>>, vector<16x2x15x4xbf16>,
      %124 = vector.extract_strided_slice %120 {offsets = [0, 0, 1, 0], sizes = [16, 2, 15, 4], strides = [1, 1, 1, 1]} : vector<16x2x16x4xbf16> to vector<16x2x15x4xbf16>
      %c1_139 = arith.constant 1 : index
      %c0_140 = arith.constant 0 : index
      %c0_141 = arith.constant 0 : index
      %c8_142 = arith.constant 8 : index
      %125 = vector.load %arg9[%c1_139, %c0_140, %c0_141, %c8_142] : memref<18x2x16x12xbf16, #tpu.memory_space<vmem>>, vector<16x2x15x4xbf16>
      tpu.vector_store %arg9[%c1_139, %c0_140, %c0_141, %c8_142], %124 {strides = array<i32>} : memref<18x2x16x12xbf16, #tpu.memory_space<vmem>>, vector<16x2x15x4xbf16>,
    } else {
    }
    %cst = arith.constant 0.000000e+00 : f32
    %3 = vector.broadcast %cst : f32 to vector<512x4xf32>
    %c0 = arith.constant 0 : index
    %c0_1 = arith.constant 0 : index
    %c0_2 = arith.constant 0 : index
    %c0_3 = arith.constant 0 : index
    %4 = vector.load %arg9[%c0, %c0_1, %c0_2, %c0_3] : memref<18x2x16x12xbf16, #tpu.memory_space<vmem>>, vector<16x2x16x12xbf16>
    %5 = vector.shape_cast %4 : vector<16x2x16x12xbf16> to vector<512x12xbf16>
    %c0_4 = arith.constant 0 : index
    %c0_5 = arith.constant 0 : index
    %c0_6 = arith.constant 0 : index
    %c0_7 = arith.constant 0 : index
    %6 = vector.load %arg2[%c0_4, %c0_5, %c0_6, %c0_7] : memref<1x3x12x4xbf16, #tpu.memory_space<vmem>>, vector<1x1x12x4xbf16>
    %7 = vector.shape_cast %6 : vector<1x1x12x4xbf16> to vector<12x4xbf16>
    %cst_8 = arith.constant dense<0.000000e+00> : vector<512x4xf32>
    %8 = tpu.matmul %5, %7, %cst_8 {dimension_numbers = #tpu.dot_dimension_numbers<[1], [0], [0], [1], [0, 0, 1, 1], [], []>} : vector<512x12xbf16>, vector<12x4xbf16>, vector<512x4xf32> -> vector<512x4xf32>
    %9 = arith.addf %3, %8 : vector<512x4xf32>
    %c1 = arith.constant 1 : index
    %c0_9 = arith.constant 0 : index
    %c0_10 = arith.constant 0 : index
    %c0_11 = arith.constant 0 : index
    %10 = vector.load %arg9[%c1, %c0_9, %c0_10, %c0_11] : memref<18x2x16x12xbf16, #tpu.memory_space<vmem>>, vector<16x2x16x12xbf16>
    %11 = vector.shape_cast %10 : vector<16x2x16x12xbf16> to vector<512x12xbf16>
    %c0_12 = arith.constant 0 : index
    %c1_13 = arith.constant 1 : index
    %c0_14 = arith.constant 0 : index
    %c0_15 = arith.constant 0 : index
    %12 = vector.load %arg2[%c0_12, %c1_13, %c0_14, %c0_15] : memref<1x3x12x4xbf16, #tpu.memory_space<vmem>>, vector<1x1x12x4xbf16>
    %13 = vector.shape_cast %12 : vector<1x1x12x4xbf16> to vector<12x4xbf16>
    %cst_16 = arith.constant dense<0.000000e+00> : vector<512x4xf32>
    %14 = tpu.matmul %11, %13, %cst_16 {dimension_numbers = #tpu.dot_dimension_numbers<[1], [0], [0], [1], [0, 0, 1, 1], [], []>} : vector<512x12xbf16>, vector<12x4xbf16>, vector<512x4xf32> -> vector<512x4xf32>
    %15 = arith.addf %9, %14 : vector<512x4xf32>
    %c2 = arith.constant 2 : index
    %c0_17 = arith.constant 0 : index
    %c0_18 = arith.constant 0 : index
    %c0_19 = arith.constant 0 : index
    %16 = vector.load %arg9[%c2, %c0_17, %c0_18, %c0_19] : memref<18x2x16x12xbf16, #tpu.memory_space<vmem>>, vector<16x2x16x12xbf16>
    %17 = vector.shape_cast %16 : vector<16x2x16x12xbf16> to vector<512x12xbf16>
    %c0_20 = arith.constant 0 : index
    %c2_21 = arith.constant 2 : index
    %c0_22 = arith.constant 0 : index
    %c0_23 = arith.constant 0 : index
    %18 = vector.load %arg2[%c0_20, %c2_21, %c0_22, %c0_23] : memref<1x3x12x4xbf16, #tpu.memory_space<vmem>>, vector<1x1x12x4xbf16>
    %19 = vector.shape_cast %18 : vector<1x1x12x4xbf16> to vector<12x4xbf16>
    %cst_24 = arith.constant dense<0.000000e+00> : vector<512x4xf32>
    %20 = tpu.matmul %17, %19, %cst_24 {dimension_numbers = #tpu.dot_dimension_numbers<[1], [0], [0], [1], [0, 0, 1, 1], [], []>} : vector<512x12xbf16>, vector<12x4xbf16>, vector<512x4xf32> -> vector<512x4xf32>
    %21 = arith.addf %15, %20 : vector<512x4xf32>
    %c0_25 = arith.constant 0 : index
    %c0_26 = arith.constant 0 : index
    %22 = vector.load %arg3[%c0_25, %c0_26] : memref<1x4xf32, #tpu.memory_space<vmem>>, vector<1x4xf32>
    %c0_27 = arith.constant 0 : index
    %c0_28 = arith.constant 0 : index
    %23 = vector.load %arg4[%c0_27, %c0_28] : memref<1x4xf32, #tpu.memory_space<vmem>>, vector<1x4xf32>
    %cst_29 = arith.constant dense<0.000000e+00> : vector<4xf32>
    %24 = vector.multi_reduction <add>, %21, %cst_29 [0] : vector<512x4xf32> to vector<4xf32>
    %25 = vector.shape_cast %24 : vector<4xf32> to vector<1x4xf32>
    %cst_30 = arith.constant 0.001953125 : f32
    %26 = vector.broadcast %cst_30 : f32 to vector<1x4xf32>
    %27 = arith.mulf %25, %26 : vector<1x4xf32>
    %28 = arith.mulf %21, %21 : vector<512x4xf32>
    %cst_31 = arith.constant dense<0.000000e+00> : vector<4xf32>
    %29 = vector.multi_reduction <add>, %28, %cst_31 [0] : vector<512x4xf32> to vector<4xf32>
    %30 = vector.shape_cast %29 : vector<4xf32> to vector<1x4xf32>
    %cst_32 = arith.constant 0.001953125 : f32
    %31 = vector.broadcast %cst_32 : f32 to vector<1x4xf32>
    %32 = arith.mulf %30, %31 : vector<1x4xf32>
    %33 = arith.mulf %27, %27 : vector<1x4xf32>
    %34 = arith.subf %32, %33 : vector<1x4xf32>
    %cst_33 = arith.constant 0.000000e+00 : f32
    %35 = vector.broadcast %cst_33 : f32 to vector<1x4xf32>
    %36 = arith.maximumf %34, %35 : vector<1x4xf32>
    %cst_34 = arith.constant 9.99999974E-6 : f32
    %37 = vector.broadcast %cst_34 : f32 to vector<1x4xf32>
    %38 = arith.addf %36, %37 : vector<1x4xf32>
    %39 = math.rsqrt %38 : vector<1x4xf32>
    %40 = arith.mulf %22, %39 : vector<1x4xf32>
    %41 = vector.broadcast %40 : vector<1x4xf32> to vector<512x4xf32>
    %42 = arith.mulf %21, %41 : vector<512x4xf32>
    %43 = arith.mulf %27, %40 : vector<1x4xf32>
    %44 = arith.subf %23, %43 : vector<1x4xf32>
    %45 = vector.broadcast %44 : vector<1x4xf32> to vector<512x4xf32>
    %46 = arith.addf %42, %45 : vector<512x4xf32>
    %cst_35 = arith.constant 0.000000e+00 : f32
    %47 = vector.broadcast %cst_35 : f32 to vector<512x4xf32>
    %48 = arith.maximumf %46, %47 : vector<512x4xf32>
    %49 = arith.truncf %48 : vector<512x4xf32> to vector<512x4xbf16>
    %50 = vector.shape_cast %49 : vector<512x4xbf16> to vector<16x2x16x4xbf16>
    %c1_36 = arith.constant 1 : index
    %c0_37 = arith.constant 0 : index
    %c0_38 = arith.constant 0 : index
    %c4 = arith.constant 4 : index
    %51 = vector.load %arg10[%c1_36, %c0_37, %c0_38, %c4] : memref<18x2x16x12xbf16, #tpu.memory_space<vmem>>, vector<16x2x16x4xbf16>
    tpu.vector_store %arg10[%c1_36, %c0_37, %c0_38, %c4], %50 {strides = array<i32>} : memref<18x2x16x12xbf16, #tpu.memory_space<vmem>>, vector<16x2x16x4xbf16>,
    %52 = vector.extract_strided_slice %50 {offsets = [0, 0, 0, 0], sizes = [16, 2, 15, 4], strides = [1, 1, 1, 1]} : vector<16x2x16x4xbf16> to vector<16x2x15x4xbf16>
    %c1_39 = arith.constant 1 : index
    %c0_40 = arith.constant 0 : index
    %c1_41 = arith.constant 1 : index
    %c0_42 = arith.constant 0 : index
    %53 = vector.load %arg10[%c1_39, %c0_40, %c1_41, %c0_42] : memref<18x2x16x12xbf16, #tpu.memory_space<vmem>>, vector<16x2x15x4xbf16>
    tpu.vector_store %arg10[%c1_39, %c0_40, %c1_41, %c0_42], %52 {strides = array<i32>} : memref<18x2x16x12xbf16, #tpu.memory_space<vmem>>, vector<16x2x15x4xbf16>,
    %54 = vector.extract_strided_slice %50 {offsets = [0, 0, 1, 0], sizes = [16, 2, 15, 4], strides = [1, 1, 1, 1]} : vector<16x2x16x4xbf16> to vector<16x2x15x4xbf16>
    %c1_43 = arith.constant 1 : index
    %c0_44 = arith.constant 0 : index
    %c0_45 = arith.constant 0 : index
    %c8 = arith.constant 8 : index
    %55 = vector.load %arg10[%c1_43, %c0_44, %c0_45, %c8] : memref<18x2x16x12xbf16, #tpu.memory_space<vmem>>, vector<16x2x15x4xbf16>
    tpu.vector_store %arg10[%c1_43, %c0_44, %c0_45, %c8], %54 {strides = array<i32>} : memref<18x2x16x12xbf16, #tpu.memory_space<vmem>>, vector<16x2x15x4xbf16>,
    %cst_46 = arith.constant 0.000000e+00 : f32
    %56 = vector.broadcast %cst_46 : f32 to vector<512x4xf32>
    %c0_47 = arith.constant 0 : index
    %c0_48 = arith.constant 0 : index
    %c0_49 = arith.constant 0 : index
    %c0_50 = arith.constant 0 : index
    %57 = vector.load %arg10[%c0_47, %c0_48, %c0_49, %c0_50] : memref<18x2x16x12xbf16, #tpu.memory_space<vmem>>, vector<16x2x16x12xbf16>
    %58 = vector.shape_cast %57 : vector<16x2x16x12xbf16> to vector<512x12xbf16>
    %c0_51 = arith.constant 0 : index
    %c0_52 = arith.constant 0 : index
    %c0_53 = arith.constant 0 : index
    %c0_54 = arith.constant 0 : index
    %59 = vector.load %arg5[%c0_51, %c0_52, %c0_53, %c0_54] : memref<1x3x12x4xbf16, #tpu.memory_space<vmem>>, vector<1x1x12x4xbf16>
    %60 = vector.shape_cast %59 : vector<1x1x12x4xbf16> to vector<12x4xbf16>
    %cst_55 = arith.constant dense<0.000000e+00> : vector<512x4xf32>
    %61 = tpu.matmul %58, %60, %cst_55 {dimension_numbers = #tpu.dot_dimension_numbers<[1], [0], [0], [1], [0, 0, 1, 1], [], []>} : vector<512x12xbf16>, vector<12x4xbf16>, vector<512x4xf32> -> vector<512x4xf32>
    %62 = arith.addf %56, %61 : vector<512x4xf32>
    %c1_56 = arith.constant 1 : index
    %c0_57 = arith.constant 0 : index
    %c0_58 = arith.constant 0 : index
    %c0_59 = arith.constant 0 : index
    %63 = vector.load %arg10[%c1_56, %c0_57, %c0_58, %c0_59] : memref<18x2x16x12xbf16, #tpu.memory_space<vmem>>, vector<16x2x16x12xbf16>
    %64 = vector.shape_cast %63 : vector<16x2x16x12xbf16> to vector<512x12xbf16>
    %c0_60 = arith.constant 0 : index
    %c1_61 = arith.constant 1 : index
    %c0_62 = arith.constant 0 : index
    %c0_63 = arith.constant 0 : index
    %65 = vector.load %arg5[%c0_60, %c1_61, %c0_62, %c0_63] : memref<1x3x12x4xbf16, #tpu.memory_space<vmem>>, vector<1x1x12x4xbf16>
    %66 = vector.shape_cast %65 : vector<1x1x12x4xbf16> to vector<12x4xbf16>
    %cst_64 = arith.constant dense<0.000000e+00> : vector<512x4xf32>
    %67 = tpu.matmul %64, %66, %cst_64 {dimension_numbers = #tpu.dot_dimension_numbers<[1], [0], [0], [1], [0, 0, 1, 1], [], []>} : vector<512x12xbf16>, vector<12x4xbf16>, vector<512x4xf32> -> vector<512x4xf32>
    %68 = arith.addf %62, %67 : vector<512x4xf32>
    %c2_65 = arith.constant 2 : index
    %c0_66 = arith.constant 0 : index
    %c0_67 = arith.constant 0 : index
    %c0_68 = arith.constant 0 : index
    %69 = vector.load %arg10[%c2_65, %c0_66, %c0_67, %c0_68] : memref<18x2x16x12xbf16, #tpu.memory_space<vmem>>, vector<16x2x16x12xbf16>
    %70 = vector.shape_cast %69 : vector<16x2x16x12xbf16> to vector<512x12xbf16>
    %c0_69 = arith.constant 0 : index
    %c2_70 = arith.constant 2 : index
    %c0_71 = arith.constant 0 : index
    %c0_72 = arith.constant 0 : index
    %71 = vector.load %arg5[%c0_69, %c2_70, %c0_71, %c0_72] : memref<1x3x12x4xbf16, #tpu.memory_space<vmem>>, vector<1x1x12x4xbf16>
    %72 = vector.shape_cast %71 : vector<1x1x12x4xbf16> to vector<12x4xbf16>
    %cst_73 = arith.constant dense<0.000000e+00> : vector<512x4xf32>
    %73 = tpu.matmul %70, %72, %cst_73 {dimension_numbers = #tpu.dot_dimension_numbers<[1], [0], [0], [1], [0, 0, 1, 1], [], []>} : vector<512x12xbf16>, vector<12x4xbf16>, vector<512x4xf32> -> vector<512x4xf32>
    %74 = arith.addf %68, %73 : vector<512x4xf32>
    %c0_74 = arith.constant 0 : index
    %c0_75 = arith.constant 0 : index
    %75 = vector.load %arg6[%c0_74, %c0_75] : memref<1x4xf32, #tpu.memory_space<vmem>>, vector<1x4xf32>
    %c0_76 = arith.constant 0 : index
    %c0_77 = arith.constant 0 : index
    %76 = vector.load %arg7[%c0_76, %c0_77] : memref<1x4xf32, #tpu.memory_space<vmem>>, vector<1x4xf32>
    %cst_78 = arith.constant dense<0.000000e+00> : vector<4xf32>
    %77 = vector.multi_reduction <add>, %74, %cst_78 [0] : vector<512x4xf32> to vector<4xf32>
    %78 = vector.shape_cast %77 : vector<4xf32> to vector<1x4xf32>
    %cst_79 = arith.constant 0.001953125 : f32
    %79 = vector.broadcast %cst_79 : f32 to vector<1x4xf32>
    %80 = arith.mulf %78, %79 : vector<1x4xf32>
    %81 = arith.mulf %74, %74 : vector<512x4xf32>
    %cst_80 = arith.constant dense<0.000000e+00> : vector<4xf32>
    %82 = vector.multi_reduction <add>, %81, %cst_80 [0] : vector<512x4xf32> to vector<4xf32>
    %83 = vector.shape_cast %82 : vector<4xf32> to vector<1x4xf32>
    %cst_81 = arith.constant 0.001953125 : f32
    %84 = vector.broadcast %cst_81 : f32 to vector<1x4xf32>
    %85 = arith.mulf %83, %84 : vector<1x4xf32>
    %86 = arith.mulf %80, %80 : vector<1x4xf32>
    %87 = arith.subf %85, %86 : vector<1x4xf32>
    %cst_82 = arith.constant 0.000000e+00 : f32
    %88 = vector.broadcast %cst_82 : f32 to vector<1x4xf32>
    %89 = arith.maximumf %87, %88 : vector<1x4xf32>
    %cst_83 = arith.constant 9.99999974E-6 : f32
    %90 = vector.broadcast %cst_83 : f32 to vector<1x4xf32>
    %91 = arith.addf %89, %90 : vector<1x4xf32>
    %92 = math.rsqrt %91 : vector<1x4xf32>
    %93 = arith.mulf %75, %92 : vector<1x4xf32>
    %94 = vector.broadcast %93 : vector<1x4xf32> to vector<512x4xf32>
    %95 = arith.mulf %74, %94 : vector<512x4xf32>
    %96 = arith.mulf %80, %93 : vector<1x4xf32>
    %97 = arith.subf %76, %96 : vector<1x4xf32>
    %98 = vector.broadcast %97 : vector<1x4xf32> to vector<512x4xf32>
    %99 = arith.addf %95, %98 : vector<512x4xf32>
    %c0_84 = arith.constant 0 : index
    %c0_85 = arith.constant 0 : index
    %c0_86 = arith.constant 0 : index
    %c0_87 = arith.constant 0 : index
    %100 = vector.load %arg1[%c0_84, %c0_85, %c0_86, %c0_87] : memref<16x2x16x4xbf16, #tpu.memory_space<vmem>>, vector<16x2x16x4xbf16>
    %101 = arith.extf %100 : vector<16x2x16x4xbf16> to vector<16x2x16x4xf32>
    %102 = vector.shape_cast %101 : vector<16x2x16x4xf32> to vector<512x4xf32>
    %103 = arith.addf %99, %102 : vector<512x4xf32>
    %cst_88 = arith.constant 0.000000e+00 : f32
    %104 = vector.broadcast %cst_88 : f32 to vector<512x4xf32>
    %105 = arith.maximumf %103, %104 : vector<512x4xf32>
    %106 = vector.shape_cast %105 : vector<512x4xf32> to vector<16x2x16x4xf32>
    %c0_89 = arith.constant 0 : index
    %c0_90 = arith.constant 0 : index
    %c0_91 = arith.constant 0 : index
    %c0_92 = arith.constant 0 : index
    %107 = vector.load %arg8[%c0_89, %c0_90, %c0_91, %c0_92] : memref<16x2x16x4xf32, #tpu.memory_space<vmem>>, vector<16x2x16x4xf32>
    tpu.vector_store %arg8[%c0_89, %c0_90, %c0_91, %c0_92], %106 {strides = array<i32>} : memref<16x2x16x4xf32, #tpu.memory_space<vmem>>, vector<16x2x16x4xf32>,
    return
  }
  func.func @transform_0(%arg0: i32) -> (i32, i32, i32, i32) {
    %c0_i32 = arith.constant 0 : i32
    %c0_i32_0 = arith.constant 0 : i32
    %c0_i32_1 = arith.constant 0 : i32
    %c0_i32_2 = arith.constant 0 : i32
    %c0_i32_3 = arith.constant 0 : i32
    return %c0_i32, %c0_i32_0, %c0_i32_1, %c0_i32_2 : i32, i32, i32, i32
  }
  func.func @transform_1(%arg0: i32) -> (i32, i32, i32, i32) {
    %c0_i32 = arith.constant 0 : i32
    %c0_i32_0 = arith.constant 0 : i32
    %c0_i32_1 = arith.constant 0 : i32
    %c0_i32_2 = arith.constant 0 : i32
    return %arg0, %c0_i32, %c0_i32_0, %c0_i32_1 : i32, i32, i32, i32
  }
  func.func @transform_2(%arg0: i32) -> (i32, i32) {
    %c0_i32 = arith.constant 0 : i32
    %c0_i32_0 = arith.constant 0 : i32
    return %c0_i32, %arg0 : i32, i32
  }
  func.func @transform_3(%arg0: i32) -> (i32, i32) {
    %c0_i32 = arith.constant 0 : i32
    %c0_i32_0 = arith.constant 0 : i32
    return %c0_i32, %arg0 : i32, i32
  }
  func.func @transform_4(%arg0: i32) -> (i32, i32, i32, i32) {
    %c0_i32 = arith.constant 0 : i32
    %c0_i32_0 = arith.constant 0 : i32
    %c0_i32_1 = arith.constant 0 : i32
    %c0_i32_2 = arith.constant 0 : i32
    return %arg0, %c0_i32, %c0_i32_0, %c0_i32_1 : i32, i32, i32, i32
  }
  func.func @transform_5(%arg0: i32) -> (i32, i32) {
    %c0_i32 = arith.constant 0 : i32
    %c0_i32_0 = arith.constant 0 : i32
    %c0_i32_1 = arith.constant 0 : i32
    return %c0_i32, %c0_i32_0 : i32, i32
  }
  func.func @transform_6(%arg0: i32) -> (i32, i32) {
    %c0_i32 = arith.constant 0 : i32
    %c0_i32_0 = arith.constant 0 : i32
    %c0_i32_1 = arith.constant 0 : i32
    return %c0_i32, %c0_i32_0 : i32, i32
  }
  func.func @transform_7(%arg0: i32) -> (i32, i32, i32, i32) {
    %c0_i32 = arith.constant 0 : i32
    %c0_i32_0 = arith.constant 0 : i32
    %c0_i32_1 = arith.constant 0 : i32
    %c0_i32_2 = arith.constant 0 : i32
    %c0_i32_3 = arith.constant 0 : i32
    return %c0_i32, %c0_i32_0, %c0_i32_1, %c0_i32_2 : i32, i32, i32, i32
  }
}

</mosaic_0001>

<bundles_post_ra>
// kernel: resnet_block.1
= control target key start
LH: loop header
LB: loop body
LE: loop exit
PB: predicated region body
PF: predicated region fallthrough
CT: control target
= control target key end

     0   :  { %s7559_s28 = smov 4   ;;  %s7560_s18 = smov 8   ;;  %vm39_vm0 = vsmask.f32 256  ;;  %vm38_vm1 = vcmask 24576   ;;  %vm137_vm3 = vcmask 97351   ;;  %s12820_s0 = inlined_call_operand.vmem [shape: bf16[16,2,16,4], index: 0, kind: input, shape index: {}]   ;;  %s12821_s1 = inlined_call_operand.vmem [shape: bf16[1,3,12,4], index: 1, kind: input, shape index: {}]   ;;  %s12822_s2 = inlined_call_operand.vmem [shape: f32[1,4], index: 2, kind: input, shape index: {}]   ;;  %s12823_s3 = inlined_call_operand.vmem [shape: f32[1,4], index: 3, kind: input, shape index: {}]   ;;  %s12824_s4 = inlined_call_operand.vmem [shape: bf16[1,3,12,4], index: 4, kind: input, shape index: {}]   ;;  %s12825_s5 = inlined_call_operand.vmem [shape: f32[1,4], index: 5, kind: input, shape index: {}]   ;;  %s12826_s6 = inlined_call_operand.vmem [shape: f32[1,4], index: 6, kind: input, shape index: {}]   ;;  %s12827_s7 = inlined_call_operand.vmem [shape: f32[16,2,16,4], index: 7, kind: output, shape index: {}]  }
   0x1   :  { %v7517_v0 = vld [vmem:[%s12820_s0] sm:$0xff]   ;;  %v7518_v1 = vld [vmem:[%s12820_s0 + $0x8] sm:$0xff]   ;;  %v7519_v2 = vld [vmem:[%s12820_s0 + $0x10] sm:$0xff]   ;;  %vm138_vm4 = vsmask.f32 7966  ;;  %vm1573_vm6 = vcmask 1045504  }
   0x2   :  { %658 = vrot.lane.b32.xlu0 %v7517_v0, %s7559_s28  ;;  %v788_v3 = vshrl.u32 %v7517_v0, 16  ;;  %v791_v4 = vshll.u32 %v7517_v0, 16  ;;  %662 = vrot.lane.b32.xlu1 %v7519_v2, %s7559_s28  ;;  %v7520_v5 = vld [vmem:[%s12820_s0 + $0x18] sm:$0xff]   ;;  %v7619_v7 = vld [vmem:[%s12820_s0 + $0x20] sm:$0xff]   ;;  %v795_v10 = vshrl.u32 %v7518_v1, 16  ;;  %v798_v11 = vshll.u32 %v7518_v1, 16  ;;  %vm7923_vm2 = vmand %vm38_vm1, %vm39_vm0 }
   0x3   :  { %v802_v12 = vshrl.u32 %v7519_v2, 16  ;;  %v7628_v13 = vld [vmem:[%s12820_s0 + $0x28] sm:$0xff]   ;;  %v809_v16 = vshrl.u32 %v7520_v5, 16  ;;  %v805_v18 = vshll.u32 %v7519_v2, 16  ;;  %v812_v22 = vshll.u32 %v7520_v5, 16  ;;  %v7642_v26 = vld [vmem:[%s12820_s0 + $0x30] sm:$0xff]   ;;  %vm7971_vm5 = vmand %vm137_vm3, %vm138_vm4 }
   0x4   :  { %v790_v6 = vrot.slane %v788_v3, 7  ;;  %v1142_v8 = vrot.slane %v791_v4, 1  ;;  %v1144_v14 = vrot.slane %v798_v11, 1  ;;  %v797_v15 = vrot.slane %v795_v10, 7  ;;  %v7647_v27 = vld [vmem:[%s12820_s0 + $0x38] sm:$0xff]   ;;  %v7663_v37 = vld [vmem:[%s12820_s0 + $0x40] sm:$0xff]  }
   0x5   :  { %v804_v17 = vrot.slane %v802_v12, 7  ;;  %v811_v21 = vrot.slane %v809_v16, 7  ;;  %v816_v24 = vshrl.u32 %v7619_v7, 16  ;;  %v823_v29 = vshrl.u32 %v7628_v13, 16  ;;  %v7668_v38 = vld [vmem:[%s12820_s0 + $0x48] sm:$0xff]   ;;  %v7688_v48 = vld [vmem:[%s12820_s0 + $0x50] sm:$0xff]  }
   0x6   :  { %660 = vrot.lane.b32.xlu0 %v7518_v1, %s7559_s28  ;;  %v7622_v9 = vor.u32 %v791_v4, %v790_v6  ;;  %664 = vrot.lane.b32.xlu1 %v7520_v5, %s7559_s28  ;;  %v1143_v19 = vor.u32 %v1142_v8, %v788_v3  ;;  %v7632_v20 = vor.u32 %v798_v11, %v797_v15  ;;  %v819_v31 = vshll.u32 %v7619_v7, 16  ;;  %v7693_v49 = vld [vmem:[%s12820_s0 + $0x58] sm:$0xff]   ;;  %v7714_v60 = vld [vmem:[%s12820_s0 + $0x60] sm:$0xff]  }
   0x7   :  { %v7634_v23 = vor.u32 %v805_v18, %v804_v17  ;;  %v1145_v25 = vor.u32 %v1144_v14, %v795_v10  ;;  %v7649_v28 = vor.u32 %v812_v22, %v811_v21  ;;  %v818_v30 = vrot.slane %v816_v24, 7  ;;  %v7719_v61 = vld [vmem:[%s12820_s0 + $0x68] sm:$0xff]   ;;  %v7742_v8 = vld [vmem:[%s12820_s0 + $0x70] sm:$0xff]   ;;  %v7747_v10 = vld [vmem:[%s12820_s0 + $0x78] sm:$0xff]  }
   0x8   :  { %v1146_v32 = vrot.slane %v805_v18, 1  ;;  %v825_v33 = vrot.slane %v823_v29, 7  ;;  %v826_v34 = vshll.u32 %v7628_v13, 16  ;;  %v830_v35 = vshrl.u32 %v7642_v26, 16 }
   0x9   :  { %v1148_v36 = vrot.slane %v812_v22, 1  ;;  %v7670_v39 = vor.u32 %v819_v31, %v818_v30  ;;  %v837_v40 = vshrl.u32 %v7647_v27, 16  ;;  %v833_v43 = vshll.u32 %v7642_v26, 16  ;;  %v7772_v22 = vld [vmem:[%s12820_s0 + $0x80] sm:$0xff]  }
   0xa   :  { %666 = vrot.lane.b32.xlu0 %v7619_v7, %s7559_s28  ;;  %668 = vrot.lane.b32.xlu1 %v7628_v13, %s7559_s28  ;;  %v7674_v41 = vor.u32 %v826_v34, %v825_v33  ;;  %v832_v42 = vrot.slane %v830_v35, 7  ;;  %v840_v45 = vshll.u32 %v7647_v27, 16  ;;  %v844_v46 = vshrl.u32 %v7663_v37, 16 }
   0xb   :  { %v839_v44 = vrot.slane %v837_v40, 7  ;;  %v1147_v47 = vor.u32 %v1146_v32, %v802_v12  ;;  %v851_v51 = vshrl.u32 %v7668_v38, 16  ;;  %v847_v54 = vshll.u32 %v7663_v37, 16 }
   0xc   :  { %v7695_v50 = vor.u32 %v833_v43, %v832_v42  ;;  %v846_v53 = vrot.slane %v844_v46, 7  ;;  %v1149_v55 = vor.u32 %v1148_v36, %v809_v16  ;;  %v854_v57 = vshll.u32 %v7668_v38, 16 }
   0xd   :  { %v7700_v52 = vor.u32 %v840_v45, %v839_v44  ;;  %v853_v56 = vrot.slane %v851_v51, 7  ;;  %v858_v58 = vshrl.u32 %v7688_v48, 16  ;;  %v1150_v59 = vrot.slane %v819_v31, 1  ;;  %v7808_v44 = vld [vmem:[%s12820_s0 + $0x98] sm:$0xff]  }
   0xe   :  { %1206 = vrot.lane.b32.xlu0 %v1143_v19, %s7560_s18  ;;  %1208 = vrot.lane.b32.xlu1 %v1145_v25, %s7560_s18  ;;  %v7723_v62 = vor.u32 %v847_v54, %v846_v53  ;;  %v865_v63 = vshrl.u32 %v7693_v49, 16  ;;  %v861_v2 = vshll.u32 %v7688_v48, 16  ;;  %v868_v4 = vshll.u32 %v7693_v49, 16  ;;  %v7777_v25 = vld [vmem:[%s12820_s0 + $0x88] sm:$0xff]  }
   0xf   :  { %v7729_v0 = vor.u32 %v854_v57, %v853_v56  ;;  %v860_v1 = vrot.slane %v858_v58, 7  ;;  %v12846_v5 = vshrl.u32 %v7714_v60, 16  ;;  %v1152_v6 = vrot.slane %v826_v34, 1 }
  0x10   :  { %v867_v3 = vrot.slane %v865_v63, 7  ;;  %v12840_v12 = vshrl.u32 %v7719_v61, 16  ;;  %v12854_v16 = vshll.u32 %v7714_v60, 16  ;;  %v1151_v17 = vor.u32 %v1150_v59, %v816_v24 }
  0x11   :  { %v7751_v11 = vor.u32 %v861_v2, %v860_v1  ;;  %v874_v15 = vrot.slane %v12846_v5, 7  ;;  %v12853_v19 = vshll.u32 %v7719_v61, 16  ;;  %v12833_v21 = vshrl.u32 %v7742_v8, 16 }
  0x12   :  { %670 = vrot.lane.b32.xlu0 %v7642_v26, %s7559_s28  ;;  %672 = vrot.lane.b32.xlu1 %v7647_v27, %s7559_s28  ;;  %v7756_v14 = vor.u32 %v868_v4, %v867_v3  ;;  %v881_v18 = vrot.slane %v12840_v12, 7  ;;  %v12830_v24 = vshrl.u32 %v7747_v10, 16  ;;  %v1153_v30 = vor.u32 %v1152_v6, %v823_v29  ;;  %v7803_v29 = vld [vmem:[%s12820_s0 + $0x90] sm:$0xff]  }
  0x13   :  { %v7781_v7 = vor.u32 %v12854_v16, %v874_v15  ;;  %v888_v32 = vrot.slane %v12833_v21, 7  ;;  %v12852_v33 = vshll.u32 %v7742_v8, 16  ;;  %v12845_v36 = vshll.u32 %v7747_v10, 16  ;;  %v7832_v15 = vld [vmem:[%s12820_s0 + $0xa0] sm:$0xff]  }
  0x14   :  { %v7790_v31 = vor.u32 %v12853_v19, %v881_v18  ;;  %v895_v34 = vrot.slane %v12830_v24, 7  ;;  %v12829_v42 = vshrl.u32 %v7772_v22, 16  ;;  %v1154_v13 = vrot.slane %v833_v43, 1  ;;  %v47_v19 = vld [vmem:[#allocation2 + $0x20] sm:$0x1] }
  0x15   :  { %v12828_v53 = vshrl.u32 %v7777_v25, 16  ;;  %v12839_v56 = vshll.u32 %v7772_v22, 16  ;;  %v1156_v59 = vrot.slane %v840_v45, 1  ;;  %v12838_v3 = vshll.u32 %v7777_v25, 16  ;;  %v146_v16 = vld [vmem:[#allocation2 + $0x20] sm:$0x80] }
  0x16   :  { %1210 = vrot.lane.b32.xlu0 %v1147_v47, %s7560_s18  ;;  %1212 = vrot.lane.b32.xlu1 %v1149_v55, %s7560_s18  ;;  %v7812_v47 = vor.u32 %v12852_v33, %v888_v32  ;;  %v7817_v43 = vor.u32 %v12845_v36, %v895_v34  ;;  %v902_v55 = vrot.slane %v12829_v42, 7  ;;  %v12832_v6 = vshrl.u32 %v7803_v29, 16 }
  0x17   :  { %v909_v1 = vrot.slane %v12828_v53, 7  ;;  %v12831_v18 = vshrl.u32 %v7808_v44, 16  ;;  %v12834_v53 = vshll.u32 %v7803_v29, 16  ;;  %v12837_v42 = vshll.u32 %v7808_v44, 16 }
  0x18   :  { %v7841_v45 = vor.u32 %v12839_v56, %v902_v55  ;;  %v916_v34 = vrot.slane %v12832_v6, 7  ;;  %v12835_v24 = vshrl.u32 %v7832_v15, 16  ;;  %v1157_v26 = vor.u32 %v1156_v59, %v837_v40 }
  0x19   :  { %v7850_v32 = vor.u32 %v12838_v3, %v909_v1  ;;  %v923_v55 = vrot.slane %v12831_v18, 7  ;;  %v12844_v59 = vshll.u32 %v7832_v15, 16  ;;  %v1158_v6 = vrot.slane %v847_v54, 1 }
  0x1a   :  { %674 = vrot.lane.b32.xlu0 %v7663_v37, %s7559_s28  ;;  %676 = vrot.lane.b32.xlu1 %v7668_v38, %s7559_s28  ;;  %v7875_v1 = vor.u32 %v12834_v53, %v916_v34  ;;  %v930_v40 = vrot.slane %v12835_v24, 7  ;;  %v7897_v24 = vld [vmem:[%s12820_s0 + $0xc0] sm:$0xff]   ;;  %vm754_vm7 = vcmask 64544   ;;  %vm1043_vm8 = vcmask 31744  }
  0x1b   :  { %v7880_v27 = vor.u32 %v12837_v42, %v923_v55  ;;  %v1160_v55 = vrot.slane %v854_v57, 1  ;;  %vm1044_vm9 = vsmask.f32 7938  ;;  %vm1302_vm10 = vcmask 97344  }
  0x1c   :  { %v7906_v54 = vor.u32 %v12844_v59, %v930_v40  ;;  %v12847_v40 = vshrl.u32 %v7897_v24, 16  ;;  %vm1303_vm11 = vsmask.f32 7424  ;;  %vm31_vm12 = vcmask 97280   ;;  %vm8351_vm13 = vmand %vm1043_vm8, %vm1044_vm9 }
  0x1d   :  { %v1161_v5 = vor.u32 %v1160_v55, %v851_v51  ;;  %v1164_v55 = vrot.slane %v868_v4, 1  ;;  %vm8357_vm14 = vmand %vm1302_vm10, %vm1303_vm11 }
  0x1e   :  { %1214 = vrot.lane.b32.xlu0 %v1151_v17, %s7560_s18  ;;  %1216 = vrot.lane.b32.xlu1 %v1153_v30, %s7560_s18  ;;  %v7837_v17 = vld [vmem:[%s12820_s0 + $0xa8] sm:$0xff]   ;;  %v1155_v30 = vor.u32 %v1154_v13, %v830_v35  ;;  %v7866_v35 = vld [vmem:[%s12820_s0 + $0xb0] sm:$0xff]  }
  0x1f   :  { %v7871_v13 = vld [vmem:[%s12820_s0 + $0xb8] sm:$0xff]   ;;  %v12836_v18 = vshrl.u32 %v7837_v17, 16  ;;  %v12843_v21 = vshll.u32 %v7837_v17, 16  ;;  %v12841_v53 = vshrl.u32 %v7866_v35, 16  ;;  %v12851_v3 = vshll.u32 %v7866_v35, 16 }
  0x20   :  { %v12848_v12 = vshll.u32 %v7871_v13, 16 }
  0x21   :  { %v937_v34 = vrot.slane %v12836_v18, 7  ;;  %v12842_v18 = vshrl.u32 %v7871_v13, 16  ;;  %v944_v42 = vrot.slane %v12841_v53, 7  ;;  %v1159_v53 = vor.u32 %v1158_v6, %v844_v46  ;;  %v140_v6 = vld [vmem:[#allocation2 + $0x10] sm:$0x80] }
  0x22   :  { %678 = vrot.lane.b32.xlu0 %v7688_v48, %s7559_s28  ;;  %680 = vrot.lane.b32.xlu1 %v7693_v49, %s7559_s28  ;;  %v958_v46 = vrot.slane %v12847_v40, 7 }
  0x23   :  { %v7912_v57 = vor.u32 %v12843_v21, %v937_v34  ;;  %v951_v56 = vrot.slane %v12842_v18, 7  ;;  %v41_v34 = vld [vmem:[#allocation2 + $0x10] sm:$0x1]  ;;  %v1162_v18 = vrot.slane %v861_v2, 1  ;;  %v7940_v59 = vor.u32 %v12851_v3, %v944_v42  ;;  %v7957_v42 = vld [vmem:[%s12820_s0 + $0xd8] sm:$0xff]  }
  0x24   :  { %v7936_v21 = vld [vmem:[%s12820_s0 + $0xd0] sm:$0xff]   ;;  %v12850_v2 = vshll.u32 %v7897_v24, 16  ;;  %v12857_v3 = vshrl.u32 %v7957_v42, 16 }
  0x25   :  { %v7947_v37 = vor.u32 %v12848_v12, %v951_v56  ;;  %v42_v56 = vsel %vm7923_vm2, 0, %v41_v34  ;;  %v13031_v12 = vmov 0  ;;  %v7980_v34 = vld [vmem:[%s12820_s0 + $0xe0] sm:$0xff]  }
  0x26   :  { %1218 = vrot.lane.b32.xlu0 %v1155_v30, %s7560_s18  ;;  %v7902_v30 = vld [vmem:[%s12820_s0 + $0xc8] sm:$0xff]   ;;  %1220 = vrot.lane.b32.xlu1 %v1157_v26, %s7560_s18  ;;  %v13027_v26 = vmov 0  ;;  %v7968_v40 = vor.u32 %v12850_v2, %v958_v46  ;;  %43 = vst [vmem:[#allocation2 + $0x10] sm:$0x1] %v42_v56  ;;  %v13032_v12 = vsel %vm7971_vm5, 4294967295, %v13031_v12  ;;  %v141_v46 = vsel %vm7971_vm5, 0, %v140_v6 }
  0x27   :  { %v13028_v26 = vsel %vm7923_vm2, 4294967295, %v13027_v26  ;;  %v12849_v36 = vshrl.u32 %v7902_v30, 16  ;;  %v12855_v51 = vshll.u32 %v7902_v30, 16  ;;  %13033 = vst [vmem:[#allocation6_spill] sm:$0xff] %v13032_v12  ;;  %v44_v56 = vld [vmem:[#allocation2 + $0x18] sm:$0x1] }
  0x28   :  { %13029 = vst [vmem:[#allocation4_spill] sm:$0xff] %v13028_v26  ;;  %13030 = vst [vmem:[#allocation5_spill] sm:$0xff] %v7968_v40  ;;  %v143_v2 = vld [vmem:[#allocation2 + $0x18] sm:$0x80]  ;;  %v48_v6 = vsel %vm7923_vm2, 0, %v47_v19  ;;  %v12859_v19 = vshrl.u32 %v7980_v34, 16 }
  0x29   :  { %v965_v38 = vrot.slane %v12849_v36, 7  ;;  %v12856_v36 = vshrl.u32 %v7936_v21, 16  ;;  %142 = vst [vmem:[#allocation2 + $0x10] sm:$0x80] %v141_v46  ;;  %v144_v33 = vsel %vm7971_vm5, 0, %v143_v2  ;;  %v8004_v2 = vld [vmem:[%s12820_s0 + $0xe8] sm:$0xff]  }
  0x2a   :  { %682 = vrot.lane.b32.xlu0 %v7714_v60, %s7559_s28  ;;  %684 = vrot.lane.b32.xlu1 %v7719_v61, %s7559_s28  ;;  %145 = vst [vmem:[#allocation2 + $0x18] sm:$0x80] %v144_v33  ;;  %49 = vst [vmem:[#allocation2 + $0x20] sm:$0x1] %v48_v6  ;;  %v149_v33 = vld [vmem:[#allocation2 + $0x28] sm:$0x80] }
  0x2b   :  { %v7984_v4 = vor.u32 %v12855_v51, %v965_v38  ;;  %v147_v38 = vsel %vm7971_vm5, 0, %v146_v16  ;;  %v972_v46 = vrot.slane %v12856_v36, 7  ;;  %v50_v51 = vld [vmem:[#allocation2 + $0x28] sm:$0x1]  ;;  %v150_v6 = vsel %vm7971_vm5, 0, %v149_v33 }
  0x2c   :  { %148 = vst [vmem:[#allocation2 + $0x20] sm:$0x80] %v147_v38  ;;  %v51_v16 = vsel %vm7923_vm2, 0, %v50_v51  ;;  %v53_v38 = vld [vmem:[#allocation2 + $0x30] sm:$0x1]  ;;  %v1165_v51 = vor.u32 %v1164_v55, %v865_v63  ;;  %v986_v55 = vrot.slane %v12859_v19, 7 }
  0x2d   :  { %13034 = vst [vmem:[#allocation7_spill] sm:$0xff] %v7984_v4  ;;  %52 = vst [vmem:[#allocation2 + $0x28] sm:$0x1] %v51_v16  ;;  %v13035_v4 = vshll.u32 %v7957_v42, 16  ;;  %v54_v48 = vsel %vm7923_vm2, 0, %v53_v38  ;;  %v8045_v16 = vld [vmem:[%s12820_s0 + $0xf0] sm:$0xff]  }
  0x2e   :  { %1222 = vrot.lane.b32.xlu0 %v1159_v53, %s7560_s18  ;;  %v45_v53 = vsel %vm7923_vm2, 0, %v44_v56  ;;  %1224 = vrot.lane.b32.xlu1 %v1161_v5, %s7560_s18  ;;  %v12861_v56 = vshll.u32 %v7936_v21, 16  ;;  %v979_v5 = vrot.slane %v12857_v3, 7  ;;  %v152_v3 = vld [vmem:[#allocation2 + $0x30] sm:$0x80] }
  0x2f   :  { %46 = vst [vmem:[#allocation2 + $0x18] sm:$0x1] %v45_v53  ;;  %v1163_v53 = vor.u32 %v1162_v18, %v858_v58  ;;  %151 = vst [vmem:[#allocation2 + $0x28] sm:$0x80] %v150_v6  ;;  %v153_v58 = vsel %vm7971_vm5, 0, %v152_v3 }
  0x30   :  { %v8017_v36 = vor.u32 %v12861_v56, %v972_v46  ;;  %v8026_v40 = vor.u32 %v13035_v4, %v979_v5  ;;  %v56_v18 = vld [vmem:[#allocation2 + $0x38] sm:$0x1]  ;;  %55 = vst [vmem:[#allocation2 + $0x30] sm:$0x1] %v54_v48  ;;  %154 = vst [vmem:[#allocation2 + $0x30] sm:$0x80] %v153_v58 }
  0x31   :  { %v57_v49 = vsel %vm7923_vm2, 0, %v56_v18  ;;  %v155_v63 = vld [vmem:[#allocation2 + $0x38] sm:$0x80]  ;;  %v12860_v4 = vshll.u32 %v7980_v34, 16  ;;  %v12858_v46 = vshrl.u32 %v8004_v2, 16  ;;  %v13037_v5 = vshll.u32 %v7714_v60, 16 }
  0x32   :  { %686 = vrot.lane.b32.xlu0 %v7742_v8, %s7559_s28  ;;  %13036 = vst [vmem:[#allocation8_spill] sm:$0xff] %v8026_v40  ;;  %688 = vrot.lane.b32.xlu1 %v7747_v10, %s7559_s28  ;;  %58 = vst [vmem:[#allocation2 + $0x38] sm:$0x1] %v57_v49  ;;  %v156_v33 = vsel %vm7971_vm5, 0, %v155_v63  ;;  %v59_v6 = vld [vmem:[#allocation2 + $0x40] sm:$0x1] }
  0x33   :  { %v1166_v3 = vrot.slane %v13037_v5, 1  ;;  %157 = vst [vmem:[#allocation2 + $0x38] sm:$0x80] %v156_v33  ;;  %v8052_v38 = vor.u32 %v12860_v4, %v986_v55  ;;  %v993_v48 = vrot.slane %v12858_v46, 7  ;;  %v12862_v58 = vshll.u32 %v8004_v2, 16  ;;  %v8060_v49 = vld [vmem:[%s12820_s0 + $0xf8] sm:$0xff]  }
  0x34   :  { %v158_v18 = vld [vmem:[#allocation2 + $0x40] sm:$0x80]  ;;  %v62_v5 = vld [vmem:[#allocation2 + $0x48] sm:$0x1]  ;;  %v13039_v55 = vshll.u32 %v7719_v61, 16  ;;  %v13041_v56 = vshll.u32 %v7742_v8, 16 }
  0x35   :  { %13038 = vst [vmem:[#allocation9_spill] sm:$0xff] %v8052_v38  ;;  %v159_v63 = vsel %vm7971_vm5, 0, %v158_v18  ;;  %v8071_v46 = vor.u32 %v12862_v58, %v993_v48  ;;  %v63_v19 = vsel %vm7923_vm2, 0, %v62_v5  ;;  %v161_v4 = vld [vmem:[#allocation2 + $0x48] sm:$0x80]  ;;  %v13042_v48 = vshrl.u32 %v7714_v60, 16 }
  0x36   :  { %1226 = vrot.lane.b32.xlu0 %v1163_v53, %s7560_s18  ;;  %v60_v53 = vsel %vm7923_vm2, 0, %v59_v6  ;;  %1228 = vrot.lane.b32.xlu1 %v1165_v51, %s7560_s18  ;;  %v1168_v33 = vrot.slane %v13039_v55, 1  ;;  %160 = vst [vmem:[#allocation2 + $0x40] sm:$0x80] %v159_v63  ;;  %v12864_v6 = vshrl.u32 %v8045_v16, 16  ;;  %v1170_v18 = vrot.slane %v13041_v56, 1 }
  0x37   :  { %13040 = vst [vmem:[#allocation10_spill] sm:$0xff] %v8071_v46  ;;  %61 = vst [vmem:[#allocation2 + $0x40] sm:$0x1] %v60_v53  ;;  %v162_v51 = vsel %vm7971_vm5, 0, %v161_v4  ;;  %v12863_v55 = vshrl.u32 %v8060_v49, 16  ;;  %v1167_v53 = vor.u32 %v1166_v3, %v13042_v48  ;;  %v12865_v63 = vshll.u32 %v8045_v16, 16 }
  0x38   :  { %64 = vst [vmem:[#allocation2 + $0x48] sm:$0x1] %v63_v19  ;;  %163 = vst [vmem:[#allocation2 + $0x48] sm:$0x80] %v162_v51  ;;  %v1000_v5 = vrot.slane %v12864_v6, 7  ;;  %v13043_v19 = vshll.u32 %v7747_v10, 16 }
  0x39   :  { %v7549_v56 = vld [vmem:[%s12821_s1 + $0x8] sm:$0x3f]   ;;  %v1007_v58 = vrot.slane %v12863_v55, 7  ;;  %v65_v60 = vld [vmem:[#allocation2 + $0x50] sm:$0x1]  ;;  %v13044_v3 = vshrl.u32 %v7719_v61, 16 }
  0x3a   :  { %690 = vrot.lane.b32.xlu0 %v7772_v22, %s7559_s28  ;;  %v1172_v4 = vrot.slane %v13043_v19, 1  ;;  %692 = vrot.lane.b32.xlu1 %v7777_v25, %s7559_s28  ;;  %v8102_v48 = vor.u32 %v12865_v63, %v1000_v5  ;;  %v1575_v19 = vsel %vm1573_vm6, %v7549_v56, 0  ;;  %v66_v55 = vsel %vm7923_vm2, 0, %v65_v60  ;;  %v164_v6 = vld [vmem:[#allocation2 + $0x50] sm:$0x80] }
  0x3b   :  { %v1169_v51 = vor.u32 %v1168_v33, %v13044_v3  ;;  %7508 = vmatprep.subr.msk.bf16.mxu0 %vm1573_vm6, %v7549_v56  ;;  %v13045_v46 = vshll.u32 %v7772_v22, 16  ;;  %v13046_v40 = vshll.u32 %v8060_v49, 16  ;;  %67 = vst [vmem:[#allocation2 + $0x50] sm:$0x1] %v66_v55  ;;  %v165_v33 = vsel %vm7971_vm5, 0, %v164_v6 }
  0x3c   :  { %6857 = vmatpush3.bf16.msra.mxu0 %v1575_v19  ;;  %v8121_v5 = vld [vmem:[%s12821_s1] sm:$0x3f]   ;;  %166 = vst [vmem:[#allocation2 + $0x50] sm:$0x80] %v165_v33  ;;  %v68_v56 = vld [vmem:[#allocation2 + $0x58] sm:$0x1] }
  0x3d   :  { %v8110_v38 = vrot.slane %v13045_v46, 1  ;;  %v8114_v61 = vor.u32 %v13046_v40, %v1007_v58  ;;  %v167_v46 = vld [vmem:[#allocation2 + $0x58] sm:$0x80]  ;;  %v71_v60 = vld [vmem:[#allocation2 + $0x60] sm:$0x1]  ;;  %v13048_v3 = vshll.u32 %v7777_v25, 16  ;;  %7509 = vmatprep.subr.msk.bf16.mxu0 %vm1573_vm6, %v8121_v5 }
  0x3e   :  { %1230 = vrot.lane.b32.xlu0 %v1167_v53, %s7560_s18  ;;  %v69_v58 = vsel %vm7923_vm2, 0, %v68_v56  ;;  %v168_v6 = vsel %vm7971_vm5, 0, %v167_v46  ;;  %v72_v55 = vsel %vm7923_vm2, 0, %v71_v60  ;;  %v170_v53 = vld [vmem:[#allocation2 + $0x60] sm:$0x80]  ;;  %1232 = vrot.lane.b32.xlu1 %v1169_v51, %s7560_s18  ;;  %v13049_v19 = vshll.u32 %v7803_v29, 16 }
  0x3f   :  { %13047 = vst [vmem:[#allocation11_spill] sm:$0xff] %v8114_v61  ;;  %v8126_v40 = vrot.slane %v13048_v3, 1  ;;  %70 = vst [vmem:[#allocation2 + $0x58] sm:$0x1] %v69_v58  ;;  %v171_v3 = vsel %vm7971_vm5, 0, %v170_v53  ;;  %v13050_v58 = vshrl.u32 %v7742_v8, 16 }
  0x40   :  { %v8139_v33 = vrot.slane %v13049_v19, 1  ;;  %169 = vst [vmem:[#allocation2 + $0x58] sm:$0x80] %v168_v6  ;;  %73 = vst [vmem:[#allocation2 + $0x60] sm:$0x1] %v72_v55 }
  0x41   :  { %v74_v56 = vld [vmem:[#allocation2 + $0x68] sm:$0x1]  ;;  %v173_v63 = vld [vmem:[#allocation2 + $0x68] sm:$0x80]  ;;  %172 = vst [vmem:[#allocation2 + $0x60] sm:$0x80] %v171_v3  ;;  %v1171_v6 = vor.u32 %v1170_v18, %v13050_v58 }
  0x42   :  { %v75_v46 = vsel %vm7923_vm2, 0, %v74_v56  ;;  %v174_v60 = vsel %vm7971_vm5, 0, %v173_v63  ;;  %v77_v51 = vld [vmem:[#allocation2 + $0x70] sm:$0x1]  ;;  %v176_v61 = vld [vmem:[#allocation2 + $0x70] sm:$0x80]  ;;  %694 = vrot.lane.b32.xlu0 %v7803_v29, %s7559_s28  ;;  %696 = vrot.lane.b32.xlu1 %v7808_v44, %s7559_s28 }
  0x43   :  { %76 = vst [vmem:[#allocation2 + $0x68] sm:$0x1] %v75_v46  ;;  %175 = vst [vmem:[#allocation2 + $0x68] sm:$0x80] %v174_v60  ;;  %v78_v55 = vsel %vm7923_vm2, 0, %v77_v51  ;;  %v177_v53 = vsel %vm7971_vm5, 0, %v176_v61 }
  0x44   :  { %v80_v19 = vld [vmem:[#allocation2 + $0x78] sm:$0x1]  ;;  %v179_v3 = vld [vmem:[#allocation2 + $0x78] sm:$0x80]  ;;  %79 = vst [vmem:[#allocation2 + $0x70] sm:$0x1] %v78_v55 }
  0x45   :  { %178 = vst [vmem:[#allocation2 + $0x70] sm:$0x80] %v177_v53  ;;  %v81_v63 = vsel %vm7923_vm2, 0, %v80_v19  ;;  %v180_v56 = vsel %vm7971_vm5, 0, %v179_v3  ;;  %v83_v8 = vld [vmem:[#allocation2 + $0x80] sm:$0x1] }
  0x46   :  { %v182_v18 = vld [vmem:[#allocation2 + $0x80] sm:$0x80]  ;;  %v13051_v46 = vshrl.u32 %v7747_v10, 16  ;;  %82 = vst [vmem:[#allocation2 + $0x78] sm:$0x1] %v81_v63  ;;  %v84_v61 = vsel %vm7923_vm2, 0, %v83_v8  ;;  %1234 = vrot.lane.b32.xlu0 %v1171_v6, %s7560_s18 }
  0x47   :  { %181 = vst [vmem:[#allocation2 + $0x78] sm:$0x80] %v180_v56  ;;  %v183_v51 = vsel %vm7971_vm5, 0, %v182_v18  ;;  %v86_v58 = vld [vmem:[#allocation2 + $0x88] sm:$0x1] }
  0x48   :  { %v1173_v60 = vor.u32 %v1172_v4, %v13051_v46  ;;  %v185_v55 = vld [vmem:[#allocation2 + $0x88] sm:$0x80]  ;;  %85 = vst [vmem:[#allocation2 + $0x80] sm:$0x1] %v84_v61  ;;  %184 = vst [vmem:[#allocation2 + $0x80] sm:$0x80] %v183_v51 }
  0x49   :  { %v87_v53 = vsel %vm7923_vm2, 0, %v86_v58  ;;  %v186_v19 = vsel %vm7971_vm5, 0, %v185_v55  ;;  %v89_v10 = vld [vmem:[#allocation2 + $0x90] sm:$0x1]  ;;  %v188_v4 = vld [vmem:[#allocation2 + $0x90] sm:$0x80] }
  0x4a   :  { %88 = vst [vmem:[#allocation2 + $0x88] sm:$0x1] %v87_v53  ;;  %187 = vst [vmem:[#allocation2 + $0x88] sm:$0x80] %v186_v19  ;;  %v90_v3 = vsel %vm7923_vm2, 0, %v89_v10  ;;  %v189_v63 = vsel %vm7971_vm5, 0, %v188_v4  ;;  %1236 = vrot.lane.b32.xlu1 %v1173_v60, %s7560_s18  ;;  %698 = vrot.lane.b32.xlu0 %v7832_v15, %s7559_s28 }
  0x4b   :  { %v92_v56 = vld [vmem:[#allocation2 + $0x98] sm:$0x1]  ;;  %v191_v8 = vld [vmem:[#allocation2 + $0x98] sm:$0x80]  ;;  %91 = vst [vmem:[#allocation2 + $0x90] sm:$0x1] %v90_v3 }
  0x4c   :  { %190 = vst [vmem:[#allocation2 + $0x90] sm:$0x80] %v189_v63  ;;  %v93_v18 = vsel %vm7923_vm2, 0, %v92_v56  ;;  %v192_v46 = vsel %vm7971_vm5, 0, %v191_v8  ;;  %v95_v61 = vld [vmem:[#allocation2 + $0xa0] sm:$0x1] }
  0x4d   :  { %v194_v6 = vld [vmem:[#allocation2 + $0xa0] sm:$0x80]  ;;  %94 = vst [vmem:[#allocation2 + $0x98] sm:$0x1] %v93_v18  ;;  %193 = vst [vmem:[#allocation2 + $0x98] sm:$0x80] %v192_v46 }
  0x4e   :  { %v96_v51 = vsel %vm7923_vm2, 0, %v95_v61  ;;  %v195_v58 = vsel %vm7971_vm5, 0, %v194_v6  ;;  %v98_v55 = vld [vmem:[#allocation2 + $0xa8] sm:$0x1]  ;;  %v197_v53 = vld [vmem:[#allocation2 + $0xa8] sm:$0x80]  ;;  %700 = vrot.lane.b32.xlu1 %v7837_v17, %s7559_s28 }
  0x4f   :  { %97 = vst [vmem:[#allocation2 + $0xa0] sm:$0x1] %v96_v51  ;;  %196 = vst [vmem:[#allocation2 + $0xa0] sm:$0x80] %v195_v58  ;;  %v99_v19 = vsel %vm7923_vm2, 0, %v98_v55  ;;  %v198_v10 = vsel %vm7971_vm5, 0, %v197_v53 }
  0x50   :  { %v101_v4 = vld [vmem:[#allocation2 + $0xb0] sm:$0x1]  ;;  %v200_v60 = vld [vmem:[#allocation2 + $0xb0] sm:$0x80]  ;;  %v13052_v3 = vshrl.u32 %v7772_v22, 16  ;;  %v13053_v51 = vshrl.u32 %v7777_v25, 16 }
  0x51   :  { %100 = vst [vmem:[#allocation2 + $0xa8] sm:$0x1] %v99_v19  ;;  %199 = vst [vmem:[#allocation2 + $0xa8] sm:$0x80] %v198_v10  ;;  %v102_v56 = vsel %vm7923_vm2, 0, %v101_v4  ;;  %v201_v8 = vsel %vm7971_vm5, 0, %v200_v60 }
  0x52   :  { %v1175_v63 = vor.u32 %v8110_v38, %v13052_v3  ;;  %v104_v18 = vld [vmem:[#allocation2 + $0xb8] sm:$0x1]  ;;  %v203_v46 = vld [vmem:[#allocation2 + $0xb8] sm:$0x80]  ;;  %103 = vst [vmem:[#allocation2 + $0xb0] sm:$0x1] %v102_v56  ;;  %v1177_v58 = vor.u32 %v8126_v40, %v13053_v51 }
  0x53   :  { %202 = vst [vmem:[#allocation2 + $0xb0] sm:$0x80] %v201_v8  ;;  %v105_v61 = vsel %vm7923_vm2, 0, %v104_v18  ;;  %v204_v22 = vsel %vm7971_vm5, 0, %v203_v46  ;;  %v107_v6 = vld [vmem:[#allocation2 + $0xc0] sm:$0x1] }
  0x54   :  { %v206_v38 = vld [vmem:[#allocation2 + $0xc0] sm:$0x80]  ;;  %106 = vst [vmem:[#allocation2 + $0xb8] sm:$0x1] %v105_v61  ;;  %205 = vst [vmem:[#allocation2 + $0xb8] sm:$0x80] %v204_v22  ;;  %1238 = vrot.lane.b32.xlu0 %v1175_v63, %s7560_s18  ;;  %1240 = vrot.lane.b32.xlu1 %v1177_v58, %s7560_s18 }
  0x55   :  { %v108_v55 = vsel %vm7923_vm2, 0, %v107_v6  ;;  %v207_v53 = vsel %vm7971_vm5, 0, %v206_v38  ;;  %v110_v19 = vld [vmem:[#allocation2 + $0xc8] sm:$0x1]  ;;  %v209_v10 = vld [vmem:[#allocation2 + $0xc8] sm:$0x80] }
  0x56   :  { %109 = vst [vmem:[#allocation2 + $0xc0] sm:$0x1] %v108_v55  ;;  %208 = vst [vmem:[#allocation2 + $0xc0] sm:$0x80] %v207_v53  ;;  %v111_v4 = vsel %vm7923_vm2, 0, %v110_v19  ;;  %v210_v25 = vsel %vm7971_vm5, 0, %v209_v10 }
  0x57   :  { %v113_v60 = vld [vmem:[#allocation2 + $0xd0] sm:$0x1]  ;;  %v212_v40 = vld [vmem:[#allocation2 + $0xd0] sm:$0x80]  ;;  %112 = vst [vmem:[#allocation2 + $0xc8] sm:$0x1] %v111_v4 }
  0x58   :  { %211 = vst [vmem:[#allocation2 + $0xc8] sm:$0x80] %v210_v25  ;;  %v114_v3 = vsel %vm7923_vm2, 0, %v113_v60  ;;  %v213_v56 = vsel %vm7971_vm5, 0, %v212_v40  ;;  %v116_v8 = vld [vmem:[#allocation2 + $0xd8] sm:$0x1]  ;;  %702 = vrot.lane.b32.xlu0 %v7866_v35, %s7559_s28  ;;  %704 = vrot.lane.b32.xlu1 %v7871_v13, %s7559_s28 }
  0x59   :  { %v215_v18 = vld [vmem:[#allocation2 + $0xd8] sm:$0x80]  ;;  %115 = vst [vmem:[#allocation2 + $0xd0] sm:$0x1] %v114_v3  ;;  %214 = vst [vmem:[#allocation2 + $0xd0] sm:$0x80] %v213_v56 }
  0x5a   :  { %v117_v46 = vsel %vm7923_vm2, 0, %v116_v8  ;;  %v216_v61 = vsel %vm7971_vm5, 0, %v215_v18  ;;  %v13054_v63 = vshll.u32 %v7808_v44, 16  ;;  %v13055_v6 = vshrl.u32 %v7803_v29, 16  ;;  %v119_v53 = vld [vmem:[#allocation2 + $0xe0] sm:$0x1] }
  0x5b   :  { %118 = vst [vmem:[#allocation2 + $0xd8] sm:$0x1] %v117_v46  ;;  %217 = vst [vmem:[#allocation2 + $0xd8] sm:$0x80] %v216_v61  ;;  %v13056_v51 = vshrl.u32 %v7808_v44, 16  ;;  %v120_v19 = vsel %vm7923_vm2, 0, %v119_v53 }
  0x5c   :  { %v1180_v22 = vrot.slane %v13054_v63, 1  ;;  %v1179_v38 = vor.u32 %v8139_v33, %v13055_v6  ;;  %v218_v58 = vld [vmem:[#allocation2 + $0xe0] sm:$0x80]  ;;  %v122_v4 = vld [vmem:[#allocation2 + $0xe8] sm:$0x1]  ;;  %v13057_v29 = vshll.u32 %v7832_v15, 16 }
  0x5d   :  { %v219_v10 = vsel %vm7971_vm5, 0, %v218_v58  ;;  %v221_v25 = vld [vmem:[#allocation2 + $0xe8] sm:$0x80]  ;;  %121 = vst [vmem:[#allocation2 + $0xe0] sm:$0x1] %v120_v19  ;;  %v123_v44 = vsel %vm7923_vm2, 0, %v122_v4 }
  0x5e   :  { %v1181_v55 = vor.u32 %v1180_v22, %v13056_v51  ;;  %1242 = vrot.lane.b32.xlu0 %v1179_v38, %s7560_s18  ;;  %v1182_v33 = vrot.slane %v13057_v29, 1  ;;  %220 = vst [vmem:[#allocation2 + $0xe0] sm:$0x80] %v219_v10  ;;  %v222_v60 = vsel %vm7971_vm5, 0, %v221_v25  ;;  %124 = vst [vmem:[#allocation2 + $0xe8] sm:$0x1] %v123_v44 }
  0x5f   :  { %223 = vst [vmem:[#allocation2 + $0xe8] sm:$0x80] %v222_v60  ;;  %v13058_v40 = vshll.u32 %v7837_v17, 16  ;;  %v13059_v56 = vshrl.u32 %v7832_v15, 16  ;;  %v13060_v18 = vshrl.u32 %v7837_v17, 16  ;;  %v13061_v15 = vshll.u32 %v7866_v35, 16 }
  0x60   :  { %1244 = vrot.lane.b32.xlu1 %v1181_v55, %s7560_s18  ;;  %v125_v61 = vld [vmem:[#allocation2 + $0xf0] sm:$0x1]  ;;  %v224_v63 = vld [vmem:[#allocation2 + $0xf0] sm:$0x80]  ;;  %v128_v38 = vld [vmem:[#allocation2 + $0xf8] sm:$0x1] }
  0x61   :  { %v1184_v3 = vrot.slane %v13058_v40, 1  ;;  %v1183_v8 = vor.u32 %v1182_v33, %v13059_v56  ;;  %v126_v22 = vsel %vm7923_vm2, 0, %v125_v61  ;;  %v225_v6 = vsel %vm7971_vm5, 0, %v224_v63  ;;  %v227_v51 = vld [vmem:[#allocation2 + $0xf8] sm:$0x80] }
  0x62   :  { %706 = vrot.lane.b32.xlu0 %v7897_v24, %s7559_s28  ;;  %v1186_v55 = vrot.slane %v13061_v15, 1  ;;  %127 = vst [vmem:[#allocation2 + $0xf0] sm:$0x1] %v126_v22  ;;  %226 = vst [vmem:[#allocation2 + $0xf0] sm:$0x80] %v225_v6  ;;  %v129_v17 = vsel %vm7923_vm2, 0, %v128_v38 }
  0x63   :  { %v1185_v46 = vor.u32 %v1184_v3, %v13060_v18  ;;  %v228_v53 = vsel %vm7971_vm5, 0, %v227_v51  ;;  %130 = vst [vmem:[#allocation2 + $0xf8] sm:$0x1] %v129_v17  ;;  %v13062_v58 = vshll.u32 %v7871_v13, 16  ;;  %v13063_v10 = vshrl.u32 %v7866_v35, 16 }
  0x64   :  { %708 = vrot.lane.b32.xlu1 %v7902_v30, %s7559_s28  ;;  %229 = vst [vmem:[#allocation2 + $0xf8] sm:$0x80] %v228_v53  ;;  %v13064_v25 = vshrl.u32 %v7871_v13, 16  ;;  %v131_v33 = vld [vmem:[#allocation2 + $0x100] sm:$0x1]  ;;  %v13065_v35 = vshll.u32 %v7897_v24, 16 }
  0x65   :  { %v1188_v19 = vrot.slane %v13062_v58, 1  ;;  %v1187_v4 = vor.u32 %v1186_v55, %v13063_v10  ;;  %v230_v44 = vld [vmem:[#allocation2 + $0x100] sm:$0x80]  ;;  %v132_v60 = vsel %vm7923_vm2, 0, %v131_v33  ;;  %v134_v3 = vld [vmem:[#allocation2 + $0x108] sm:$0x1] }
  0x66   :  { %1246 = vrot.lane.b32.xlu0 %v1183_v8, %s7560_s18  ;;  %v231_v40 = vsel %vm7971_vm5, 0, %v230_v44  ;;  %v233_v56 = vld [vmem:[#allocation2 + $0x108] sm:$0x80]  ;;  %v1190_v8 = vrot.slane %v13065_v35, 1  ;;  %133 = vst [vmem:[#allocation2 + $0x100] sm:$0x1] %v132_v60 }
  0x67   :  { %v1189_v29 = vor.u32 %v1188_v19, %v13064_v25  ;;  %232 = vst [vmem:[#allocation2 + $0x100] sm:$0x80] %v231_v40  ;;  %v135_v13 = vsel %vm7923_vm2, 0, %v134_v3  ;;  %v234_v18 = vsel %vm7971_vm5, 0, %v233_v56  ;;  %v13067_v63 = vshrl.u32 %v7897_v24, 16 }
  0x68   :  { %1248 = vrot.lane.b32.xlu1 %v1185_v46, %s7560_s18  ;;  %136 = vst [vmem:[#allocation2 + $0x108] sm:$0x1] %v135_v13  ;;  %235 = vst [vmem:[#allocation2 + $0x108] sm:$0x80] %v234_v18  ;;  %v13066_v46 = vshll.u32 %v7902_v30, 16  ;;  %v13068_v6 = vshrl.u32 %v7902_v30, 16 }
  0x69   :  { %v1191_v22 = vor.u32 %v1190_v8, %v13067_v63  ;;  %v13069_v51 = vshll.u32 %v7936_v21, 16  ;;  %v13070_v55 = vshll.u32 %v7957_v42, 16  ;;  %v13071_v24 = vshrl.u32 %v7936_v21, 16 }
  0x6a   :  { %710 = vrot.lane.b32.xlu0 %v7936_v21, %s7559_s28  ;;  %v1192_v61 = vrot.slane %v13066_v46, 1  ;;  %v13072_v30 = vshll.u32 %v7980_v34, 16  ;;  %v13073_v10 = vshrl.u32 %v7957_v42, 16  ;;  %v13074_v25 = vshll.u32 %v8004_v2, 16 }
  0x6b   :  { %v1194_v15 = vrot.slane %v13069_v51, 1  ;;  %v1196_v17 = vrot.slane %v13070_v55, 1  ;;  %v13075_v21 = vshrl.u32 %v7980_v34, 16  ;;  %v13076_v60 = vshll.u32 %v8045_v16, 16 }
  0x6c   :  { %712 = vrot.lane.b32.xlu1 %v7957_v42, %s7559_s28  ;;  %v1193_v38 = vor.u32 %v1192_v61, %v13068_v6  ;;  %v1198_v58 = vrot.slane %v13072_v30, 1  ;;  %v13077_v42 = vshrl.u32 %v8004_v2, 16  ;;  %v13078_v35 = vshll.u32 %v8060_v49, 16 }
  0x6d   :  { %v1195_v53 = vor.u32 %v1194_v15, %v13071_v24  ;;  %v1202_v40 = vrot.slane %v13076_v60, 1  ;;  %v13080_v46 = vshrl.u32 %v8060_v49, 16  ;;  %v7561_v63 = vmov 0  }
  0x6e   :  { %1250 = vrot.lane.b32.xlu0 %v1187_v4, %s7560_s18  ;;  %v1197_v4 = vor.u32 %v1196_v17, %v13073_v10  ;;  %v1199_v44 = vor.u32 %v1198_v58, %v13075_v21  ;;  %v1204_v8 = vrot.slane %v13078_v35, 1  ;;  %32 = vst.msk [vmem:[#allocation2] sm:$0xff] %vm31_vm12, %v7561_v63  ;;  %33 = vst.msk [vmem:[#allocation2 + $0x8] sm:$0xff] %vm31_vm12, %v7561_v63  ;;  %v13084_v6 = vmov 0 }
  0x6f   :  { %35 = vst.msk [vmem:[#allocation2 + $0x110] sm:$0xff] %vm31_vm12, %v7561_v63  ;;  %36 = vst.msk [vmem:[#allocation2 + $0x118] sm:$0xff] %vm31_vm12, %v7561_v63  ;;  %v13085_v6 = vsel %vm8357_vm14, 4294967295, %v13084_v6 }
  0x70   :  { %1252 = vrot.lane.b32.xlu1 %v1189_v29, %s7560_s18  ;;  %v1200_v29 = vrot.slane %v13074_v25, 1  ;;  %v1205_v61 = vor.u32 %v1204_v8, %v13080_v46  ;;  %236 = vst.msk [vmem:[#allocation3] sm:$0xff] %vm31_vm12, %v7561_v63  ;;  %237 = vst.msk [vmem:[#allocation3 + $0x8] sm:$0xff] %vm31_vm12, %v7561_v63 }
  0x71   :  { %239 = vst.msk [vmem:[#allocation3 + $0x110] sm:$0xff] %vm31_vm12, %v7561_v63  ;;  %240 = vst.msk [vmem:[#allocation3 + $0x118] sm:$0xff] %vm31_vm12, %v7561_v63 }
  0x72   :  { %714 = vrot.lane.b32.xlu0 %v7980_v34, %s7559_s28  ;;  %v1201_v56 = vor.u32 %v1200_v29, %v13077_v42  ;;  %v13079_v34 = vshrl.u32 %v8045_v16, 16  ;;  %13086 = vst [vmem:[#allocation13_spill] sm:$0xff] %v13085_v6 }
  0x74   :  { %716 = vrot.lane.b32.xlu1 %v8004_v2, %s7559_s28  ;;  %v659_v19 = vpop.permute.xlu0 %658  ;;  %v663_v33 = vpop.permute.xlu1 %662  ;;  %v1203_v18 = vor.u32 %v1202_v40, %v13079_v34 }
  0x75   :  { %755 = vst.msk [vmem:[#allocation2 + $0x10] sm:$0xff] %vm754_vm7, %v659_v19  ;;  %757 = vst.msk [vmem:[#allocation2 + $0x20] sm:$0xff] %vm754_vm7, %v663_v33 }
  0x76   :  { %1254 = vrot.lane.b32.xlu0 %v1191_v22, %s7560_s18 }
  0x78   :  { %1256 = vrot.lane.b32.xlu1 %v1193_v38, %s7560_s18  ;;  %v661_v3 = vpop.permute.xlu0 %660  ;;  %v665_v13 = vpop.permute.xlu1 %664 }
  0x79   :  { %756 = vst.msk [vmem:[#allocation2 + $0x18] sm:$0xff] %vm754_vm7, %v661_v3  ;;  %758 = vst.msk [vmem:[#allocation2 + $0x28] sm:$0xff] %vm754_vm7, %v665_v13 }
  0x7a   :  { %718 = vrot.lane.b32.xlu0 %v8045_v16, %s7559_s28  ;;  %v13081_v16 = vmov 0 }
  0x7b   :  { %v13082_v16 = vsel %vm8351_vm13, 4294967295, %v13081_v16 }
  0x7c   :  { %720 = vrot.lane.b32.xlu1 %v8060_v49, %s7559_s28  ;;  %v667_v2 = vpop.permute.xlu0 %666  ;;  %13083 = vst [vmem:[#allocation12_spill] sm:$0xff] %v13082_v16  ;;  %v1046_v49 = vld [vmem:[#allocation2 + $0x10] sm:$0xff]  ;;  %v669_v22 = vpop.permute.xlu1 %668 }
  0x7d   :  { %759 = vst.msk [vmem:[#allocation2 + $0x30] sm:$0xff] %vm754_vm7, %v667_v2  ;;  %760 = vst.msk [vmem:[#allocation2 + $0x38] sm:$0xff] %vm754_vm7, %v669_v22  ;;  %v1047_v51 = vsel %vm8351_vm13, %v7622_v9, %v1046_v49  ;;  %v8378_v9 = vld [vmem:[%s12821_s1 + $0x10] sm:$0x3f]  }
  0x7e   :  { %1258 = vrot.lane.b32.xlu0 %v1195_v53, %s7560_s18  ;;  %v1968_v53 = vsel %vm1573_vm6, %v8121_v5, 0 }
  0x80   :  { %1260 = vrot.lane.b32.xlu1 %v1197_v4, %s7560_s18  ;;  %v1207_v38 = vpop.permute.xlu0 %1206  ;;  %v1049_v15 = vld [vmem:[#allocation2 + $0x18] sm:$0xff]  ;;  %v1209_v24 = vpop.permute.xlu1 %1208  ;;  %v1055_v5 = vld [vmem:[#allocation2 + $0x28] sm:$0xff] }
  0x81   :  { %v1306_v55 = vsel %vm8357_vm14, %v1207_v38, %v1047_v51  ;;  %v1050_v17 = vsel %vm8351_vm13, %v7632_v20, %v1049_v15  ;;  %v1052_v20 = vld [vmem:[#allocation2 + $0x20] sm:$0xff]  ;;  %v1056_v29 = vsel %vm8351_vm13, %v7649_v28, %v1055_v5 }
  0x82   :  { %1262 = vrot.lane.b32.xlu0 %v1199_v44, %s7560_s18  ;;  %1307 = vst [vmem:[#allocation2 + $0x10] sm:$0xff] %v1306_v55  ;;  %6858 = vmatprep.mubr.msk.bf16.mxu0 %vm31_vm12, %v1306_v55  ;;  %v1309_v30 = vsel %vm8357_vm14, %v1209_v24, %v1050_v17  ;;  %v1053_v10 = vsel %vm8351_vm13, %v7634_v23, %v1052_v20 }
  0x83   :  { %1310 = vst [vmem:[#allocation2 + $0x18] sm:$0xff] %v1309_v30  ;;  %6859 = vmatmul.mubr.msk.bf16.vlgmr.msra.gmra.mrb[0].mxu0 %vm31_vm12, %v1309_v30 }
  0x84   :  { %1264 = vrot.lane.b32.xlu1 %v1201_v56, %s7560_s18  ;;  %v671_v58 = vpop.permute.xlu0 %670  ;;  %6923 = vmatpush3.bf16.msra.mxu0 %v1968_v53  ;;  %v673_v19 = vpop.permute.xlu1 %672  ;;  %v1058_v44 = vld [vmem:[#allocation2 + $0x30] sm:$0xff]  ;;  %v1061_v28 = vld [vmem:[#allocation2 + $0x38] sm:$0xff] }
  0x85   :  { %761 = vst.msk [vmem:[#allocation2 + $0x40] sm:$0xff] %vm754_vm7, %v671_v58  ;;  %7510 = vmatprep.subr.msk.bf16.mxu0 %vm1573_vm6, %v8378_v9  ;;  %762 = vst.msk [vmem:[#allocation2 + $0x48] sm:$0xff] %vm754_vm7, %v673_v19  ;;  %v1059_v40 = vsel %vm8351_vm13, %v7670_v39, %v1058_v44  ;;  %v1062_v56 = vsel %vm8351_vm13, %v7674_v41, %v1061_v28 }
  0x86   :  { %1266 = vrot.lane.b32.xlu0 %v1203_v18, %s7560_s18 }
  0x88   :  { %1268 = vrot.lane.b32.xlu1 %v1205_v61, %s7560_s18  ;;  %v1211_v4 = vpop.permute.xlu0 %1210  ;;  %v1213_v33 = vpop.permute.xlu1 %1212 }
  0x89   :  { %v8392_v25 = vsel %vm8357_vm14, %v1211_v4, %v1053_v10  ;;  %v8402_v21 = vsel %vm8357_vm14, %v1213_v33, %v1056_v29 }
  0x8a   :  { %1313 = vst [vmem:[#allocation2 + $0x20] sm:$0xff] %v8392_v25  ;;  %6862 = vmatprep.mubr.msk.bf16.mxu0 %vm31_vm12, %v8392_v25  ;;  %1316 = vst [vmem:[#allocation2 + $0x28] sm:$0xff] %v8402_v21 }
  0x8b   :  { %6863 = vmatmul.mubr.msk.bf16.gmra.mrb[4].mxu0 %vm31_vm12, %v8402_v21 }
  0x8c   :  { %v675_v23 = vpop.permute.xlu0 %674  ;;  %v677_v60 = vpop.permute.xlu1 %676  ;;  %v1064_v13 = vld [vmem:[#allocation2 + $0x40] sm:$0xff]  ;;  %v1067_v41 = vld [vmem:[#allocation2 + $0x48] sm:$0xff] }
  0x8d   :  { %763 = vst.msk [vmem:[#allocation2 + $0x50] sm:$0xff] %vm754_vm7, %v675_v23  ;;  %764 = vst.msk [vmem:[#allocation2 + $0x58] sm:$0xff] %vm754_vm7, %v677_v60  ;;  %v1065_v18 = vsel %vm8351_vm13, %v7695_v50, %v1064_v13  ;;  %v1068_v61 = vsel %vm8351_vm13, %v7700_v52, %v1067_v41 }
  0x90   :  { %v1215_v3 = vpop.permute.xlu0 %1214  ;;  %v1217_v35 = vpop.permute.xlu1 %1216 }
  0x91   :  { %v8414_v42 = vsel %vm8357_vm14, %v1215_v3, %v1059_v40  ;;  %v8424_v8 = vsel %vm8357_vm14, %v1217_v35, %v1062_v56 }
  0x92   :  { %1319 = vst [vmem:[#allocation2 + $0x30] sm:$0xff] %v8414_v42  ;;  %6866 = vmatprep.mubr.msk.bf16.mxu0 %vm31_vm12, %v8414_v42  ;;  %1322 = vst [vmem:[#allocation2 + $0x38] sm:$0xff] %v8424_v8 }
  0x93   :  { %6867 = vmatmul.mubr.msk.bf16.gmra.mrb[8].mxu0 %vm31_vm12, %v8424_v8 }
  0x94   :  { %v679_v39 = vpop.permute.xlu0 %678  ;;  %v681_v34 = vpop.permute.xlu1 %680  ;;  %v1070_v22 = vld [vmem:[#allocation2 + $0x50] sm:$0xff]  ;;  %v1073_v52 = vld [vmem:[#allocation2 + $0x58] sm:$0xff] }
  0x95   :  { %765 = vst.msk [vmem:[#allocation2 + $0x60] sm:$0xff] %vm754_vm7, %v679_v39  ;;  %766 = vst.msk [vmem:[#allocation2 + $0x68] sm:$0xff] %vm754_vm7, %v681_v34  ;;  %v1071_v51 = vsel %vm8351_vm13, %v7723_v62, %v1070_v22  ;;  %v1074_v17 = vsel %vm8351_vm13, %v7729_v0, %v1073_v52 }
  0x98   :  { %v1219_v2 = vpop.permute.xlu0 %1218  ;;  %v1221_v63 = vpop.permute.xlu1 %1220 }
  0x99   :  { %v8436_v46 = vsel %vm8357_vm14, %v1219_v2, %v1065_v18  ;;  %v8446_v49 = vsel %vm8357_vm14, %v1221_v63, %v1068_v61 }
  0x9a   :  { %1325 = vst [vmem:[#allocation2 + $0x40] sm:$0xff] %v8436_v46  ;;  %6870 = vmatprep.mubr.msk.bf16.mxu0 %vm31_vm12, %v8436_v46  ;;  %1328 = vst [vmem:[#allocation2 + $0x48] sm:$0xff] %v8446_v49 }
  0x9b   :  { %6871 = vmatmul.mubr.msk.bf16.gmra.mrb[12].mxu0 %vm31_vm12, %v8446_v49 }
  0x9c   :  { %v683_v50 = vpop.permute.xlu0 %682  ;;  %v685_v38 = vpop.permute.xlu1 %684  ;;  %v1076_v30 = vld [vmem:[#allocation2 + $0x60] sm:$0xff]  ;;  %v1079_v0 = vld [vmem:[#allocation2 + $0x68] sm:$0xff] }
  0x9d   :  { %767 = vst.msk [vmem:[#allocation2 + $0x70] sm:$0xff] %vm754_vm7, %v683_v50  ;;  %768 = vst.msk [vmem:[#allocation2 + $0x78] sm:$0xff] %vm754_vm7, %v685_v38  ;;  %v1077_v20 = vsel %vm8351_vm13, %v7751_v11, %v1076_v30  ;;  %v1080_v10 = vsel %vm8351_vm13, %v7756_v14, %v1079_v0 }
  0xa0   :  { %v1223_v15 = vpop.permute.xlu0 %1222  ;;  %v1225_v24 = vpop.permute.xlu1 %1224 }
  0xa1   :  { %v8458_v55 = vsel %vm8357_vm14, %v1223_v15, %v1071_v51  ;;  %v8468_v53 = vsel %vm8357_vm14, %v1225_v24, %v1074_v17 }
  0xa2   :  { %1331 = vst [vmem:[#allocation2 + $0x50] sm:$0xff] %v8458_v55  ;;  %6874 = vmatprep.mubr.msk.bf16.mxu0 %vm31_vm12, %v8458_v55  ;;  %1334 = vst [vmem:[#allocation2 + $0x58] sm:$0xff] %v8468_v53 }
  0xa3   :  { %6875 = vmatmul.mubr.msk.bf16.gmra.mrb[16].mxu0 %vm31_vm12, %v8468_v53 }
  0xa4   :  { %v687_v62 = vpop.permute.xlu0 %686  ;;  %v689_v58 = vpop.permute.xlu1 %688  ;;  %v1082_v33 = vld [vmem:[#allocation2 + $0x70] sm:$0xff]  ;;  %v1085_v14 = vld [vmem:[#allocation2 + $0x78] sm:$0xff] }
  0xa5   :  { %769 = vst.msk [vmem:[#allocation2 + $0x80] sm:$0xff] %vm754_vm7, %v687_v62  ;;  %770 = vst.msk [vmem:[#allocation2 + $0x88] sm:$0xff] %vm754_vm7, %v689_v58  ;;  %v1083_v44 = vsel %vm8351_vm13, %v7781_v7, %v1082_v33  ;;  %v1086_v40 = vsel %vm8351_vm13, %v7790_v31, %v1085_v14 }
  0xa8   :  { %v1227_v19 = vpop.permute.xlu0 %1226  ;;  %v1229_v4 = vpop.permute.xlu1 %1228 }
  0xa9   :  { %v8480_v5 = vsel %vm8357_vm14, %v1227_v19, %v1077_v20  ;;  %v8490_v29 = vsel %vm8357_vm14, %v1229_v4, %v1080_v10 }
  0xaa   :  { %1337 = vst [vmem:[#allocation2 + $0x60] sm:$0xff] %v8480_v5  ;;  %6878 = vmatprep.mubr.msk.bf16.mxu0 %vm31_vm12, %v8480_v5  ;;  %1340 = vst [vmem:[#allocation2 + $0x68] sm:$0xff] %v8490_v29 }
  0xab   :  { %6879 = vmatmul.mubr.msk.bf16.gmra.mrb[20].mxu0 %vm31_vm12, %v8490_v29 }
  0xac   :  { %v691_v11 = vpop.permute.xlu0 %690  ;;  %v693_v23 = vpop.permute.xlu1 %692  ;;  %v1088_v35 = vld [vmem:[#allocation2 + $0x80] sm:$0xff]  ;;  %v1091_v31 = vld [vmem:[#allocation2 + $0x88] sm:$0xff] }
  0xad   :  { %771 = vst.msk [vmem:[#allocation2 + $0x90] sm:$0xff] %vm754_vm7, %v691_v11  ;;  %772 = vst.msk [vmem:[#allocation2 + $0x98] sm:$0xff] %vm754_vm7, %v693_v23  ;;  %v1089_v13 = vsel %vm8351_vm13, %v7812_v47, %v1088_v35  ;;  %v1092_v18 = vsel %vm8351_vm13, %v7817_v43, %v1091_v31 }
  0xb0   :  { %v1231_v60 = vpop.permute.xlu0 %1230  ;;  %v1233_v3 = vpop.permute.xlu1 %1232 }
  0xb1   :  { %v8502_v28 = vsel %vm8357_vm14, %v1231_v60, %v1083_v44  ;;  %v8512_v56 = vsel %vm8357_vm14, %v1233_v3, %v1086_v40 }
  0xb2   :  { %1343 = vst [vmem:[#allocation2 + $0x70] sm:$0xff] %v8502_v28  ;;  %6882 = vmatprep.mubr.msk.bf16.mxu0 %vm31_vm12, %v8502_v28  ;;  %1346 = vst [vmem:[#allocation2 + $0x78] sm:$0xff] %v8512_v56 }
  0xb3   :  { %6883 = vmatmul.mubr.msk.bf16.gmra.mrb[24].mxu0 %vm31_vm12, %v8512_v56 }
  0xb4   :  { %v695_v7 = vpop.permute.xlu0 %694  ;;  %v697_v39 = vpop.permute.xlu1 %696  ;;  %v1094_v63 = vld [vmem:[#allocation2 + $0x90] sm:$0xff]  ;;  %v1097_v43 = vld [vmem:[#allocation2 + $0x98] sm:$0xff] }
  0xb5   :  { %773 = vst.msk [vmem:[#allocation2 + $0xa0] sm:$0xff] %vm754_vm7, %v695_v7  ;;  %774 = vst.msk [vmem:[#allocation2 + $0xa8] sm:$0xff] %vm754_vm7, %v697_v39  ;;  %v1095_v22 = vsel %vm8351_vm13, %v7841_v45, %v1094_v63  ;;  %v1098_v51 = vsel %vm8351_vm13, %v7850_v32, %v1097_v43  ;;  %v13087_v63 = vld [vmem:[#allocation5_spill] sm:$0xff] }
  0xb8   :  { %v1235_v34 = vpop.permute.xlu0 %1234 }
  0xb9   :  { %v8524_v41 = vsel %vm8357_vm14, %v1235_v34, %v1089_v13 }
  0xba   :  { %1349 = vst [vmem:[#allocation2 + $0x80] sm:$0xff] %v8524_v41  ;;  %6886 = vmatprep.mubr.msk.bf16.mxu0 %vm31_vm12, %v8524_v41 }
  0xbc   :  { %v1237_v2 = vpop.permute.xlu1 %1236  ;;  %v699_v47 = vpop.permute.xlu0 %698  ;;  %v1100_v24 = vld [vmem:[#allocation2 + $0xa0] sm:$0xff]  ;;  %v1103_v32 = vld [vmem:[#allocation2 + $0xa8] sm:$0xff] }
  0xbd   :  { %v8534_v61 = vsel %vm8357_vm14, %v1237_v2, %v1092_v18  ;;  %775 = vst.msk [vmem:[#allocation2 + $0xb0] sm:$0xff] %vm754_vm7, %v699_v47  ;;  %v1101_v30 = vsel %vm8351_vm13, %v7875_v1, %v1100_v24  ;;  %v1104_v20 = vsel %vm8351_vm13, %v7880_v27, %v1103_v32 }
  0xbe   :  { %1352 = vst [vmem:[#allocation2 + $0x88] sm:$0xff] %v8534_v61  ;;  %6887 = vmatmul.mubr.msk.bf16.gmra.mrb[28].mxu0 %vm31_vm12, %v8534_v61 }
  0xc0   :  { %v701_v50 = vpop.permute.xlu1 %700 }
  0xc1   :  { %776 = vst.msk [vmem:[#allocation2 + $0xb8] sm:$0xff] %vm754_vm7, %v701_v50 }
  0xc4   :  { %v1106_v4 = vld [vmem:[#allocation2 + $0xb0] sm:$0xff] }
  0xc5   :  { %v1107_v33 = vsel %vm8351_vm13, %v7906_v54, %v1106_v4  ;;  %v13089_v4 = vld [vmem:[#allocation8_spill] sm:$0xff] }
  0xc6   :  { %v1239_v38 = vpop.permute.xlu0 %1238  ;;  %v1241_v15 = vpop.permute.xlu1 %1240 }
  0xc7   :  { %v8546_v52 = vsel %vm8357_vm14, %v1239_v38, %v1095_v22  ;;  %v8556_v17 = vsel %vm8357_vm14, %v1241_v15, %v1098_v51  ;;  %v13088_v38 = vld [vmem:[#allocation7_spill] sm:$0xff] }
  0xc8   :  { %1355 = vst [vmem:[#allocation2 + $0x90] sm:$0xff] %v8546_v52  ;;  %6890 = vmatprep.mubr.msk.bf16.mxu0 %vm31_vm12, %v8546_v52  ;;  %1358 = vst [vmem:[#allocation2 + $0x98] sm:$0xff] %v8556_v17  ;;  %v1109_v27 = vld [vmem:[#allocation2 + $0xb8] sm:$0xff] }
  0xc9   :  { %6891 = vmatmul.mubr.msk.bf16.gmra.mrb[32].mxu0 %vm31_vm12, %v8556_v17  ;;  %v1110_v44 = vsel %vm8351_vm13, %v7912_v57, %v1109_v27 }
  0xca   :  { %v703_v45 = vpop.permute.xlu0 %702  ;;  %v705_v62 = vpop.permute.xlu1 %704 }
  0xcb   :  { %777 = vst.msk [vmem:[#allocation2 + $0xc0] sm:$0xff] %vm754_vm7, %v703_v45  ;;  %778 = vst.msk [vmem:[#allocation2 + $0xc8] sm:$0xff] %vm754_vm7, %v705_v62 }
  0xd0   :  { %v1243_v58 = vpop.permute.xlu0 %1242 }
  0xd1   :  { %v8568_v0 = vsel %vm8357_vm14, %v1243_v58, %v1101_v30 }
  0xd2   :  { %1361 = vst [vmem:[#allocation2 + $0xa0] sm:$0xff] %v8568_v0  ;;  %v1245_v19 = vpop.permute.xlu1 %1244  ;;  %6894 = vmatprep.mubr.msk.bf16.mxu0 %vm31_vm12, %v8568_v0  ;;  %v1112_v3 = vld [vmem:[#allocation2 + $0xc0] sm:$0xff]  ;;  %v1115_v57 = vld [vmem:[#allocation2 + $0xc8] sm:$0xff] }
  0xd3   :  { %v8578_v10 = vsel %vm8357_vm14, %v1245_v19, %v1104_v20  ;;  %v1113_v35 = vsel %vm8351_vm13, %v7940_v59, %v1112_v3  ;;  %v1116_v13 = vsel %vm8351_vm13, %v7947_v37, %v1115_v57 }
  0xd4   :  { %1364 = vst [vmem:[#allocation2 + $0xa8] sm:$0xff] %v8578_v10  ;;  %v707_v1 = vpop.permute.xlu0 %706  ;;  %6895 = vmatmul.mubr.msk.bf16.gmra.mrb[36].mxu0 %vm31_vm12, %v8578_v10 }
  0xd5   :  { %779 = vst.msk [vmem:[#allocation2 + $0xd0] sm:$0xff] %vm754_vm7, %v707_v1 }
  0xd6   :  { %v709_v11 = vpop.permute.xlu1 %708 }
  0xd7   :  { %780 = vst.msk [vmem:[#allocation2 + $0xd8] sm:$0xff] %vm754_vm7, %v709_v11 }
  0xd8   :  { %v1247_v23 = vpop.permute.xlu0 %1246 }
  0xd9   :  { %v8590_v14 = vsel %vm8357_vm14, %v1247_v23, %v1107_v33  ;;  %v13090_v23 = vld [vmem:[#allocation9_spill] sm:$0xff] }
  0xda   :  { %1367 = vst [vmem:[#allocation2 + $0xb0] sm:$0xff] %v8590_v14  ;;  %v1249_v60 = vpop.permute.xlu1 %1248  ;;  %6898 = vmatprep.mubr.msk.bf16.mxu0 %vm31_vm12, %v8590_v14 }
  0xdb   :  { %v8600_v40 = vsel %vm8357_vm14, %v1249_v60, %v1110_v44 }
  0xdc   :  { %1370 = vst [vmem:[#allocation2 + $0xb8] sm:$0xff] %v8600_v40  ;;  %v711_v54 = vpop.permute.xlu0 %710  ;;  %6899 = vmatmul.mubr.msk.bf16.gmra.mrb[40].mxu0 %vm31_vm12, %v8600_v40  ;;  %v1118_v2 = vld [vmem:[#allocation2 + $0xd0] sm:$0xff] }
  0xdd   :  { %781 = vst.msk [vmem:[#allocation2 + $0xe0] sm:$0xff] %vm754_vm7, %v711_v54  ;;  %v1119_v50 = vsel %vm8351_vm13, %v13087_v63, %v1118_v2 }
  0xde   :  { %v713_v7 = vpop.permute.xlu1 %712  ;;  %v1121_v37 = vld [vmem:[#allocation2 + $0xd8] sm:$0xff] }
  0xdf   :  { %782 = vst.msk [vmem:[#allocation2 + $0xe8] sm:$0xff] %vm754_vm7, %v713_v7  ;;  %v1122_v51 = vsel %vm8351_vm13, %v13088_v38, %v1121_v37  ;;  %v13091_v7 = vld [vmem:[#allocation10_spill] sm:$0xff]  ;;  %v2397_v38 = vsel %vm1573_vm6, %v8378_v9, 0  ;;  %v2260_v9 = vld [vmem:[#allocation2 + $0x20] sm:$0xff] }
  0xe0   :  { %v1251_v39 = vpop.permute.xlu0 %1250 }
  0xe1   :  { %v8612_v31 = vsel %vm8357_vm14, %v1251_v39, %v1113_v35 }
  0xe2   :  { %1373 = vst [vmem:[#allocation2 + $0xc0] sm:$0xff] %v8612_v31  ;;  %v1253_v34 = vpop.permute.xlu1 %1252  ;;  %6902 = vmatprep.mubr.msk.bf16.mxu0 %vm31_vm12, %v8612_v31 }
  0xe3   :  { %v8622_v18 = vsel %vm8357_vm14, %v1253_v34, %v1116_v13 }
  0xe4   :  { %1376 = vst [vmem:[#allocation2 + $0xc8] sm:$0xff] %v8622_v18  ;;  %v715_v59 = vpop.permute.xlu0 %714  ;;  %6903 = vmatmul.mubr.msk.bf16.gmra.mrb[44].mxu0 %vm31_vm12, %v8622_v18  ;;  %v1124_v62 = vld [vmem:[#allocation2 + $0xe0] sm:$0xff] }
  0xe5   :  { %783 = vst.msk [vmem:[#allocation2 + $0xf0] sm:$0xff] %vm754_vm7, %v715_v59  ;;  %v1125_v58 = vsel %vm8351_vm13, %v8017_v36, %v1124_v62 }
  0xe6   :  { %v717_v47 = vpop.permute.xlu1 %716  ;;  %v1127_v30 = vld [vmem:[#allocation2 + $0xe8] sm:$0xff] }
  0xe7   :  { %784 = vst.msk [vmem:[#allocation2 + $0xf8] sm:$0xff] %vm754_vm7, %v717_v47  ;;  %v1128_v11 = vsel %vm8351_vm13, %v13089_v4, %v1127_v30  ;;  %v13092_v47 = vld [vmem:[#allocation11_spill] sm:$0xff] }
  0xe8   :  { %v1255_v43 = vpop.permute.xlu0 %1254 }
  0xe9   :  { %v8634_v22 = vsel %vm8357_vm14, %v1255_v43, %v1119_v50  ;;  %v1402_v43 = vld [vmem:[#allocation2 + $0x8] sm:$0xff] }
  0xea   :  { %1379 = vst [vmem:[#allocation2 + $0xd0] sm:$0xff] %v8634_v22  ;;  %v1257_v15 = vpop.permute.xlu1 %1256  ;;  %6906 = vmatprep.mubr.msk.bf16.mxu0 %vm31_vm12, %v8634_v22 }
  0xeb   :  { %v8644_v45 = vsel %vm8357_vm14, %v1257_v15, %v1122_v51  ;;  %v1403_v51 = vld [vmem:[#allocation2 + $0x10] sm:$0xff]  ;;  %v1404_v15 = vld [vmem:[#allocation2 + $0x18] sm:$0xff] }
  0xec   :  { %1382 = vst [vmem:[#allocation2 + $0xd8] sm:$0xff] %v8644_v45  ;;  %v719_v24 = vpop.permute.xlu0 %718  ;;  %6907 = vmatmul.mubr.msk.bf16.gmra.mrb[48].mxu0 %vm31_vm12, %v8644_v45  ;;  %v1130_v1 = vld [vmem:[#allocation2 + $0xf0] sm:$0xff] }
  0xed   :  { %785 = vst.msk [vmem:[#allocation2 + $0x100] sm:$0xff] %vm754_vm7, %v719_v24  ;;  %v1131_v44 = vsel %vm8351_vm13, %v13090_v23, %v1130_v1 }
  0xee   :  { %v721_v32 = vpop.permute.xlu1 %720  ;;  %v1133_v36 = vld [vmem:[#allocation2 + $0xf8] sm:$0xff] }
  0xef   :  { %786 = vst.msk [vmem:[#allocation2 + $0x108] sm:$0xff] %vm754_vm7, %v721_v32  ;;  %v1134_v57 = vsel %vm8351_vm13, %v13091_v7, %v1133_v36 }
  0xf0   :  { %v1259_v20 = vpop.permute.xlu0 %1258 }
  0xf1   :  { %v8656_v19 = vsel %vm8357_vm14, %v1259_v20, %v1125_v58 }
  0xf2   :  { %1385 = vst [vmem:[#allocation2 + $0xe0] sm:$0xff] %v8656_v19  ;;  %v1261_v27 = vpop.permute.xlu1 %1260  ;;  %6910 = vmatprep.mubr.msk.bf16.mxu0 %vm31_vm12, %v8656_v19 }
  0xf3   :  { %v8666_v33 = vsel %vm8357_vm14, %v1261_v27, %v1128_v11 }
  0xf4   :  { %1388 = vst [vmem:[#allocation2 + $0xe8] sm:$0xff] %v8666_v33  ;;  %v1263_v60 = vpop.permute.xlu0 %1262  ;;  %6911 = vmatmul.mubr.msk.bf16.gmra.mrb[52].mxu0 %vm31_vm12, %v8666_v33  ;;  %v1136_v3 = vld [vmem:[#allocation2 + $0x100] sm:$0xff] }
  0xf5   :  { %v8676_v54 = vsel %vm8357_vm14, %v1263_v60, %v1131_v44  ;;  %v1137_v34 = vsel %vm8351_vm13, %v8102_v48, %v1136_v3  ;;  %v1401_v48 = vld [vmem:[#allocation2] sm:$0xff] }
  0xf6   :  { %1391 = vst [vmem:[#allocation2 + $0xf0] sm:$0xff] %v8676_v54  ;;  %v1265_v35 = vpop.permute.xlu1 %1264  ;;  %6914 = vmatprep.mubr.msk.bf16.mxu0 %vm31_vm12, %v8676_v54  ;;  %v1139_v13 = vld [vmem:[#allocation2 + $0x108] sm:$0xff] }
  0xf7   :  { %v8686_v39 = vsel %vm8357_vm14, %v1265_v35, %v1134_v57  ;;  %v1140_v37 = vsel %vm8351_vm13, %v13092_v47, %v1139_v13 }
  0xf8   :  { %1394 = vst [vmem:[#allocation2 + $0xf8] sm:$0xff] %v8686_v39  ;;  %v1267_v59 = vpop.permute.xlu0 %1266 }
  0xf9   :  { %v8694_v2 = vsel %vm8357_vm14, %v1267_v59, %v1137_v34 }
  0xfa   :  { %1397 = vst [vmem:[#allocation2 + $0x100] sm:$0xff] %v8694_v2  ;;  %v1269_v63 = vpop.permute.xlu1 %1268 }
  0xfb   :  { %v8702_v50 = vsel %vm8357_vm14, %v1269_v63, %v1140_v37 }
  0xfc   :  { %1400 = vst [vmem:[#allocation2 + $0x108] sm:$0xff] %v8702_v50  ;;  %6915 = vmatmul.mubr.msk.bf16.gmra.mrb[56].mxu0 %vm31_vm12, %v8686_v39 }
  0xfd   :  { %6918 = vmatprep.mubr.msk.bf16.mxu0 %vm31_vm12, %v8694_v2 }
 0x104   :  { %6919 = vmatmul.mubr.msk.bf16.gmra.mrb[60].mxu0 %vm31_vm12, %v8702_v50 }
 0x105   :  { %6924 = vmatprep.mubr.msk.bf16.mxu0 %vm31_vm12, %v1401_v48 }
 0x10c   :  { %6925 = vmatmul.mubr.msk.bf16.vlgmr.msra.gmra.mrb[0].mxu0 %vm31_vm12, %v1402_v43 }
 0x10d   :  { %6989 = vmatpush3.bf16.msra.mxu0 %v2397_v38  ;;  %6928 = vmatprep.mubr.msk.bf16.mxu0 %vm31_vm12, %v1403_v51 }
 0x114   :  { %6929 = vmatmul.mubr.msk.bf16.gmra.mrb[4].mxu0 %vm31_vm12, %v1404_v15 }
 0x115   :  { %6932 = vmatprep.mubr.msk.bf16.mxu0 %vm31_vm12, %v8392_v25  ;;  %v2261_v25 = vld [vmem:[#allocation2 + $0x28] sm:$0xff] }
 0x11c   :  { %6933 = vmatmul.mubr.msk.bf16.gmra.mrb[8].mxu0 %vm31_vm12, %v8402_v21  ;;  %v2290_v21 = vld [vmem:[#allocation2 + $0x110] sm:$0xff] }
 0x11d   :  { %6936 = vmatprep.mubr.msk.bf16.mxu0 %vm31_vm12, %v8414_v42 }
 0x124   :  { %6937 = vmatmul.mubr.msk.bf16.gmra.mrb[12].mxu0 %vm31_vm12, %v8424_v8 }
 0x125   :  { %6940 = vmatprep.mubr.msk.bf16.mxu0 %vm31_vm12, %v8436_v46 }
 0x12c   :  { %6941 = vmatmul.mubr.msk.bf16.gmra.mrb[16].mxu0 %vm31_vm12, %v8446_v49 }
 0x12d   :  { %6944 = vmatprep.mubr.msk.bf16.mxu0 %vm31_vm12, %v8458_v55 }
 0x134   :  { %6945 = vmatmul.mubr.msk.bf16.gmra.mrb[20].mxu0 %vm31_vm12, %v8468_v53 }
 0x135   :  { %6948 = vmatprep.mubr.msk.bf16.mxu0 %vm31_vm12, %v8480_v5 }
 0x13c   :  { %6949 = vmatmul.mubr.msk.bf16.gmra.mrb[24].mxu0 %vm31_vm12, %v8490_v29 }
 0x13d   :  { %6952 = vmatprep.mubr.msk.bf16.mxu0 %vm31_vm12, %v8502_v28 }
 0x144   :  { %6953 = vmatmul.mubr.msk.bf16.gmra.mrb[28].mxu0 %vm31_vm12, %v8512_v56 }
 0x145   :  { %6956 = vmatprep.mubr.msk.bf16.mxu0 %vm31_vm12, %v8524_v41 }
 0x14c   :  { %6957 = vmatmul.mubr.msk.bf16.gmra.mrb[32].mxu0 %vm31_vm12, %v8534_v61 }
 0x14d   :  { %6960 = vmatprep.mubr.msk.bf16.mxu0 %vm31_vm12, %v8546_v52 }
 0x154   :  { %6961 = vmatmul.mubr.msk.bf16.gmra.mrb[36].mxu0 %vm31_vm12, %v8556_v17 }
 0x155   :  { %6964 = vmatprep.mubr.msk.bf16.mxu0 %vm31_vm12, %v8568_v0 }
 0x15c   :  { %6965 = vmatmul.mubr.msk.bf16.gmra.mrb[40].mxu0 %vm31_vm12, %v8578_v10 }
 0x15d   :  { %6968 = vmatprep.mubr.msk.bf16.mxu0 %vm31_vm12, %v8590_v14 }
 0x164   :  { %6969 = vmatmul.mubr.msk.bf16.gmra.mrb[44].mxu0 %vm31_vm12, %v8600_v40 }
 0x165   :  { %6972 = vmatprep.mubr.msk.bf16.mxu0 %vm31_vm12, %v8612_v31 }
 0x16c   :  { %6973 = vmatmul.mubr.msk.bf16.gmra.mrb[48].mxu0 %vm31_vm12, %v8622_v18 }
 0x16d   :  { %6976 = vmatprep.mubr.msk.bf16.mxu0 %vm31_vm12, %v8634_v22 }
 0x174   :  { %6977 = vmatmul.mubr.msk.bf16.gmra.mrb[52].mxu0 %vm31_vm12, %v8644_v45 }
 0x175   :  { %6980 = vmatprep.mubr.msk.bf16.mxu0 %vm31_vm12, %v8656_v19 }
 0x17c   :  { %6981 = vmatmul.mubr.msk.bf16.gmra.mrb[56].mxu0 %vm31_vm12, %v8666_v33 }
 0x17d   :  { %6984 = vmatprep.mubr.msk.bf16.mxu0 %vm31_vm12, %v8676_v54 }
 0x184   :  { %6985 = vmatmul.mubr.msk.bf16.gmra.mrb[60].mxu0 %vm31_vm12, %v8686_v39 }
 0x185   :  { %6990 = vmatprep.mubr.msk.bf16.mxu0 %vm31_vm12, %v2260_v9 }
 0x18c   :  { %6991 = vmatmul.mubr.msk.bf16.vlgmr.msra.gmra.mrb[0].mxu0 %vm31_vm12, %v2261_v25 }
 0x18d   :  { %6994 = vmatprep.mubr.msk.bf16.mxu0 %vm31_vm12, %v8414_v42  ;;  %v2291_v42 = vld [vmem:[#allocation2 + $0x118] sm:$0xff] }
 0x194   :  { %6995 = vmatmul.mubr.msk.bf16.gmra.mrb[4].mxu0 %vm31_vm12, %v8424_v8 }
 0x195   :  { %6998 = vmatprep.mubr.msk.bf16.mxu0 %vm31_vm12, %v8436_v46 }
 0x19c   :  { %6999 = vmatmul.mubr.msk.bf16.gmra.mrb[8].mxu0 %vm31_vm12, %v8446_v49 }
 0x19d   :  { %7002 = vmatprep.mubr.msk.bf16.mxu0 %vm31_vm12, %v8458_v55 }
 0x1a4   :  { %7003 = vmatmul.mubr.msk.bf16.gmra.mrb[12].mxu0 %vm31_vm12, %v8468_v53 }
 0x1a5   :  { %7006 = vmatprep.mubr.msk.bf16.mxu0 %vm31_vm12, %v8480_v5 }
 0x1ac   :  { %7007 = vmatmul.mubr.msk.bf16.gmra.mrb[16].mxu0 %vm31_vm12, %v8490_v29 }
 0x1ad   :  { %7010 = vmatprep.mubr.msk.bf16.mxu0 %vm31_vm12, %v8502_v28 }
 0x1b4   :  { %7011 = vmatmul.mubr.msk.bf16.gmra.mrb[20].mxu0 %vm31_vm12, %v8512_v56 }
 0x1b5   :  { %7014 = vmatprep.mubr.msk.bf16.mxu0 %vm31_vm12, %v8524_v41 }
 0x1bc   :  { %7015 = vmatmul.mubr.msk.bf16.gmra.mrb[24].mxu0 %vm31_vm12, %v8534_v61 }
 0x1bd   :  { %7018 = vmatprep.mubr.msk.bf16.mxu0 %vm31_vm12, %v8546_v52 }
 0x1c4   :  { %7019 = vmatmul.mubr.msk.bf16.gmra.mrb[28].mxu0 %vm31_vm12, %v8556_v17 }
 0x1c5   :  { %7022 = vmatprep.mubr.msk.bf16.mxu0 %vm31_vm12, %v8568_v0 }
 0x1cc   :  { %7023 = vmatmul.mubr.msk.bf16.gmra.mrb[32].mxu0 %vm31_vm12, %v8578_v10 }
 0x1cd   :  { %7026 = vmatprep.mubr.msk.bf16.mxu0 %vm31_vm12, %v8590_v14 }
 0x1d4   :  { %7027 = vmatmul.mubr.msk.bf16.gmra.mrb[36].mxu0 %vm31_vm12, %v8600_v40 }
 0x1d5   :  { %7030 = vmatprep.mubr.msk.bf16.mxu0 %vm31_vm12, %v8612_v31 }
 0x1dc   :  { %7031 = vmatmul.mubr.msk.bf16.gmra.mrb[40].mxu0 %vm31_vm12, %v8622_v18 }
 0x1dd   :  { %7034 = vmatprep.mubr.msk.bf16.mxu0 %vm31_vm12, %v8634_v22 }
 0x1e4   :  { %7035 = vmatmul.mubr.msk.bf16.gmra.mrb[44].mxu0 %vm31_vm12, %v8644_v45 }
 0x1e5   :  { %7038 = vmatprep.mubr.msk.bf16.mxu0 %vm31_vm12, %v8656_v19 }
 0x1ec   :  { %7039 = vmatmul.mubr.msk.bf16.gmra.mrb[48].mxu0 %vm31_vm12, %v8666_v33 }
 0x1ed   :  { %7042 = vmatprep.mubr.msk.bf16.mxu0 %vm31_vm12, %v8676_v54 }
 0x1f4   :  { %7043 = vmatmul.mubr.msk.bf16.gmra.mrb[52].mxu0 %vm31_vm12, %v8686_v39 }
 0x1f5   :  { %7046 = vmatprep.mubr.msk.bf16.mxu0 %vm31_vm12, %v8694_v2 }
 0x1fc   :  { %7047 = vmatmul.mubr.msk.bf16.gmra.mrb[56].mxu0 %vm31_vm12, %v8702_v50 }
 0x1fd   :  { %7050 = vmatprep.mubr.msk.bf16.mxu0 %vm31_vm12, %v2290_v21 }
 0x204   :  { %7051 = vmatmul.mubr.msk.bf16.gmra.mrb[60].mxu0 %vm31_vm12, %v2291_v42 }
 0x25f   :  { %v8833_v8 = vpop.f32.mrb[0].mxu0 }
 0x260   :  { %v8835_v46 = vpop.f32.mrb[1].mxu0  ;;  %v2891_v5 = vmul.f32 %v8833_v8, %v8833_v8  ;;  %v2758_v61 = vsel %vm1043_vm8, %v8833_v8, 0.0 }
 0x261   :  { %v2889_v49 = vmul.f32 %v8835_v46, %v8835_v46  ;;  %v8839_v55 = vpop.f32.mrb[2].mxu0  ;;  %v2755_v29 = vsel %vm1043_vm8, %v8835_v46, 0.0 }
 0x262   :  { %v8841_v53 = vpop.f32.mrb[3].mxu0  ;;  %v2892_v17 = vmul.f32 %v8839_v55, %v8839_v55  ;;  %v2956_v40 = vsel %vm1043_vm8, %v2891_v5, 0.0  ;;  %v2760_v31 = vsel %vm1043_vm8, %v8839_v55, 0.0 }
 0x263   :  { %v2756_v28 = vsel %vm1043_vm8, %v8841_v53, 0.0  ;;  %v2890_v56 = vmul.f32 %v8841_v53, %v8841_v53  ;;  %v2953_v52 = vsel %vm1043_vm8, %v2889_v49, 0.0 }
 0x264   :  { %v2757_v41 = vadd.f32 %v2756_v28, %v2755_v29  ;;  %v2958_v62 = vsel %vm1043_vm8, %v2892_v17, 0.0 }
 0x265   :  { %v2954_v0 = vsel %vm1043_vm8, %v2890_v56, 0.0 }
 0x266   :  { %v2759_v10 = vadd.f32 %v2758_v61, %v2757_v41  ;;  %v2955_v14 = vadd.f32 %v2954_v0, %v2953_v52 }
 0x267   :  { %v8860_v18 = vpop.f32.mrb[4].mxu0 }
 0x268   :  { %v2957_v22 = vadd.f32 %v2956_v40, %v2955_v14  ;;  %v8862_v45 = vpop.f32.mrb[5].mxu0  ;;  %v2761_v24 = vadd.f32 %v2760_v31, %v2759_v10  ;;  %v2895_v4 = vmul.f32 %v8860_v18, %v8860_v18  ;;  %v2766_v44 = vsel %vm1043_vm8, %v8860_v18, 0.0 }
 0x269   :  { %v2762_v32 = vsel %vm1043_vm8, %v8862_v45, 0.0  ;;  %v2893_v30 = vmul.f32 %v8862_v45, %v8862_v45  ;;  %v8869_v58 = vpop.f32.mrb[6].mxu0 }
 0x26a   :  { %v2763_v20 = vadd.f32 %v2762_v32, %v2761_v24  ;;  %v2959_v19 = vadd.f32 %v2958_v62, %v2957_v22  ;;  %v8871_v1 = vpop.f32.mrb[7].mxu0  ;;  %v2896_v60 = vmul.f32 %v8869_v58, %v8869_v58  ;;  %v2964_v57 = vsel %vm1043_vm8, %v2895_v4, 0.0 }
 0x26b   :  { %v2960_v11 = vsel %vm1043_vm8, %v2893_v30, 0.0  ;;  %v2764_v27 = vsel %vm1043_vm8, %v8871_v1, 0.0  ;;  %v2894_v33 = vmul.f32 %v8871_v1, %v8871_v1  ;;  %v2768_v35 = vsel %vm1043_vm8, %v8869_v58, 0.0 }
 0x26c   :  { %v2961_v36 = vadd.f32 %v2960_v11, %v2959_v19  ;;  %v2765_v23 = vadd.f32 %v2764_v27, %v2763_v20  ;;  %v2966_v2 = vsel %vm1043_vm8, %v2896_v60, 0.0 }
 0x26d   :  { %v2962_v54 = vsel %vm1043_vm8, %v2894_v33, 0.0 }
 0x26e   :  { %v2767_v3 = vadd.f32 %v2766_v44, %v2765_v23  ;;  %v2963_v7 = vadd.f32 %v2962_v54, %v2961_v36 }
 0x26f   :  { %v8888_v39 = vpop.f32.mrb[8].mxu0 }
 0x270   :  { %v2965_v13 = vadd.f32 %v2964_v57, %v2963_v7  ;;  %v8890_v34 = vpop.f32.mrb[9].mxu0  ;;  %v2769_v59 = vadd.f32 %v2768_v35, %v2767_v3  ;;  %v2899_v38 = vmul.f32 %v8888_v39, %v8888_v39  ;;  %v2774_v42 = vsel %vm1043_vm8, %v8888_v39, 0.0 }
 0x271   :  { %v2770_v47 = vsel %vm1043_vm8, %v8890_v34, 0.0  ;;  %v2897_v37 = vmul.f32 %v8890_v34, %v8890_v34  ;;  %v8897_v63 = vpop.f32.mrb[10].mxu0 }
 0x272   :  { %v2771_v50 = vadd.f32 %v2770_v47, %v2769_v59  ;;  %v2967_v48 = vadd.f32 %v2966_v2, %v2965_v13  ;;  %v8899_v43 = vpop.f32.mrb[11].mxu0  ;;  %v2900_v49 = vmul.f32 %v8897_v63, %v8897_v63  ;;  %v2972_v56 = vsel %vm1043_vm8, %v2899_v38, 0.0 }
 0x273   :  { %v2968_v51 = vsel %vm1043_vm8, %v2897_v37, 0.0  ;;  %v2772_v15 = vsel %vm1043_vm8, %v8899_v43, 0.0  ;;  %v2898_v9 = vmul.f32 %v8899_v43, %v8899_v43  ;;  %v2776_v41 = vsel %vm1043_vm8, %v8897_v63, 0.0 }
 0x274   :  { %v2969_v25 = vadd.f32 %v2968_v51, %v2967_v48  ;;  %v2773_v21 = vadd.f32 %v2772_v15, %v2771_v50  ;;  %v2974_v10 = vsel %vm1043_vm8, %v2900_v49, 0.0 }
 0x275   :  { %v2970_v5 = vsel %vm1043_vm8, %v2898_v9, 0.0 }
 0x276   :  { %v2775_v29 = vadd.f32 %v2774_v42, %v2773_v21  ;;  %v2971_v28 = vadd.f32 %v2970_v5, %v2969_v25 }
 0x277   :  { %v8916_v61 = vpop.f32.mrb[12].mxu0 }
 0x278   :  { %v2973_v52 = vadd.f32 %v2972_v56, %v2971_v28  ;;  %v8918_v17 = vpop.f32.mrb[13].mxu0  ;;  %v2777_v0 = vadd.f32 %v2776_v41, %v2775_v29  ;;  %v2903_v32 = vmul.f32 %v8916_v61, %v8916_v61  ;;  %v2782_v27 = vsel %vm1043_vm8, %v8916_v61, 0.0 }
 0x279   :  { %v2778_v14 = vsel %vm1043_vm8, %v8918_v17, 0.0  ;;  %v2901_v40 = vmul.f32 %v8918_v17, %v8918_v17  ;;  %v8925_v31 = vpop.f32.mrb[14].mxu0 }
 0x27a   :  { %v2779_v22 = vadd.f32 %v2778_v14, %v2777_v0  ;;  %v2975_v24 = vadd.f32 %v2974_v10, %v2973_v52  ;;  %v8927_v62 = vpop.f32.mrb[15].mxu0  ;;  %v2904_v33 = vmul.f32 %v8925_v31, %v8925_v31  ;;  %v2980_v60 = vsel %vm1043_vm8, %v2903_v32, 0.0 }
 0x27b   :  { %v2976_v30 = vsel %vm1043_vm8, %v2901_v40, 0.0  ;;  %v2780_v20 = vsel %vm1043_vm8, %v8927_v62, 0.0  ;;  %v2902_v19 = vmul.f32 %v8927_v62, %v8927_v62  ;;  %v2784_v54 = vsel %vm1043_vm8, %v8925_v31, 0.0 }
 0x27c   :  { %v2977_v4 = vadd.f32 %v2976_v30, %v2975_v24  ;;  %v2781_v11 = vadd.f32 %v2780_v20, %v2779_v22  ;;  %v2982_v13 = vsel %vm1043_vm8, %v2904_v33, 0.0 }
 0x27d   :  { %v2978_v36 = vsel %vm1043_vm8, %v2902_v19, 0.0 }
 0x27e   :  { %v2783_v23 = vadd.f32 %v2782_v27, %v2781_v11  ;;  %v2979_v44 = vadd.f32 %v2978_v36, %v2977_v4 }
 0x27f   :  { %v8944_v3 = vpop.f32.mrb[16].mxu0 }
 0x280   :  { %v2981_v7 = vadd.f32 %v2980_v60, %v2979_v44  ;;  %v8946_v57 = vpop.f32.mrb[17].mxu0  ;;  %v2785_v35 = vadd.f32 %v2784_v54, %v2783_v23  ;;  %v2907_v38 = vmul.f32 %v8944_v3, %v8944_v3  ;;  %v2790_v42 = vsel %vm1043_vm8, %v8944_v3, 0.0 }
 0x281   :  { %v2786_v59 = vsel %vm1043_vm8, %v8946_v57, 0.0  ;;  %v2905_v2 = vmul.f32 %v8946_v57, %v8946_v57  ;;  %v8953_v47 = vpop.f32.mrb[18].mxu0 }
 0x282   :  { %v2787_v37 = vadd.f32 %v2786_v59, %v2785_v35  ;;  %v2983_v50 = vadd.f32 %v2982_v13, %v2981_v7  ;;  %v8955_v48 = vpop.f32.mrb[19].mxu0  ;;  %v2908_v49 = vmul.f32 %v8953_v47, %v8953_v47  ;;  %v2988_v56 = vsel %vm1043_vm8, %v2907_v38, 0.0 }
 0x283   :  { %v2984_v51 = vsel %vm1043_vm8, %v2905_v2, 0.0  ;;  %v2788_v15 = vsel %vm1043_vm8, %v8955_v48, 0.0  ;;  %v2906_v9 = vmul.f32 %v8955_v48, %v8955_v48  ;;  %v2792_v41 = vsel %vm1043_vm8, %v8953_v47, 0.0 }
 0x284   :  { %v2985_v25 = vadd.f32 %v2984_v51, %v2983_v50  ;;  %v2789_v21 = vadd.f32 %v2788_v15, %v2787_v37  ;;  %v2990_v40 = vsel %vm1043_vm8, %v2908_v49, 0.0 }
 0x285   :  { %v2986_v5 = vsel %vm1043_vm8, %v2906_v9, 0.0 }
 0x286   :  { %v2791_v29 = vadd.f32 %v2790_v42, %v2789_v21  ;;  %v2987_v28 = vadd.f32 %v2986_v5, %v2985_v25 }
 0x287   :  { %v8972_v52 = vpop.f32.mrb[20].mxu0 }
 0x288   :  { %v2989_v0 = vadd.f32 %v2988_v56, %v2987_v28  ;;  %v8974_v10 = vpop.f32.mrb[21].mxu0  ;;  %v2793_v14 = vadd.f32 %v2792_v41, %v2791_v29  ;;  %v2911_v4 = vmul.f32 %v8972_v52, %v8972_v52  ;;  %v2798_v44 = vsel %vm1043_vm8, %v8972_v52, 0.0 }
 0x289   :  { %v2794_v22 = vsel %vm1043_vm8, %v8974_v10, 0.0  ;;  %v2909_v24 = vmul.f32 %v8974_v10, %v8974_v10  ;;  %v8981_v32 = vpop.f32.mrb[22].mxu0 }
 0x28a   :  { %v2795_v30 = vadd.f32 %v2794_v22, %v2793_v14  ;;  %v2991_v20 = vadd.f32 %v2990_v40, %v2989_v0  ;;  %v8983_v19 = vpop.f32.mrb[23].mxu0  ;;  %v2912_v60 = vmul.f32 %v8981_v32, %v8981_v32  ;;  %v2996_v13 = vsel %vm1043_vm8, %v2911_v4, 0.0 }
 0x28b   :  { %v2992_v11 = vsel %vm1043_vm8, %v2909_v24, 0.0  ;;  %v2796_v27 = vsel %vm1043_vm8, %v8983_v19, 0.0  ;;  %v2910_v33 = vmul.f32 %v8983_v19, %v8983_v19  ;;  %v2800_v59 = vsel %vm1043_vm8, %v8981_v32, 0.0 }
 0x28c   :  { %v2993_v36 = vadd.f32 %v2992_v11, %v2991_v20  ;;  %v2797_v23 = vadd.f32 %v2796_v27, %v2795_v30  ;;  %v2998_v51 = vsel %vm1043_vm8, %v2912_v60, 0.0 }
 0x28d   :  { %v2994_v54 = vsel %vm1043_vm8, %v2910_v33, 0.0 }
 0x28e   :  { %v2799_v7 = vadd.f32 %v2798_v44, %v2797_v23  ;;  %v2995_v35 = vadd.f32 %v2994_v54, %v2993_v36 }
 0x28f   :  { %v9000_v2 = vpop.f32.mrb[24].mxu0 }
 0x290   :  { %v2997_v37 = vadd.f32 %v2996_v13, %v2995_v35  ;;  %v9002_v50 = vpop.f32.mrb[25].mxu0  ;;  %v2801_v38 = vadd.f32 %v2800_v59, %v2799_v7  ;;  %v2915_v5 = vmul.f32 %v9000_v2, %v9000_v2  ;;  %v2806_v14 = vsel %vm1043_vm8, %v9000_v2, 0.0 }
 0x291   :  { %v2802_v15 = vsel %vm1043_vm8, %v9002_v50, 0.0  ;;  %v2913_v9 = vmul.f32 %v9002_v50, %v9002_v50  ;;  %v9009_v25 = vpop.f32.mrb[26].mxu0 }
 0x292   :  { %v2803_v21 = vadd.f32 %v2802_v15, %v2801_v38  ;;  %v2999_v42 = vadd.f32 %v2998_v51, %v2997_v37  ;;  %v9011_v49 = vpop.f32.mrb[27].mxu0  ;;  %v2916_v40 = vmul.f32 %v9009_v25, %v9009_v25  ;;  %v3004_v20 = vsel %vm1043_vm8, %v2915_v5, 0.0 }
 0x293   :  { %v3000_v29 = vsel %vm1043_vm8, %v2913_v9, 0.0  ;;  %v2804_v28 = vsel %vm1043_vm8, %v9011_v49, 0.0  ;;  %v2914_v56 = vmul.f32 %v9011_v49, %v9011_v49  ;;  %v2808_v4 = vsel %vm1043_vm8, %v9009_v25, 0.0 }
 0x294   :  { %v3001_v41 = vadd.f32 %v3000_v29, %v2999_v42  ;;  %v2805_v0 = vadd.f32 %v2804_v28, %v2803_v21  ;;  %v3006_v23 = vsel %vm1043_vm8, %v2916_v40, 0.0 }
 0x295   :  { %v3002_v22 = vsel %vm1043_vm8, %v2914_v56, 0.0 }
 0x296   :  { %v2807_v24 = vadd.f32 %v2806_v14, %v2805_v0  ;;  %v3003_v30 = vadd.f32 %v3002_v22, %v3001_v41 }
 0x297   :  { %v9028_v11 = vpop.f32.mrb[28].mxu0 }
 0x298   :  { %v3005_v27 = vadd.f32 %v3004_v20, %v3003_v30  ;;  %v9030_v33 = vpop.f32.mrb[29].mxu0  ;;  %v2809_v36 = vadd.f32 %v2808_v4, %v2807_v24  ;;  %v2919_v59 = vmul.f32 %v9028_v11, %v9028_v11  ;;  %v2814_v21 = vsel %vm1043_vm8, %v9028_v11, 0.0 }
 0x299   :  { %v2810_v44 = vsel %vm1043_vm8, %v9030_v33, 0.0  ;;  %v2917_v60 = vmul.f32 %v9030_v33, %v9030_v33  ;;  %v9037_v54 = vpop.f32.mrb[30].mxu0 }
 0x29a   :  { %v2811_v7 = vadd.f32 %v2810_v44, %v2809_v36  ;;  %v3007_v35 = vadd.f32 %v3006_v23, %v3005_v27  ;;  %v9039_v13 = vpop.f32.mrb[31].mxu0  ;;  %v2920_v42 = vmul.f32 %v9037_v54, %v9037_v54  ;;  %v3012_v56 = vsel %vm1043_vm8, %v2919_v59, 0.0 }
 0x29b   :  { %v3008_v37 = vsel %vm1043_vm8, %v2917_v60, 0.0  ;;  %v2812_v38 = vsel %vm1043_vm8, %v9039_v13, 0.0  ;;  %v2918_v51 = vmul.f32 %v9039_v13, %v9039_v13  ;;  %v2816_v41 = vsel %vm1043_vm8, %v9037_v54, 0.0 }
 0x29c   :  { %v3009_v15 = vadd.f32 %v3008_v37, %v3007_v35  ;;  %v2813_v9 = vadd.f32 %v2812_v38, %v2811_v7  ;;  %v3014_v24 = vsel %vm1043_vm8, %v2920_v42, 0.0 }
 0x29d   :  { %v3010_v5 = vsel %vm1043_vm8, %v2918_v51, 0.0 }
 0x29e   :  { %v2815_v29 = vadd.f32 %v2814_v21, %v2813_v9  ;;  %v3011_v28 = vadd.f32 %v3010_v5, %v3009_v15 }
 0x29f   :  { %v9056_v0 = vpop.f32.mrb[32].mxu0 }
 0x2a0   :  { %v3013_v14 = vadd.f32 %v3012_v56, %v3011_v28  ;;  %v9058_v40 = vpop.f32.mrb[33].mxu0  ;;  %v2817_v22 = vadd.f32 %v2816_v41, %v2815_v29  ;;  %v2923_v44 = vmul.f32 %v9056_v0, %v9056_v0  ;;  %v2822_v38 = vsel %vm1043_vm8, %v9056_v0, 0.0 }
 0x2a1   :  { %v2818_v30 = vsel %vm1043_vm8, %v9058_v40, 0.0  ;;  %v2921_v20 = vmul.f32 %v9058_v40, %v9058_v40  ;;  %v9065_v4 = vpop.f32.mrb[34].mxu0 }
 0x2a2   :  { %v2819_v27 = vadd.f32 %v2818_v30, %v2817_v22  ;;  %v3015_v36 = vadd.f32 %v3014_v24, %v3013_v14  ;;  %v9067_v23 = vpop.f32.mrb[35].mxu0  ;;  %v2924_v51 = vmul.f32 %v9065_v4, %v9065_v4  ;;  %v3020_v42 = vsel %vm1043_vm8, %v2923_v44, 0.0 }
 0x2a3   :  { %v3016_v60 = vsel %vm1043_vm8, %v2921_v20, 0.0  ;;  %v2820_v7 = vsel %vm1043_vm8, %v9067_v23, 0.0  ;;  %v2922_v35 = vmul.f32 %v9067_v23, %v9067_v23  ;;  %v2824_v5 = vsel %vm1043_vm8, %v9065_v4, 0.0 }
 0x2a4   :  { %v3017_v59 = vadd.f32 %v3016_v60, %v3015_v36  ;;  %v2821_v37 = vadd.f32 %v2820_v7, %v2819_v27  ;;  %v3022_v14 = vsel %vm1043_vm8, %v2924_v51, 0.0 }
 0x2a5   :  { %v3018_v15 = vsel %vm1043_vm8, %v2922_v35, 0.0 }
 0x2a6   :  { %v2823_v9 = vadd.f32 %v2822_v38, %v2821_v37  ;;  %v3019_v21 = vadd.f32 %v3018_v15, %v3017_v59 }
 0x2a7   :  { %v9084_v29 = vpop.f32.mrb[36].mxu0 }
 0x2a8   :  { %13093 = vst [vmem:[#allocation5_spill] sm:$0xff] %v9084_v29  ;;  %v3021_v28 = vadd.f32 %v3020_v42, %v3019_v21  ;;  %v9086_v56 = vpop.f32.mrb[37].mxu0  ;;  %v2825_v41 = vadd.f32 %v2824_v5, %v2823_v9  ;;  %v2927_v44 = vmul.f32 %v9084_v29, %v9084_v29  ;;  %v2830_v38 = vsel %vm1043_vm8, %v9084_v29, 0.0 }
 0x2a9   :  { %v2826_v22 = vsel %vm1043_vm8, %v9086_v56, 0.0  ;;  %v2925_v24 = vmul.f32 %v9086_v56, %v9086_v56  ;;  %v9093_v30 = vpop.f32.mrb[38].mxu0 }
 0x2aa   :  { %13094 = vst [vmem:[#allocation7_spill] sm:$0xff] %v9093_v30  ;;  %v2827_v20 = vadd.f32 %v2826_v22, %v2825_v41  ;;  %v3023_v27 = vadd.f32 %v3022_v14, %v3021_v28  ;;  %v9095_v36 = vpop.f32.mrb[39].mxu0  ;;  %v2928_v51 = vmul.f32 %v9093_v30, %v9093_v30  ;;  %v3028_v42 = vsel %vm1043_vm8, %v2927_v44, 0.0 }
 0x2ab   :  { %v3024_v60 = vsel %vm1043_vm8, %v2925_v24, 0.0  ;;  %v2828_v7 = vsel %vm1043_vm8, %v9095_v36, 0.0  ;;  %v2926_v35 = vmul.f32 %v9095_v36, %v9095_v36  ;;  %v2832_v5 = vsel %vm1043_vm8, %v9093_v30, 0.0 }
 0x2ac   :  { %v3025_v59 = vadd.f32 %v3024_v60, %v3023_v27  ;;  %v2829_v37 = vadd.f32 %v2828_v7, %v2827_v20  ;;  %v3030_v24 = vsel %vm1043_vm8, %v2928_v51, 0.0 }
 0x2ad   :  { %v3026_v15 = vsel %vm1043_vm8, %v2926_v35, 0.0 }
 0x2ae   :  { %v2831_v9 = vadd.f32 %v2830_v38, %v2829_v37  ;;  %v3027_v21 = vadd.f32 %v3026_v15, %v3025_v59 }
 0x2af   :  { %v9112_v28 = vpop.f32.mrb[40].mxu0 }
 0x2b0   :  { %13095 = vst [vmem:[#allocation8_spill] sm:$0xff] %v9112_v28  ;;  %v3029_v41 = vadd.f32 %v3028_v42, %v3027_v21  ;;  %v9114_v14 = vpop.f32.mrb[41].mxu0  ;;  %v2833_v22 = vadd.f32 %v2832_v5, %v2831_v9  ;;  %v2931_v59 = vmul.f32 %v9112_v28, %v9112_v28  ;;  %v2838_v21 = vsel %vm1043_vm8, %v9112_v28, 0.0 }
 0x2b1   :  { %13096 = vst [vmem:[#allocation9_spill] sm:$0xff] %v9114_v14  ;;  %v2834_v20 = vsel %vm1043_vm8, %v9114_v14, 0.0  ;;  %v2929_v27 = vmul.f32 %v9114_v14, %v9114_v14  ;;  %v9121_v60 = vpop.f32.mrb[42].mxu0 }
 0x2b2   :  { %13097 = vst [vmem:[#allocation10_spill] sm:$0xff] %v9121_v60  ;;  %v2835_v44 = vadd.f32 %v2834_v20, %v2833_v22  ;;  %v3031_v7 = vadd.f32 %v3030_v24, %v3029_v41  ;;  %v9123_v35 = vpop.f32.mrb[43].mxu0  ;;  %v2932_v42 = vmul.f32 %v9121_v60, %v9121_v60  ;;  %v3036_v24 = vsel %vm1043_vm8, %v2931_v59, 0.0 }
 0x2b3   :  { %13098 = vst [vmem:[#allocation11_spill] sm:$0xff] %v9123_v35  ;;  %v3032_v37 = vsel %vm1043_vm8, %v2929_v27, 0.0  ;;  %v2836_v38 = vsel %vm1043_vm8, %v9123_v35, 0.0  ;;  %v2930_v51 = vmul.f32 %v9123_v35, %v9123_v35  ;;  %v2840_v20 = vsel %vm1043_vm8, %v9121_v60, 0.0 }
 0x2b4   :  { %v3033_v15 = vadd.f32 %v3032_v37, %v3031_v7  ;;  %v2837_v9 = vadd.f32 %v2836_v38, %v2835_v44  ;;  %v3038_v37 = vsel %vm1043_vm8, %v2932_v42, 0.0 }
 0x2b5   :  { %v3034_v5 = vsel %vm1043_vm8, %v2930_v51, 0.0 }
 0x2b6   :  { %v2839_v41 = vadd.f32 %v2838_v21, %v2837_v9  ;;  %v3035_v22 = vadd.f32 %v3034_v5, %v3033_v15 }
 0x2b7   :  { %v9140_v27 = vpop.f32.mrb[44].mxu0 }
 0x2b8   :  { %13099 = vst [vmem:[#allocation14_spill] sm:$0xff] %v9140_v27  ;;  %v3037_v6 = vadd.f32 %v3036_v24, %v3035_v22  ;;  %v9142_v7 = vpop.f32.mrb[45].mxu0  ;;  %v2841_v44 = vadd.f32 %v2840_v20, %v2839_v41  ;;  %v2935_v5 = vmul.f32 %v9140_v27, %v9140_v27  ;;  %v2846_v16 = vsel %vm1043_vm8, %v9140_v27, 0.0 }
 0x2b9   :  { %13100 = vst [vmem:[#allocation15_spill] sm:$0xff] %v9142_v7  ;;  %v2842_v38 = vsel %vm1043_vm8, %v9142_v7, 0.0  ;;  %v2933_v51 = vmul.f32 %v9142_v7, %v9142_v7  ;;  %v9149_v15 = vpop.f32.mrb[46].mxu0 }
 0x2ba   :  { %13101 = vst [vmem:[#allocation16_spill] sm:$0xff] %v9149_v15  ;;  %v2843_v59 = vadd.f32 %v2842_v38, %v2841_v44  ;;  %v3039_v9 = vadd.f32 %v3038_v37, %v3037_v6  ;;  %v9151_v21 = vpop.f32.mrb[47].mxu0  ;;  %v2936_v6 = vmul.f32 %v9149_v15, %v9149_v15  ;;  %v2848_v12 = vsel %vm1043_vm8, %v9149_v15, 0.0 }
 0x2bb   :  { %13102 = vst [vmem:[#allocation17_spill] sm:$0xff] %v9151_v21  ;;  %v3040_v22 = vsel %vm1043_vm8, %v2933_v51, 0.0  ;;  %v2844_v42 = vsel %vm1043_vm8, %v9151_v21, 0.0  ;;  %v2934_v41 = vmul.f32 %v9151_v21, %v9151_v21  ;;  %v3044_v51 = vsel %vm1043_vm8, %v2935_v5, 0.0 }
 0x2bc   :  { %v3041_v24 = vadd.f32 %v3040_v22, %v3039_v9  ;;  %v2845_v20 = vadd.f32 %v2844_v42, %v2843_v59  ;;  %v3046_v22 = vsel %vm1043_vm8, %v2936_v6, 0.0 }
 0x2bd   :  { %v3042_v44 = vsel %vm1043_vm8, %v2934_v41, 0.0 }
 0x2be   :  { %v2847_v37 = vadd.f32 %v2846_v16, %v2845_v20  ;;  %v3043_v38 = vadd.f32 %v3042_v44, %v3041_v24 }
 0x2bf   :  { %v9168_v26 = vpop.f32.mrb[48].mxu0 }
 0x2c0   :  { %13103 = vst [vmem:[#allocation18_spill] sm:$0xff] %v9168_v26  ;;  %v3045_v21 = vadd.f32 %v3044_v51, %v3043_v38  ;;  %v9170_v9 = vpop.f32.mrb[49].mxu0  ;;  %v2849_v59 = vadd.f32 %v2848_v12, %v2847_v37  ;;  %v2939_v44 = vmul.f32 %v9168_v26, %v9168_v26 }
 0x2c1   :  { %13104 = vst [vmem:[#allocation19_spill] sm:$0xff] %v9170_v9  ;;  %v2850_v42 = vsel %vm1043_vm8, %v9170_v9, 0.0  ;;  %v2937_v16 = vmul.f32 %v9170_v9, %v9170_v9  ;;  %v9177_v41 = vpop.f32.mrb[50].mxu0  ;;  %v2854_v9 = vsel %vm1043_vm8, %v9168_v26, 0.0 }
 0x2c2   :  { %13105 = vst [vmem:[#allocation20_spill] sm:$0xff] %v9177_v41  ;;  %v2851_v5 = vadd.f32 %v2850_v42, %v2849_v59  ;;  %v3047_v24 = vadd.f32 %v3046_v22, %v3045_v21  ;;  %v9179_v20 = vpop.f32.mrb[51].mxu0  ;;  %v2940_v21 = vmul.f32 %v9177_v41, %v9177_v41  ;;  %v2856_v15 = vsel %vm1043_vm8, %v9177_v41, 0.0 }
 0x2c3   :  { %13106 = vst [vmem:[#allocation21_spill] sm:$0xff] %v9179_v20  ;;  %v3048_v38 = vsel %vm1043_vm8, %v2937_v16, 0.0  ;;  %v2852_v12 = vsel %vm1043_vm8, %v9179_v20, 0.0  ;;  %v2938_v6 = vmul.f32 %v9179_v20, %v9179_v20  ;;  %v3052_v16 = vsel %vm1043_vm8, %v2939_v44, 0.0 }
 0x2c4   :  { %v3049_v37 = vadd.f32 %v3048_v38, %v3047_v24  ;;  %v2853_v51 = vadd.f32 %v2852_v12, %v2851_v5  ;;  %v3054_v38 = vsel %vm1043_vm8, %v2940_v21, 0.0 }
 0x2c5   :  { %v3050_v59 = vsel %vm1043_vm8, %v2938_v6, 0.0 }
 0x2c6   :  { %v2855_v22 = vadd.f32 %v2854_v9, %v2853_v51  ;;  %v3051_v42 = vadd.f32 %v3050_v59, %v3049_v37 }
 0x2c7   :  { %v9196_v27 = vpop.f32.mrb[52].mxu0 }
 0x2c8   :  { %13107 = vst [vmem:[#allocation22_spill] sm:$0xff] %v9196_v27  ;;  %v3053_v20 = vadd.f32 %v3052_v16, %v3051_v42  ;;  %v9198_v24 = vpop.f32.mrb[53].mxu0  ;;  %v2857_v5 = vadd.f32 %v2856_v15, %v2855_v22  ;;  %v2943_v59 = vmul.f32 %v9196_v27, %v9196_v27 }
 0x2c9   :  { %13108 = vst [vmem:[#allocation23_spill] sm:$0xff] %v9198_v24  ;;  %v2858_v12 = vsel %vm1043_vm8, %v9198_v24, 0.0  ;;  %v2941_v9 = vmul.f32 %v9198_v24, %v9198_v24  ;;  %v9205_v6 = vpop.f32.mrb[54].mxu0  ;;  %v2862_v24 = vsel %vm1043_vm8, %v9196_v27, 0.0 }
 0x2ca   :  { %13109 = vst [vmem:[#allocation24_spill] sm:$0xff] %v9205_v6  ;;  %v2859_v44 = vadd.f32 %v2858_v12, %v2857_v5  ;;  %v3055_v37 = vadd.f32 %v3054_v38, %v3053_v20  ;;  %v9207_v51 = vpop.f32.mrb[55].mxu0  ;;  %v2944_v20 = vmul.f32 %v9205_v6, %v9205_v6  ;;  %v2864_v41 = vsel %vm1043_vm8, %v9205_v6, 0.0 }
 0x2cb   :  { %13110 = vst [vmem:[#allocation25_spill] sm:$0xff] %v9207_v51  ;;  %v3056_v42 = vsel %vm1043_vm8, %v2941_v9, 0.0  ;;  %v2860_v15 = vsel %vm1043_vm8, %v9207_v51, 0.0  ;;  %v2942_v21 = vmul.f32 %v9207_v51, %v9207_v51  ;;  %v3060_v9 = vsel %vm1043_vm8, %v2943_v59, 0.0 }
 0x2cc   :  { %v3057_v22 = vadd.f32 %v3056_v42, %v3055_v37  ;;  %v2861_v16 = vadd.f32 %v2860_v15, %v2859_v44  ;;  %v3062_v42 = vsel %vm1043_vm8, %v2944_v20, 0.0 }
 0x2cd   :  { %v3058_v5 = vsel %vm1043_vm8, %v2942_v21, 0.0 }
 0x2ce   :  { %v2863_v38 = vadd.f32 %v2862_v24, %v2861_v16  ;;  %v3059_v12 = vadd.f32 %v3058_v5, %v3057_v22 }
 0x2cf   :  { %v9224_v26 = vpop.f32.mrb[56].mxu0 }
 0x2d0   :  { %13111 = vst [vmem:[#allocation26_spill] sm:$0xff] %v9224_v26  ;;  %v3061_v51 = vadd.f32 %v3060_v9, %v3059_v12  ;;  %v9226_v37 = vpop.f32.mrb[57].mxu0  ;;  %v2865_v44 = vadd.f32 %v2864_v41, %v2863_v38  ;;  %v2947_v5 = vmul.f32 %v9224_v26, %v9224_v26 }
 0x2d1   :  { %13112 = vst [vmem:[#allocation27_spill] sm:$0xff] %v9226_v37  ;;  %v2866_v15 = vsel %vm1043_vm8, %v9226_v37, 0.0  ;;  %v2945_v24 = vmul.f32 %v9226_v37, %v9226_v37  ;;  %v9233_v21 = vpop.f32.mrb[58].mxu0  ;;  %v2870_v37 = vsel %vm1043_vm8, %v9224_v26, 0.0 }
 0x2d2   :  { %13113 = vst [vmem:[#allocation28_spill] sm:$0xff] %v9233_v21  ;;  %v2867_v59 = vadd.f32 %v2866_v15, %v2865_v44  ;;  %v3063_v22 = vadd.f32 %v3062_v42, %v3061_v51  ;;  %v9235_v16 = vpop.f32.mrb[59].mxu0  ;;  %v2948_v51 = vmul.f32 %v9233_v21, %v9233_v21  ;;  %v2872_v6 = vsel %vm1043_vm8, %v9233_v21, 0.0 }
 0x2d3   :  { %13114 = vst [vmem:[#allocation29_spill] sm:$0xff] %v9235_v16  ;;  %v3064_v12 = vsel %vm1043_vm8, %v2945_v24, 0.0  ;;  %v2868_v41 = vsel %vm1043_vm8, %v9235_v16, 0.0  ;;  %v2946_v20 = vmul.f32 %v9235_v16, %v9235_v16  ;;  %v3068_v24 = vsel %vm1043_vm8, %v2947_v5, 0.0 }
 0x2d4   :  { %v3065_v38 = vadd.f32 %v3064_v12, %v3063_v22  ;;  %v2869_v9 = vadd.f32 %v2868_v41, %v2867_v59  ;;  %v3070_v12 = vsel %vm1043_vm8, %v2948_v51, 0.0 }
 0x2d5   :  { %v3066_v44 = vsel %vm1043_vm8, %v2946_v20, 0.0 }
 0x2d6   :  { %v2871_v42 = vadd.f32 %v2870_v37, %v2869_v9  ;;  %v3067_v15 = vadd.f32 %v3066_v44, %v3065_v38 }
 0x2d7   :  { %v9252_v27 = vpop.f32.mrb[60].mxu0 }
 0x2d8   :  { %13115 = vst [vmem:[#allocation30_spill] sm:$0xff] %v9252_v27  ;;  %v3069_v16 = vadd.f32 %v3068_v24, %v3067_v15  ;;  %v2673_v22 = vpop.f32.mrb[61].mxu0  ;;  %v2873_v59 = vadd.f32 %v2872_v6, %v2871_v42  ;;  %v2951_v5 = vmul.f32 %v9252_v27, %v9252_v27  ;;  %v2878_v51 = vsel %vm1043_vm8, %v9252_v27, 0.0 }
 0x2d9   :  { %v2874_v41 = vsel %vm1043_vm8, %v2673_v22, 0.0  ;;  %v2949_v26 = vmul.f32 %v2673_v22, %v2673_v22  ;;  %v9256_v7 = vpop.f32.mrb[62].mxu0 }
 0x2da   :  { %13116 = vst [vmem:[#allocation31_spill] sm:$0xff] %v9256_v7  ;;  %v2875_v20 = vadd.f32 %v2874_v41, %v2873_v59  ;;  %v3071_v37 = vadd.f32 %v3070_v12, %v3069_v16  ;;  %v2676_v38 = vpop.f32.mrb[63].mxu0  ;;  %v2952_v42 = vmul.f32 %v9256_v7, %v9256_v7  ;;  %v3076_v41 = vsel %vm1043_vm8, %v2951_v5, 0.0 }
 0x2db   :  { %v3072_v9 = vsel %vm1043_vm8, %v2949_v26, 0.0  ;;  %v2876_v44 = vsel %vm1043_vm8, %v2676_v38, 0.0  ;;  %v2950_v15 = vmul.f32 %v2676_v38, %v2676_v38  ;;  %v2880_v26 = vsel %vm1043_vm8, %v9256_v7, 0.0 }
 0x2dc   :  { %v3073_v24 = vadd.f32 %v3072_v9, %v3071_v37  ;;  %v2877_v6 = vadd.f32 %v2876_v44, %v2875_v20  ;;  %v3078_v37 = vsel %vm1043_vm8, %v2952_v42, 0.0  ;;  %v3094_v42 = vlaneseq }
 0x2dd   :  { %v3074_v59 = vsel %vm1043_vm8, %v2950_v15, 0.0 }
 0x2de   :  { %v2879_v16 = vadd.f32 %v2878_v51, %v2877_v6  ;;  %v3075_v12 = vadd.f32 %v3074_v59, %v3073_v24 }
 0x2e0   :  { %v2881_v21 = vadd.f32 %v2880_v26, %v2879_v16  ;;  %v3077_v60 = vadd.f32 %v3076_v41, %v3075_v12 }
 0x2e2   :  { %v2882_v20 = vrot.slane %v2881_v21, 4  ;;  %v3079_v9 = vadd.f32 %v3078_v37, %v3077_v60  ;;  %v3095_v60 = vshrl.u32 %v3094_v42, 7  ;;  %v13122_v42 = vld [vmem:[#allocation11_spill] sm:$0xff] }
 0x2e4   :  { %v2883_v44 = vadd.f32 %v2882_v20, %v2881_v21  ;;  %v3080_v27 = vrot.slane %v3079_v9, 4 }
 0x2e6   :  { %v2884_v28 = vrot.slane %v2883_v44, 2  ;;  %v3081_v35 = vadd.f32 %v3080_v27, %v3079_v9  ;;  %v2752_v27 = vld [vmem:[%s12822_s2] sm:$0x1] }
 0x2e8   :  { %v2885_v14 = vadd.f32 %v2884_v28, %v2883_v44  ;;  %v3082_v30 = vrot.slane %v3081_v35, 2  ;;  %v9274_v28 = vsub.s32 0, %v3095_v60  ;;  %v13123_v60 = vld [vmem:[#allocation8_spill] sm:$0xff] }
 0x2ea   :  { %v2886_v15 = vrot.slane %v2885_v14, 1  ;;  %v3083_v6 = vadd.f32 %v3082_v30, %v3081_v35  ;;  %13117 = vst [vmem:[#allocation32_spill] sm:$0xff] %v9274_v28 }
 0x2ec   :  { %v2887_v24 = vadd.f32 %v2886_v15, %v2885_v14  ;;  %v3084_v51 = vrot.slane %v3083_v6, 1  ;;  %v2753_v14 = vld [vmem:[%s12823_s3] sm:$0x1] }
 0x2ee   :  { %v2888_v5 = vmul.f32 0.001953125, %v2887_v24  ;;  %v3085_v59 = vadd.f32 %v3084_v51, %v3083_v6 }
 0x2f0   :  { %v3086_v29 = vmul.f32 0.001953125, %v3085_v59  ;;  %v3087_v7 = vmul.f32 %v2888_v5, %v2888_v5 }
 0x2f2   :  { %v3088_v16 = vsub.f32 %v3086_v29, %v3087_v7 }
 0x2f4   :  { %v3089_v12 = vmax.f32 %v3088_v16, 0.0  ;;  %v13119_v16 = vld [vmem:[#allocation5_spill] sm:$0xff] }
 0x2f6   :  { %v3090_v41 = vadd.f32 1e-05, %v3089_v12  ;;  %v13120_v12 = vld [vmem:[#allocation7_spill] sm:$0xff] }
 0x2f8   :  { %7555 = vrsqrt.f32 %v3090_v41  ;;  %v13121_v41 = vld [vmem:[#allocation9_spill] sm:$0xff] }
 0x302   :  { %v7556_v21 = vpop.eup %7555 }
 0x303   :  { %v3092_v30 = vmul.f32 %v7556_v21, %v2752_v27  ;;  %v13124_v27 = vld [vmem:[#allocation10_spill] sm:$0xff] }
 0x305   :  { %v9280_v35 = vrot.slane %v3092_v30, %v9274_v28  ;;  %v3163_v29 = vmul.f32 %v3092_v30, %v2888_v5  ;;  %v13125_v30 = vld [vmem:[#allocation15_spill] sm:$0xff] }
 0x307   :  { %v3159_v7 = vmul.f32 %v9280_v35, %v2673_v22  ;;  %v3160_v26 = vmul.f32 %v9280_v35, %v2676_v38  ;;  %v3164_v37 = vsub.f32 %v2753_v14, %v3163_v29  ;;  %v9286_v20 = vmul.f32 %v9280_v35, %v8835_v46  ;;  %v13126_v29 = vld [vmem:[#allocation17_spill] sm:$0xff] }
 0x308   :  { %v9290_v9 = vmul.f32 %v9280_v35, %v8841_v53  ;;  %v9294_v44 = vmul.f32 %v8833_v8, %v9280_v35  ;;  %v9298_v15 = vmul.f32 %v8839_v55, %v9280_v35  ;;  %v9302_v22 = vmul.f32 %v9280_v35, %v8862_v45 }
 0x309   :  { %v9305_v38 = vrot.slane %v3164_v37, %v9274_v28  ;;  %v9309_v46 = vmul.f32 %v9280_v35, %v8871_v1  ;;  %v9313_v53 = vmul.f32 %v8860_v18, %v9280_v35  ;;  %v9317_v8 = vmul.f32 %v8869_v58, %v9280_v35  ;;  %v13140_v28 = vld [vmem:[#allocation24_spill] sm:$0xff] }
 0x30a   :  { %v9321_v55 = vmul.f32 %v9280_v35, %v8890_v34  ;;  %v9325_v45 = vmul.f32 %v9280_v35, %v8899_v43  ;;  %v9329_v1 = vmul.f32 %v8888_v39, %v9280_v35  ;;  %v9333_v18 = vmul.f32 %v8897_v63, %v9280_v35 }
 0x30b   :  { %v3231_v6 = vadd.f32 %v9305_v38, %v3159_v7  ;;  %v3232_v58 = vadd.f32 %v9305_v38, %v3160_v26  ;;  %v9339_v34 = vmul.f32 %v9280_v35, %v8918_v17  ;;  %v9343_v43 = vmul.f32 %v9280_v35, %v8927_v62  ;;  %v13127_v26 = vld [vmem:[#allocation14_spill] sm:$0xff] }
 0x30c   :  { %v9347_v39 = vmul.f32 %v8916_v61, %v9280_v35  ;;  %v9351_v63 = vmul.f32 %v8925_v31, %v9280_v35  ;;  %v9355_v24 = vmul.f32 %v9280_v35, %v8946_v57  ;;  %v9359_v17 = vmul.f32 %v9280_v35, %v8955_v48 }
 0x30d   :  { %v3295_v51 = vmax.f32 %v3231_v6, 0.0  ;;  %v3296_v5 = vmax.f32 %v3232_v58, 0.0  ;;  %v9363_v62 = vmul.f32 %v8944_v3, %v9280_v35  ;;  %v9367_v61 = vmul.f32 %v8953_v47, %v9280_v35  ;;  %v13128_v6 = vld [vmem:[#allocation16_spill] sm:$0xff] }
 0x30e   :  { %v9371_v31 = vmul.f32 %v9280_v35, %v8974_v10  ;;  %v9375_v57 = vmul.f32 %v9280_v35, %v8983_v19  ;;  %v9379_v48 = vmul.f32 %v8972_v52, %v9280_v35  ;;  %v9383_v3 = vmul.f32 %v8981_v32, %v9280_v35 }
 0x30f   :  { %v9385_v59 = vpack.c.bf16 %v3296_v5, %v3295_v51  ;;  %v9389_v47 = vmul.f32 %v9280_v35, %v9002_v50  ;;  %v9393_v10 = vmul.f32 %v9280_v35, %v9011_v49  ;;  %v9397_v19 = vmul.f32 %v9000_v2, %v9280_v35  ;;  %v13129_v51 = vld [vmem:[#allocation19_spill] sm:$0xff] }
 0x310   :  { %v9401_v52 = vmul.f32 %v9009_v25, %v9280_v35  ;;  %v9405_v32 = vmul.f32 %v9280_v35, %v9030_v33  ;;  %v9409_v50 = vmul.f32 %v9280_v35, %v9039_v13  ;;  %v9413_v49 = vmul.f32 %v9028_v11, %v9280_v35 }
 0x311   :  { %13118 = vst [vmem:[#allocation33_spill] sm:$0xff] %v9385_v59  ;;  %v9417_v2 = vmul.f32 %v9037_v54, %v9280_v35  ;;  %v9421_v25 = vmul.f32 %v9280_v35, %v9058_v40  ;;  %v9425_v33 = vmul.f32 %v9280_v35, %v9067_v23  ;;  %v9429_v13 = vmul.f32 %v9056_v0, %v9280_v35  ;;  %v13142_v59 = vld [vmem:[#allocation27_spill] sm:$0xff] }
 0x312   :  { %v9433_v11 = vmul.f32 %v9065_v4, %v9280_v35  ;;  %v9437_v54 = vmul.f32 %v9280_v35, %v9086_v56  ;;  %v9441_v40 = vmul.f32 %v9280_v35, %v9095_v36  ;;  %v9445_v23 = vmul.f32 %v13119_v16, %v9280_v35  ;;  %v13130_v16 = vld [vmem:[#allocation21_spill] sm:$0xff] }
 0x313   :  { %v9449_v0 = vmul.f32 %v13120_v12, %v9280_v35  ;;  %v9453_v4 = vmul.f32 %v9280_v35, %v13121_v41  ;;  %v9457_v56 = vmul.f32 %v9280_v35, %v13122_v42  ;;  %v9461_v36 = vmul.f32 %v13123_v60, %v9280_v35  ;;  %v13131_v41 = vld [vmem:[#allocation18_spill] sm:$0xff]  ;;  %v13132_v60 = vld [vmem:[#allocation20_spill] sm:$0xff] }
 0x314   :  { %v9465_v21 = vmul.f32 %v13124_v27, %v9280_v35  ;;  %v9469_v14 = vmul.f32 %v9280_v35, %v13125_v30  ;;  %v9473_v7 = vmul.f32 %v9280_v35, %v13126_v29  ;;  %v9477_v37 = vmul.f32 %v13127_v26, %v9280_v35  ;;  %v13134_v30 = vld [vmem:[#allocation23_spill] sm:$0xff]  ;;  %v13136_v26 = vld [vmem:[#allocation25_spill] sm:$0xff] }
 0x315   :  { %v9481_v58 = vmul.f32 %v13128_v6, %v9280_v35  ;;  %v9485_v5 = vmul.f32 %v9280_v35, %v13129_v51  ;;  %v9489_v12 = vmul.f32 %v9280_v35, %v13130_v16  ;;  %v9493_v42 = vmul.f32 %v13131_v41, %v9280_v35  ;;  %v13138_v51 = vld [vmem:[#allocation22_spill] sm:$0xff] }
 0x316   :  { %v9497_v27 = vmul.f32 %v13132_v60, %v9280_v35  ;;  %v9501_v29 = vmul.f32 %v9280_v35, %v13134_v30  ;;  %v9505_v6 = vmul.f32 %v9280_v35, %v13136_v26  ;;  %v9509_v16 = vmul.f32 %v13138_v51, %v9280_v35 }
 0x317   :  { %v9513_v41 = vmul.f32 %v13140_v28, %v9280_v35  ;;  %v9517_v60 = vmul.f32 %v9280_v35, %v13142_v59 }
 0x318   :  { %13133 = vst [vmem:[#allocation5_spill] sm:$0xff] %v9497_v27  ;;  %13135 = vst [vmem:[#allocation7_spill] sm:$0xff] %v9501_v29  ;;  %v13143_v27 = vld [vmem:[#allocation29_spill] sm:$0xff]  ;;  %v13145_v29 = vld [vmem:[#allocation26_spill] sm:$0xff] }
 0x319   :  { %13137 = vst [vmem:[#allocation9_spill] sm:$0xff] %v9505_v6  ;;  %13139 = vst [vmem:[#allocation11_spill] sm:$0xff] %v9509_v16  ;;  %v9521_v30 = vmul.f32 %v9280_v35, %v13143_v27  ;;  %v9525_v26 = vmul.f32 %v13145_v29, %v9280_v35  ;;  %v13146_v6 = vld [vmem:[#allocation28_spill] sm:$0xff]  ;;  %v13147_v16 = vld [vmem:[#allocation30_spill] sm:$0xff]  ;;  %v3173_v27 = vadd.f32 %v9305_v38, %v9294_v44 }
 0x31a   :  { %13141 = vst [vmem:[#allocation8_spill] sm:$0xff] %v9513_v41  ;;  %v9529_v51 = vmul.f32 %v13146_v6, %v9280_v35  ;;  %v9533_v28 = vmul.f32 %v13147_v16, %v9280_v35  ;;  %v13148_v41 = vld [vmem:[#allocation31_spill] sm:$0xff]  ;;  %v9545_v29 = vadd.f32 %v9305_v38, %v9286_v20  ;;  %v9549_v6 = vadd.f32 %v9305_v38, %v9290_v9 }
 0x31b   :  { %13144 = vst [vmem:[#allocation10_spill] sm:$0xff] %v9521_v30  ;;  %v9537_v59 = vmul.f32 %v13148_v41, %v9280_v35  ;;  %v3174_v30 = vadd.f32 %v9305_v38, %v9298_v15  ;;  %v9553_v16 = vadd.f32 %v9305_v38, %v9302_v22  ;;  %v9557_v35 = vadd.f32 %v9305_v38, %v9309_v46 }
 0x31c   :  { %v9561_v44 = vadd.f32 %v9305_v38, %v9313_v53  ;;  %v9565_v20 = vadd.f32 %v9305_v38, %v9317_v8  ;;  %v3237_v15 = vmax.f32 %v3173_v27, 0.0  ;;  %v9569_v9 = vadd.f32 %v9305_v38, %v9321_v55 }
 0x31d   :  { %v3238_v41 = vmax.f32 %v3174_v30, 0.0  ;;  %v9573_v22 = vadd.f32 %v9305_v38, %v9325_v45  ;;  %v9577_v46 = vadd.f32 %v9305_v38, %v9329_v1  ;;  %v9581_v53 = vadd.f32 %v9305_v38, %v9333_v18 }
 0x31e   :  { %v9585_v8 = vadd.f32 %v9305_v38, %v9339_v34  ;;  %v9589_v55 = vadd.f32 %v9305_v38, %v9343_v43  ;;  %v9595_v45 = vadd.f32 %v9305_v38, %v9347_v39  ;;  %v9599_v1 = vadd.f32 %v9305_v38, %v9351_v63 }
 0x31f   :  { %v9591_v30 = vpack.c.bf16 %v3238_v41, %v3237_v15  ;;  %v9603_v18 = vadd.f32 %v9305_v38, %v9355_v24  ;;  %v9607_v34 = vadd.f32 %v9305_v38, %v9359_v17  ;;  %v9611_v43 = vadd.f32 %v9305_v38, %v9363_v62  ;;  %v13151_v27 = vld [vmem:[#allocation5_spill] sm:$0xff]  ;;  %v13153_v15 = vld [vmem:[#allocation7_spill] sm:$0xff] }
 0x320   :  { %v9615_v39 = vadd.f32 %v9305_v38, %v9367_v61  ;;  %v9619_v63 = vadd.f32 %v9305_v38, %v9371_v31  ;;  %v9625_v24 = vadd.f32 %v9305_v38, %v9375_v57  ;;  %v9629_v17 = vadd.f32 %v9305_v38, %v9379_v48  ;;  %v13154_v41 = vld [vmem:[#allocation9_spill] sm:$0xff] }
 0x321   :  { %3365 = vrot.lane.b32.xlu1 %v9591_v30, %s7559_s28  ;;  %v9633_v62 = vadd.f32 %v9305_v38, %v9383_v3  ;;  %v9637_v61 = vadd.f32 %v9305_v38, %v9389_v47  ;;  %v9641_v31 = vadd.f32 %v9305_v38, %v9393_v10  ;;  %v9645_v57 = vadd.f32 %v9305_v38, %v9397_v19 }
 0x322   :  { %v9649_v48 = vadd.f32 %v9305_v38, %v9401_v52  ;;  %v9653_v3 = vadd.f32 %v9305_v38, %v9405_v32  ;;  %v9657_v47 = vadd.f32 %v9305_v38, %v9409_v50  ;;  %v9661_v10 = vadd.f32 %v9305_v38, %v9413_v49 }
 0x323   :  { %v9665_v19 = vadd.f32 %v9305_v38, %v9417_v2  ;;  %v9669_v52 = vadd.f32 %v9305_v38, %v9421_v25  ;;  %v9673_v32 = vadd.f32 %v9305_v38, %v9425_v33  ;;  %v9677_v50 = vadd.f32 %v9305_v38, %v9429_v13 }
 0x324   :  { %v9681_v49 = vadd.f32 %v9305_v38, %v9433_v11  ;;  %v9685_v2 = vadd.f32 %v9305_v38, %v9437_v54  ;;  %v9689_v25 = vadd.f32 %v9305_v38, %v9441_v40  ;;  %v9693_v33 = vadd.f32 %v9305_v38, %v9445_v23 }
 0x325   :  { %v9697_v13 = vadd.f32 %v9305_v38, %v9449_v0  ;;  %v9701_v11 = vadd.f32 %v9305_v38, %v9453_v4  ;;  %v9705_v54 = vadd.f32 %v9305_v38, %v9457_v56  ;;  %v9709_v40 = vadd.f32 %v9305_v38, %v9461_v36 }
 0x326   :  { %13149 = vst [vmem:[#allocation15_spill] sm:$0xff] %v9685_v2  ;;  %13150 = vst [vmem:[#allocation17_spill] sm:$0xff] %v9689_v25  ;;  %v9713_v23 = vadd.f32 %v9305_v38, %v9465_v21  ;;  %v9717_v0 = vadd.f32 %v9305_v38, %v9469_v14  ;;  %v9721_v4 = vadd.f32 %v9305_v38, %v9473_v7  ;;  %v13155_v25 = vld [vmem:[#allocation11_spill] sm:$0xff]  ;;  %v13156_v2 = vld [vmem:[#allocation8_spill] sm:$0xff] }
 0x327   :  { %v9725_v56 = vadd.f32 %v9305_v38, %v9477_v37  ;;  %v9729_v36 = vadd.f32 %v9305_v38, %v9481_v58  ;;  %v9733_v21 = vadd.f32 %v9305_v38, %v9485_v5  ;;  %v9737_v14 = vadd.f32 %v9305_v38, %v9489_v12 }
 0x328   :  { %v9741_v7 = vadd.f32 %v9305_v38, %v9493_v42  ;;  %v9745_v37 = vadd.f32 %v9305_v38, %v13151_v27  ;;  %v9749_v58 = vadd.f32 %v9305_v38, %v13153_v15  ;;  %v9753_v5 = vadd.f32 %v9305_v38, %v13154_v41 }
 0x329   :  { %v9757_v12 = vadd.f32 %v9305_v38, %v13155_v25  ;;  %v9761_v42 = vadd.f32 %v9305_v38, %v13156_v2  ;;  %v9765_v27 = vadd.f32 %v9305_v38, %v9517_v60  ;;  %v9773_v41 = vadd.f32 %v9305_v38, %v9525_v26 }
 0x32a   :  { %13152 = vst [vmem:[#allocation14_spill] sm:$0xff] %v9745_v37  ;;  %v13158_v37 = vld [vmem:[#allocation10_spill] sm:$0xff]  ;;  %v9777_v25 = vadd.f32 %v9305_v38, %v9529_v51  ;;  %v9781_v2 = vadd.f32 %v9305_v38, %v9533_v28  ;;  %v9785_v60 = vadd.f32 %v9305_v38, %v9537_v59  ;;  %v3241_v26 = vmax.f32 %v9561_v44, 0.0 }
 0x32b   :  { %13157 = vst [vmem:[#allocation16_spill] sm:$0xff] %v9765_v27  ;;  %v9769_v15 = vadd.f32 %v9305_v38, %v13158_v37  ;;  %v3235_v27 = vmax.f32 %v9545_v29, 0.0  ;;  %v3236_v37 = vmax.f32 %v9549_v6, 0.0  ;;  %v3242_v51 = vmax.f32 %v9565_v20, 0.0 }
 0x32c   :  { %13160 = vst [vmem:[#allocation21_spill] sm:$0xff] %v9777_v25  ;;  %13161 = vst [vmem:[#allocation18_spill] sm:$0xff] %v9781_v2  ;;  %v3239_v25 = vmax.f32 %v9553_v16, 0.0  ;;  %v3240_v28 = vmax.f32 %v9557_v35, 0.0  ;;  %v3245_v2 = vmax.f32 %v9577_v46, 0.0  ;;  %v3246_v38 = vmax.f32 %v9581_v53, 0.0 }
 0x32d   :  { %13159 = vst [vmem:[#allocation19_spill] sm:$0xff] %v9769_v15  ;;  %v3299_v15 = vpack.c.bf16 %v3236_v37, %v3235_v27  ;;  %v9796_v59 = vpack.c.bf16 %v3242_v51, %v3241_v26  ;;  %v3243_v29 = vmax.f32 %v9569_v9, 0.0  ;;  %v3244_v6 = vmax.f32 %v9573_v22, 0.0 }
 0x32e   :  { %v3501_v27 = vshrl.u32 %v9591_v30, 16  ;;  %v9801_v37 = vpack.c.bf16 %v3240_v28, %v3239_v25  ;;  %v9803_v44 = vpack.c.bf16 %v3246_v38, %v3245_v2  ;;  %v3504_v16 = vshll.u32 %v9591_v30, 16 }
 0x32f   :  { %3363 = vrot.lane.b32.xlu0 %v3299_v15, %s7559_s28  ;;  %v3494_v20 = vshrl.u32 %v3299_v15, 16  ;;  %3369 = vrot.lane.b32.xlu1 %v9796_v59, %s7559_s28  ;;  %v9808_v35 = vpack.c.bf16 %v3244_v6, %v3243_v29  ;;  %v3497_v53 = vshll.u32 %v3299_v15, 16  ;;  %v3249_v9 = vmax.f32 %v9595_v45, 0.0 }
 0x330   :  { %v3503_v46 = vrot.slane %v3501_v27, 7  ;;  %v3850_v22 = vrot.slane %v3504_v16, 1  ;;  %v3250_v2 = vmax.f32 %v9599_v1, 0.0  ;;  %v3247_v26 = vmax.f32 %v9585_v8, 0.0 }
 0x331   :  { %v3496_v25 = vrot.slane %v3494_v20, 7  ;;  %v3248_v51 = vmax.f32 %v9589_v55, 0.0  ;;  %v3515_v28 = vshrl.u32 %v9796_v59, 16  ;;  %v3848_v15 = vrot.slane %v3497_v53, 1 }
 0x332   :  { %v9815_v30 = vor.u32 %v3504_v16, %v3503_v46  ;;  %v9822_v45 = vpack.c.bf16 %v3250_v2, %v3249_v9  ;;  %v3518_v8 = vshll.u32 %v9796_v59, 16  ;;  %v3508_v16 = vshrl.u32 %v9801_v37, 16 }
 0x333   :  { %3367 = vrot.lane.b32.xlu0 %v9801_v37, %s7559_s28  ;;  %v9820_v29 = vor.u32 %v3497_v53, %v3496_v25  ;;  %3373 = vrot.lane.b32.xlu1 %v9803_v44, %s7559_s28  ;;  %v9826_v6 = vpack.c.bf16 %v3248_v51, %v3247_v26  ;;  %v3517_v1 = vrot.slane %v3515_v28, 7  ;;  %v3851_v55 = vor.u32 %v3850_v22, %v3501_v27 }
 0x334   :  { %v3511_v46 = vshll.u32 %v9801_v37, 16  ;;  %v3253_v53 = vmax.f32 %v9611_v43, 0.0  ;;  %v3254_v9 = vmax.f32 %v9615_v39, 0.0  ;;  %v3510_v2 = vrot.slane %v3508_v16, 7  ;;  %v9846_v43 = vld [vmem:[%s12824_s4 + $0x8] sm:$0x3f]  }
 0x335   :  { %13162 = vst [vmem:[#allocation20_spill] sm:$0xff] %v9820_v29  ;;  %v9835_v25 = vor.u32 %v3518_v8, %v3517_v1  ;;  %v3251_v26 = vmax.f32 %v9603_v18, 0.0  ;;  %v3252_v51 = vmax.f32 %v9607_v34, 0.0  ;;  %v3849_v38 = vor.u32 %v3848_v15, %v3494_v20  ;;  %7511 = vmatprep.subr.msk.bf16.mxu1 %vm1573_vm6, %v9846_v43 }
 0x336   :  { %v9840_v29 = vpack.c.bf16 %v3254_v9, %v3253_v53  ;;  %v3529_v27 = vshrl.u32 %v9803_v44, 16  ;;  %v3854_v39 = vrot.slane %v3518_v8, 1  ;;  %v9849_v37 = vor.u32 %v3511_v46, %v3510_v2 }
 0x337   :  { %3371 = vrot.lane.b32.xlu0 %v9808_v35, %s7559_s28  ;;  %3914 = vrot.lane.b32.xlu1 %v3851_v55, %s7560_s18  ;;  %v9851_v18 = vpack.c.bf16 %v3252_v51, %v3251_v26  ;;  %v12901_v34 = vshrl.u32 %v9808_v35, 16  ;;  %v3852_v20 = vrot.slane %v3511_v46, 1  ;;  %v3532_v15 = vshll.u32 %v9803_v44, 16 }
 0x338   :  { %v3531_v22 = vrot.slane %v3529_v27, 7  ;;  %v3257_v1 = vmax.f32 %v9629_v17, 0.0  ;;  %v3525_v55 = vshll.u32 %v9808_v35, 16  ;;  %v3258_v53 = vmax.f32 %v9633_v62, 0.0 }
 0x339   :  { %v3524_v8 = vrot.slane %v12901_v34, 7  ;;  %v3256_v2 = vmax.f32 %v9625_v24, 0.0  ;;  %v12902_v17 = vshrl.u32 %v9822_v45, 16  ;;  %v3855_v51 = vor.u32 %v3854_v39, %v3515_v28 }
 0x33a   :  { %v9867_v9 = vor.u32 %v3532_v15, %v3531_v22  ;;  %v9876_v34 = vpack.c.bf16 %v3258_v53, %v3257_v1  ;;  %v3546_v62 = vshll.u32 %v9822_v45, 16  ;;  %v3536_v22 = vshrl.u32 %v9826_v6, 16 }
 0x33b   :  { %3912 = vrot.lane.b32.xlu0 %v3849_v38, %s7560_s18  ;;  %v3255_v38 = vmax.f32 %v9619_v63, 0.0  ;;  %3377 = vrot.lane.b32.xlu1 %v9822_v45, %s7559_s28  ;;  %v9874_v59 = vor.u32 %v3525_v55, %v3524_v8  ;;  %v3545_v24 = vrot.slane %v12902_v17, 7  ;;  %v3853_v26 = vor.u32 %v3852_v20, %v3508_v16 }
 0x33c   :  { %v3539_v46 = vshll.u32 %v9826_v6, 16  ;;  %v3261_v28 = vmax.f32 %v9645_v57, 0.0  ;;  %v3262_v39 = vmax.f32 %v9649_v48, 0.0  ;;  %v3538_v8 = vrot.slane %v3536_v22, 7 }
 0x33d   :  { %v9880_v63 = vpack.c.bf16 %v3256_v2, %v3255_v38  ;;  %v9889_v1 = vor.u32 %v3546_v62, %v3545_v24  ;;  %v3259_v53 = vmax.f32 %v9637_v61, 0.0  ;;  %v3260_v38 = vmax.f32 %v9641_v31, 0.0 }
 0x33e   :  { %v9898_v16 = vpack.c.bf16 %v3262_v39, %v3261_v28  ;;  %v12904_v57 = vshrl.u32 %v9840_v29, 16  ;;  %v3858_v48 = vrot.slane %v3532_v15, 1  ;;  %v9902_v20 = vor.u32 %v3539_v46, %v3538_v8 }
 0x33f   :  { %3375 = vrot.lane.b32.xlu0 %v9826_v6, %s7559_s28  ;;  %3918 = vrot.lane.b32.xlu1 %v3855_v51, %s7560_s18  ;;  %v9904_v24 = vpack.c.bf16 %v3260_v38, %v3259_v53  ;;  %v12903_v61 = vshrl.u32 %v9851_v18, 16  ;;  %v3856_v31 = vrot.slane %v3525_v55, 1  ;;  %v3560_v17 = vshll.u32 %v9840_v29, 16 }
 0x340   :  { %v3559_v2 = vrot.slane %v12904_v57, 7  ;;  %v3265_v51 = vmax.f32 %v9661_v10, 0.0  ;;  %v3266_v15 = vmax.f32 %v9665_v19, 0.0  ;;  %v3263_v39 = vmax.f32 %v9653_v3, 0.0 }
 0x341   :  { %v3552_v28 = vrot.slane %v12903_v61, 7  ;;  %v3264_v53 = vmax.f32 %v9657_v47, 0.0  ;;  %v12906_v10 = vshrl.u32 %v9876_v34, 16  ;;  %v3859_v19 = vor.u32 %v3858_v48, %v3529_v27 }
 0x342   :  { %v9919_v55 = vor.u32 %v3560_v17, %v3559_v2  ;;  %v9932_v61 = vpack.c.bf16 %v3266_v15, %v3265_v51  ;;  %v12908_v8 = vshll.u32 %v9876_v34, 16  ;;  %v12905_v38 = vshrl.u32 %v9880_v63, 16 }
 0x343   :  { %3916 = vrot.lane.b32.xlu0 %v3853_v26, %s7560_s18  ;;  %v3553_v26 = vshll.u32 %v9851_v18, 16  ;;  %3381 = vrot.lane.b32.xlu1 %v9840_v29, %s7559_s28  ;;  %v9934_v2 = vpack.c.bf16 %v3264_v53, %v3263_v39  ;;  %v3573_v47 = vrot.slane %v12906_v10, 7  ;;  %v13163_v44 = vshrl.u32 %v9808_v35, 16 }
 0x344   :  { %v3862_v48 = vrot.slane %v3546_v62, 1  ;;  %v3566_v39 = vrot.slane %v12905_v38, 7  ;;  %v3567_v53 = vshll.u32 %v9880_v63, 16  ;;  %v12911_v62 = vshll.u32 %v9932_v61, 16 }
 0x345   :  { %v9930_v3 = vor.u32 %v3553_v26, %v3552_v28  ;;  %v3857_v27 = vor.u32 %v3856_v31, %v13163_v44  ;;  %v12907_v28 = vshrl.u32 %v9932_v61, 16  ;;  %v12909_v51 = vshrl.u32 %v9934_v2, 16 }
 0x346   :  { %v9948_v15 = vor.u32 %v12908_v8, %v3573_v47  ;;  %v12910_v31 = vshll.u32 %v9934_v2, 16  ;;  %v9963_v44 = vor.u32 %v3567_v53, %v3566_v39  ;;  %v3270_v38 = vmax.f32 %v9681_v49, 0.0 }
 0x347   :  { %3379 = vrot.lane.b32.xlu0 %v9851_v18, %s7559_s28  ;;  %3922 = vrot.lane.b32.xlu1 %v3859_v19, %s7560_s18  ;;  %v3601_v35 = vrot.slane %v12907_v28, 7  ;;  %v3269_v19 = vmax.f32 %v9677_v50, 0.0  ;;  %v3594_v47 = vrot.slane %v12909_v51, 7  ;;  %v3860_v10 = vrot.slane %v3539_v46, 1 }
 0x348   :  { %v3268_v8 = vmax.f32 %v9673_v32, 0.0  ;;  %v12914_v50 = vshrl.u32 %v9898_v16, 16  ;;  %v3284_v57 = vmax.f32 %v9737_v14, 0.0  ;;  %v13166_v32 = vshrl.u32 %v9822_v45, 16 }
 0x349   :  { %v9969_v28 = vor.u32 %v12911_v62, %v3601_v35  ;;  %v9978_v39 = vor.u32 %v12910_v31, %v3594_v47  ;;  %v9980_v49 = vpack.c.bf16 %v3270_v38, %v3269_v19  ;;  %v3588_v51 = vshll.u32 %v9898_v16, 16 }
 0x34a   :  { %v3863_v46 = vor.u32 %v3862_v48, %v13166_v32  ;;  %v3587_v14 = vrot.slane %v12914_v50, 7  ;;  %v12916_v19 = vshll.u32 %v9904_v24, 16  ;;  %v3273_v31 = vmax.f32 %v9693_v33, 0.0 }
 0x34b   :  { %3920 = vrot.lane.b32.xlu0 %v3857_v27, %s7560_s18  ;;  %v3267_v27 = vmax.f32 %v9669_v52, 0.0  ;;  %13164 = vst [vmem:[#allocation23_spill] sm:$0xff] %v9969_v28  ;;  %3385 = vrot.lane.b32.xlu1 %v9876_v34, %s7559_s28  ;;  %13165 = vst [vmem:[#allocation25_spill] sm:$0xff] %v9978_v39  ;;  %v12912_v52 = vshrl.u32 %v9904_v24, 16  ;;  %v12913_v47 = vshrl.u32 %v9980_v49, 16  ;;  %v3861_v45 = vor.u32 %v3860_v10, %v3536_v22  ;;  %v13169_v10 = vld [vmem:[#allocation15_spill] sm:$0xff] }
 0x34c   :  { %v3866_v48 = vrot.slane %v3560_v17, 1  ;;  %v12917_v62 = vshll.u32 %v9980_v49, 16  ;;  %v3274_v6 = vmax.f32 %v9697_v13, 0.0  ;;  %v3864_v50 = vrot.slane %v3553_v26, 1 }
 0x34d   :  { %v9987_v35 = vpack.c.bf16 %v3268_v8, %v3267_v27  ;;  %v3580_v38 = vrot.slane %v12912_v52, 7  ;;  %v10002_v27 = vor.u32 %v3588_v51, %v3587_v14  ;;  %v3615_v32 = vrot.slane %v12913_v47, 7  ;;  %v13170_v14 = vld [vmem:[#allocation17_spill] sm:$0xff] }
 0x34e   :  { %v3272_v52 = vmax.f32 %v13170_v14, 0.0  ;;  %v3285_v47 = vmax.f32 %v9741_v7, 0.0  ;;  %v10026_v13 = vpack.c.bf16 %v3274_v6, %v3273_v31  ;;  %v13174_v14 = vmax.f32 %v9713_v23, 0.0  ;;  %v13177_v31 = vld [vmem:[#allocation14_spill] sm:$0xff] }
 0x34f   :  { %3383 = vrot.lane.b32.xlu0 %v9880_v63, %s7559_s28  ;;  %v12915_v8 = vshrl.u32 %v9987_v35, 16  ;;  %13167 = vst [vmem:[#allocation22_spill] sm:$0xff] %v10002_v27  ;;  %3926 = vrot.lane.b32.xlu1 %v3863_v46, %s7560_s18  ;;  %v10010_v33 = vor.u32 %v12916_v19, %v3580_v38  ;;  %v12919_v22 = vshll.u32 %v9987_v35, 16  ;;  %v3271_v46 = vmax.f32 %v13169_v10, 0.0  ;;  %v380_v27 = vld [vmem:[#allocation3 + $0x80] sm:$0x80] }
 0x350   :  { %v10024_v38 = vor.u32 %v12917_v62, %v3615_v32  ;;  %v13173_v10 = vmax.f32 %v9709_v40, 0.0  ;;  %v13175_v26 = vmax.f32 %v9701_v11, 0.0  ;;  %v13176_v19 = vmax.f32 %v9705_v54, 0.0 }
 0x351   :  { %13168 = vst [vmem:[#allocation24_spill] sm:$0xff] %v10010_v33  ;;  %v3608_v17 = vrot.slane %v12915_v8, 7  ;;  %v10032_v8 = vpack.c.bf16 %v3272_v52, %v3271_v46  ;;  %v3286_v6 = vmax.f32 %v13177_v31, 0.0  ;;  %v3287_v62 = vmax.f32 %v9749_v58, 0.0 }
 0x352   :  { %13171 = vst [vmem:[#allocation27_spill] sm:$0xff] %v10024_v38  ;;  %v10038_v7 = vpack.c.bf16 %v13174_v14, %v13173_v10  ;;  %v10044_v32 = vpack.c.bf16 %v13176_v19, %v13175_v26  ;;  %v12918_v40 = vshrl.u32 %v10026_v13, 16  ;;  %v3289_v23 = vmax.f32 %v9757_v12, 0.0 }
 0x353   :  { %3924 = vrot.lane.b32.xlu0 %v3861_v45, %s7560_s18  ;;  %v10030_v45 = vor.u32 %v12919_v22, %v3608_v17  ;;  %v3288_v17 = vmax.f32 %v9753_v5, 0.0  ;;  %3389 = vrot.lane.b32.xlu1 %v9898_v16, %s7559_s28  ;;  %v3290_v52 = vmax.f32 %v9761_v42, 0.0  ;;  %v13178_v11 = vshrl.u32 %v9840_v29, 16  ;;  %v13183_v29 = vld [vmem:[#allocation16_spill] sm:$0xff]  ;;  %v13185_v22 = vld [vmem:[#allocation19_spill] sm:$0xff] }
 0x354   :  { %v12922_v19 = vshrl.u32 %v10032_v8, 16  ;;  %v3629_v58 = vrot.slane %v12918_v40, 7  ;;  %v12933_v5 = vshll.u32 %v10026_v13, 16  ;;  %v13179_v46 = vmax.f32 %v9725_v56, 0.0 }
 0x355   :  { %13172 = vst [vmem:[#allocation29_spill] sm:$0xff] %v10030_v45  ;;  %v3867_v54 = vor.u32 %v3866_v48, %v13178_v11  ;;  %v13180_v10 = vmax.f32 %v9729_v36, 0.0  ;;  %v13181_v42 = vmax.f32 %v9717_v0, 0.0  ;;  %v13182_v14 = vmax.f32 %v9721_v4, 0.0 }
 0x356   :  { %v3291_v48 = vmax.f32 %v13183_v29, 0.0  ;;  %v13184_v31 = vshrl.u32 %v9851_v18, 16  ;;  %v3622_v40 = vrot.slane %v12922_v19, 7  ;;  %v12925_v56 = vshll.u32 %v10032_v8, 16  ;;  %v245_v19 = vld [vmem:[#allocation3 + $0x18] sm:$0x1] }
 0x357   :  { %3387 = vrot.lane.b32.xlu0 %v9904_v24, %s7559_s28  ;;  %v10066_v12 = vpack.c.bf16 %v13180_v10, %v13179_v46  ;;  %v10072_v26 = vpack.c.bf16 %v13182_v14, %v13181_v42  ;;  %v3292_v36 = vmax.f32 %v13185_v22, 0.0  ;;  %3930 = vrot.lane.b32.xlu1 %v3867_v54, %s7560_s18  ;;  %v10084_v0 = vor.u32 %v12933_v5, %v3629_v58 }
 0x358   :  { %v3865_v11 = vor.u32 %v3864_v50, %v13184_v31  ;;  %v10086_v4 = vpack.c.bf16 %v3286_v6, %v3285_v47  ;;  %v13187_v46 = vmax.f32 %v9733_v21, 0.0  ;;  %v3293_v18 = vmax.f32 %v9773_v41, 0.0  ;;  %v13188_v50 = vld [vmem:[#allocation21_spill] sm:$0xff]  ;;  %v13191_v31 = vld [vmem:[#allocation18_spill] sm:$0xff] }
 0x359   :  { %13186 = vst [vmem:[#allocation26_spill] sm:$0xff] %v10084_v0  ;;  %v3294_v42 = vmax.f32 %v13188_v50, 0.0  ;;  %v10097_v22 = vor.u32 %v12925_v56, %v3622_v40  ;;  %v12921_v54 = vshrl.u32 %v10038_v7, 16  ;;  %v13190_v58 = vshll.u32 %v9876_v34, 16 }
 0x35a   :  { %v10090_v10 = vpack.c.bf16 %v3284_v57, %v13187_v46  ;;  %v12920_v6 = vshrl.u32 %v10044_v32, 16  ;;  %v10103_v21 = vpack.c.bf16 %v3290_v52, %v3289_v23  ;;  %v10105_v57 = vpack.c.bf16 %v3288_v17, %v3287_v62 }
 0x35b   :  { %3928 = vrot.lane.b32.xlu0 %v3865_v11, %s7560_s18  ;;  %13189 = vst [vmem:[#allocation28_spill] sm:$0xff] %v10097_v22  ;;  %v3870_v47 = vrot.slane %v13190_v58, 1  ;;  %v3868_v41 = vrot.slane %v3567_v53, 1  ;;  %v3643_v14 = vrot.slane %v12921_v54, 7  ;;  %v12923_v40 = vshll.u32 %v10038_v7, 16  ;;  %3393 = vrot.lane.b32.xlu1 %v9932_v61, %s7559_s28 }
 0x35c   :  { %v12924_v29 = vshrl.u32 %v10066_v12, 16  ;;  %v3297_v11 = vmax.f32 %v13191_v31, 0.0  ;;  %v3636_v23 = vrot.slane %v12920_v6, 7  ;;  %v12931_v62 = vshll.u32 %v10044_v32, 16 }
 0x35d   :  { %v12926_v17 = vshrl.u32 %v10072_v26, 16  ;;  %v3298_v53 = vmax.f32 %v9785_v60, 0.0  ;;  %v10125_v52 = vor.u32 %v12923_v40, %v3643_v14  ;;  %v12930_v50 = vshll.u32 %v10066_v12, 16 }
 0x35e   :  { %v3657_v46 = vrot.slane %v12924_v29, 7  ;;  %v13193_v58 = vshrl.u32 %v9876_v34, 16  ;;  %v10134_v6 = vor.u32 %v12931_v62, %v3636_v23  ;;  %v12927_v54 = vshll.u32 %v10072_v26, 16  ;;  %v242_v23 = vld [vmem:[#allocation3 + $0x10] sm:$0x1] }
 0x35f   :  { %3391 = vrot.lane.b32.xlu0 %v9934_v2, %s7559_s28  ;;  %13192 = vst [vmem:[#allocation30_spill] sm:$0xff] %v10125_v52  ;;  %v3650_v60 = vrot.slane %v12926_v17, 7  ;;  %v13195_v14 = vshrl.u32 %v9880_v63, 16  ;;  %v10145_v56 = vpack.c.bf16 %v3294_v42, %v3293_v18  ;;  %v10147_v34 = vpack.c.bf16 %v3292_v36, %v3291_v48  ;;  %v368_v52 = vld [vmem:[#allocation3 + $0x60] sm:$0x80] }
 0x360   :  { %v3871_v31 = vor.u32 %v3870_v47, %v13193_v58  ;;  %13194 = vst [vmem:[#allocation31_spill] sm:$0xff] %v10134_v6  ;;  %v10143_v29 = vor.u32 %v12930_v50, %v3657_v46  ;;  %v341_v47 = vld [vmem:[#allocation3 + $0x18] sm:$0x80]  ;;  %v3874_v58 = vrot.slane %v3588_v51, 1  ;;  %v12928_v63 = vshrl.u32 %v10086_v4, 16 }
 0x361   :  { %v3869_v40 = vor.u32 %v3868_v41, %v13195_v14  ;;  %v10154_v17 = vor.u32 %v12927_v54, %v3650_v60  ;;  %v338_v41 = vld [vmem:[#allocation3 + $0x10] sm:$0x80]  ;;  %v13198_v18 = vshll.u32 %v9904_v24, 16  ;;  %v12929_v36 = vshrl.u32 %v10090_v10, 16  ;;  %v344_v50 = vld [vmem:[#allocation3 + $0x20] sm:$0x80] }
 0x362   :  { %13196 = vst [vmem:[#allocation5_spill] sm:$0xff] %v10143_v29  ;;  %3934 = vrot.lane.b32.xlu1 %v3871_v31, %s7560_s18  ;;  %v10161_v42 = vpack.c.bf16 %v3298_v53, %v3297_v11  ;;  %v246_v31 = vsel %vm7923_vm2, 0, %v245_v19  ;;  %v3671_v51 = vrot.slane %v12928_v63, 7  ;;  %v12932_v60 = vshll.u32 %v10086_v4, 16  ;;  %v371_v29 = vld [vmem:[#allocation3 + $0x68] sm:$0x80] }
 0x363   :  { %13197 = vst [vmem:[#allocation7_spill] sm:$0xff] %v10154_v17  ;;  %3932 = vrot.lane.b32.xlu0 %v3869_v40, %s7560_s18  ;;  %v3872_v48 = vrot.slane %v13198_v18, 1  ;;  %247 = vst [vmem:[#allocation3 + $0x18] sm:$0x1] %v246_v31  ;;  %v342_v54 = vsel %vm7971_vm5, 0, %v341_v47  ;;  %v243_v40 = vsel %vm7923_vm2, 0, %v242_v23 }
 0x364   :  { %v251_v18 = vld [vmem:[#allocation3 + $0x28] sm:$0x1]  ;;  %v3664_v11 = vrot.slane %v12929_v36, 7  ;;  %v12936_v53 = vshll.u32 %v10090_v10, 16  ;;  %343 = vst [vmem:[#allocation3 + $0x18] sm:$0x80] %v342_v54  ;;  %v10182_v47 = vor.u32 %v12932_v60, %v3671_v51 }
 0x365   :  { %244 = vst [vmem:[#allocation3 + $0x10] sm:$0x1] %v243_v40  ;;  %v339_v19 = vsel %vm7971_vm5, 0, %v338_v41  ;;  %v12934_v63 = vshrl.u32 %v10103_v21, 16  ;;  %v347_v31 = vld [vmem:[#allocation3 + $0x28] sm:$0x80] }
 0x366   :  { %3397 = vrot.lane.b32.xlu1 %v9980_v49, %s7559_s28  ;;  %13201 = vst [vmem:[#allocation9_spill] sm:$0xff] %v10182_v47  ;;  %340 = vst [vmem:[#allocation3 + $0x10] sm:$0x80] %v339_v19  ;;  %v12935_v23 = vshrl.u32 %v10105_v57, 16  ;;  %v248_v36 = vld [vmem:[#allocation3 + $0x20] sm:$0x1]  ;;  %v10191_v40 = vor.u32 %v12936_v53, %v3664_v11 }
 0x367   :  { %3395 = vrot.lane.b32.xlu0 %v9987_v35, %s7559_s28  ;;  %v13202_v54 = vshrl.u32 %v9898_v16, 16  ;;  %v3685_v62 = vrot.slane %v12934_v63, 7  ;;  %v12937_v51 = vshll.u32 %v10103_v21, 16  ;;  %v252_v5 = vsel %vm7923_vm2, 0, %v251_v18  ;;  %v353_v18 = vld [vmem:[#allocation3 + $0x38] sm:$0x80] }
 0x368   :  { %13203 = vst [vmem:[#allocation11_spill] sm:$0xff] %v10191_v40  ;;  %v3678_v19 = vrot.slane %v12935_v23, 7  ;;  %v348_v16 = vsel %vm7971_vm5, 0, %v347_v31  ;;  %v13204_v11 = vshrl.u32 %v9904_v24, 16  ;;  %253 = vst [vmem:[#allocation3 + $0x28] sm:$0x1] %v252_v5 }
 0x369   :  { %v3875_v41 = vor.u32 %v3874_v58, %v13202_v54  ;;  %v257_v58 = vld [vmem:[#allocation3 + $0x38] sm:$0x1]  ;;  %v10207_v63 = vor.u32 %v12937_v51, %v3685_v62  ;;  %349 = vst [vmem:[#allocation3 + $0x28] sm:$0x80] %v348_v16  ;;  %v249_v23 = vsel %vm7923_vm2, 0, %v248_v36  ;;  %v345_v53 = vsel %vm7971_vm5, 0, %v344_v50 }
 0x36a   :  { %v3873_v54 = vor.u32 %v3872_v48, %v13204_v11  ;;  %v254_v60 = vld [vmem:[#allocation3 + $0x30] sm:$0x1]  ;;  %v13206_v40 = vld [vmem:[#allocation33_spill] sm:$0xff]  ;;  %v13207_v24 = vshll.u32 %v10105_v57, 16  ;;  %250 = vst [vmem:[#allocation3 + $0x20] sm:$0x1] %v249_v23 }
 0x36b   :  { %13205 = vst [vmem:[#allocation8_spill] sm:$0xff] %v10207_v63  ;;  %3938 = vrot.lane.b32.xlu1 %v3875_v41, %s7560_s18  ;;  %346 = vst [vmem:[#allocation3 + $0x20] sm:$0x80] %v345_v53  ;;  %v12938_v5 = vshrl.u32 %v10145_v56, 16  ;;  %v350_v62 = vld [vmem:[#allocation3 + $0x30] sm:$0x80] }
 0x36c   :  { %v10217_v48 = vor.u32 %v13207_v24, %v3678_v19  ;;  %3936 = vrot.lane.b32.xlu0 %v3873_v54, %s7560_s18  ;;  %v13209_v36 = vshll.u32 %v9932_v61, 16  ;;  %v13210_v16 = vshll.u32 %v9934_v2, 16  ;;  %v12939_v51 = vshrl.u32 %v10147_v34, 16  ;;  %v263_v19 = vld [vmem:[#allocation3 + $0x48] sm:$0x1] }
 0x36d   :  { %v258_v41 = vsel %vm7923_vm2, 0, %v257_v58  ;;  %v359_v24 = vld [vmem:[#allocation3 + $0x48] sm:$0x80]  ;;  %v3699_v53 = vrot.slane %v12938_v5, 7  ;;  %v354_v54 = vsel %vm7971_vm5, 0, %v353_v18  ;;  %v351_v5 = vsel %vm7971_vm5, 0, %v350_v62 }
 0x36e   :  { %13208 = vst [vmem:[#allocation10_spill] sm:$0xff] %v10217_v48  ;;  %v3878_v50 = vrot.slane %v13209_v36, 1  ;;  %v3876_v11 = vrot.slane %v13210_v16, 1  ;;  %259 = vst [vmem:[#allocation3 + $0x38] sm:$0x1] %v258_v41  ;;  %v255_v36 = vsel %vm7923_vm2, 0, %v254_v60 }
 0x36f   :  { %v260_v16 = vld [vmem:[#allocation3 + $0x40] sm:$0x1]  ;;  %v356_v31 = vld [vmem:[#allocation3 + $0x40] sm:$0x80]  ;;  %v3692_v48 = vrot.slane %v12939_v51, 7  ;;  %3401 = vrot.lane.b32.xlu1 %v10026_v13, %s7559_s28  ;;  %v13211_v60 = vshll.u32 %v9980_v49, 16 }
 0x370   :  { %355 = vst [vmem:[#allocation3 + $0x38] sm:$0x80] %v354_v54  ;;  %256 = vst [vmem:[#allocation3 + $0x30] sm:$0x1] %v255_v36  ;;  %v269_v23 = vld [vmem:[#allocation3 + $0x58] sm:$0x1]  ;;  %3399 = vrot.lane.b32.xlu0 %v10032_v8, %s7559_s28 }
 0x371   :  { %v3882_v18 = vrot.slane %v13211_v60, 1  ;;  %v13212_v63 = vshll.u32 %v10145_v56, 16  ;;  %352 = vst [vmem:[#allocation3 + $0x30] sm:$0x80] %v351_v5  ;;  %v365_v36 = vld [vmem:[#allocation3 + $0x58] sm:$0x80] }
 0x372   :  { %v266_v51 = vld [vmem:[#allocation3 + $0x50] sm:$0x1]  ;;  %v362_v58 = vld [vmem:[#allocation3 + $0x50] sm:$0x80]  ;;  %v10253_v62 = vld [vmem:[%s12824_s4] sm:$0x3f]  }
 0x373   :  { %v10247_v47 = vor.u32 %v13212_v63, %v3699_v53  ;;  %v13214_v60 = vshll.u32 %v9987_v35, 16  ;;  %v13215_v63 = vshll.u32 %v10147_v34, 16  ;;  %v13217_v5 = vshrl.u32 %v10161_v42, 16  ;;  %v275_v17 = vld [vmem:[#allocation3 + $0x68] sm:$0x1] }
 0x374   :  { %v272_v6 = vld [vmem:[#allocation3 + $0x60] sm:$0x1]  ;;  %v13218_v22 = vshrl.u32 %v9932_v61, 16  ;;  %v13219_v45 = vshrl.u32 %v13206_v40, 16  ;;  %v13220_v39 = vshrl.u32 %v9934_v2, 16  ;;  %v13221_v33 = vshll.u32 %v10161_v42, 16 }
 0x375   :  { %13213 = vst [vmem:[#allocation15_spill] sm:$0xff] %v10247_v47  ;;  %v3880_v41 = vrot.slane %v13214_v60, 1  ;;  %v10261_v53 = vor.u32 %v13215_v63, %v3692_v48  ;;  %v3713_v54 = vrot.slane %v13217_v5, 7  ;;  %v264_v60 = vsel %vm7923_vm2, 0, %v263_v19  ;;  %v281_v63 = vld [vmem:[#allocation3 + $0x78] sm:$0x1] }
 0x376   :  { %v3879_v0 = vor.u32 %v3878_v50, %v13218_v22  ;;  %v3706_v38 = vrot.slane %v13219_v45, 7  ;;  %v360_v48 = vsel %vm7971_vm5, 0, %v359_v24  ;;  %v377_v5 = vld [vmem:[#allocation3 + $0x78] sm:$0x80]  ;;  %v374_v47 = vld [vmem:[#allocation3 + $0x70] sm:$0x80]  ;;  %v3877_v28 = vor.u32 %v3876_v11, %v13220_v39 }
 0x377   :  { %13216 = vst [vmem:[#allocation17_spill] sm:$0xff] %v10261_v53  ;;  %v278_v53 = vld [vmem:[#allocation3 + $0x70] sm:$0x1]  ;;  %v10278_v61 = vor.u32 %v13221_v33, %v3713_v54  ;;  %265 = vst [vmem:[#allocation3 + $0x48] sm:$0x1] %v264_v60  ;;  %v261_v45 = vsel %vm7923_vm2, 0, %v260_v16 }
 0x378   :  { %361 = vst [vmem:[#allocation3 + $0x48] sm:$0x80] %v360_v48  ;;  %v357_v22 = vsel %vm7971_vm5, 0, %v356_v31  ;;  %v287_v50 = vld [vmem:[#allocation3 + $0x88] sm:$0x1]  ;;  %3942 = vrot.lane.b32.xlu1 %v3879_v0, %s7560_s18  ;;  %v13222_v2 = vshrl.u32 %v9980_v49, 16  ;;  %3940 = vrot.lane.b32.xlu0 %v3877_v28, %s7560_s18 }
 0x379   :  { %v383_v19 = vld [vmem:[#allocation3 + $0x88] sm:$0x80]  ;;  %v284_v24 = vld [vmem:[#allocation3 + $0x80] sm:$0x1]  ;;  %v13223_v33 = vshll.u32 %v13206_v40, 16  ;;  %v4278_v16 = vsel %vm1573_vm6, %v9846_v43, 0 }
 0x37a   :  { %v10287_v39 = vor.u32 %v3882_v18, %v13222_v2  ;;  %262 = vst [vmem:[#allocation3 + $0x40] sm:$0x1] %v261_v45  ;;  %358 = vst [vmem:[#allocation3 + $0x40] sm:$0x80] %v357_v22  ;;  %v270_v31 = vsel %vm7923_vm2, 0, %v269_v23  ;;  %v13224_v49 = vshrl.u32 %v9987_v35, 16  ;;  %7055 = vmatpush3.bf16.msra.mxu1 %v4278_v16 }
 0x37b   :  { %v10291_v11 = vor.u32 %v13223_v33, %v3706_v38  ;;  %v293_v54 = vld [vmem:[#allocation3 + $0x98] sm:$0x1]  ;;  %v389_v60 = vld [vmem:[#allocation3 + $0x98] sm:$0x80]  ;;  %v290_v48 = vld [vmem:[#allocation3 + $0x90] sm:$0x1]  ;;  %7512 = vmatprep.subr.msk.bf16.mxu1 %vm1573_vm6, %v10253_v62 }
 0x37c   :  { %v386_v0 = vld [vmem:[#allocation3 + $0x90] sm:$0x80]  ;;  %v10300_v18 = vor.u32 %v3880_v41, %v13224_v49  ;;  %271 = vst [vmem:[#allocation3 + $0x58] sm:$0x1] %v270_v31  ;;  %v366_v38 = vsel %vm7971_vm5, 0, %v365_v36  ;;  %v267_v43 = vsel %vm7923_vm2, 0, %v266_v51  ;;  %3405 = vrot.lane.b32.xlu1 %v10038_v7, %s7559_s28  ;;  %3403 = vrot.lane.b32.xlu0 %v10044_v32, %s7559_s28 }
 0x37d   :  { %v363_v23 = vsel %vm7971_vm5, 0, %v362_v58  ;;  %v299_v45 = vld [vmem:[#allocation3 + $0xa8] sm:$0x1]  ;;  %v395_v22 = vld [vmem:[#allocation3 + $0xa8] sm:$0x80]  ;;  %v276_v28 = vsel %vm7923_vm2, 0, %v275_v17 }
 0x37e   :  { %v296_v2 = vld [vmem:[#allocation3 + $0xa0] sm:$0x1]  ;;  %v392_v33 = vld [vmem:[#allocation3 + $0xa0] sm:$0x80]  ;;  %367 = vst [vmem:[#allocation3 + $0x58] sm:$0x80] %v366_v38 }
 0x37f   :  { %268 = vst [vmem:[#allocation3 + $0x50] sm:$0x1] %v267_v43  ;;  %364 = vst [vmem:[#allocation3 + $0x50] sm:$0x80] %v363_v23  ;;  %v372_v35 = vsel %vm7971_vm5, 0, %v371_v29  ;;  %v273_v51 = vsel %vm7923_vm2, 0, %v272_v6 }
 0x380   :  { %v369_v58 = vsel %vm7971_vm5, 0, %v368_v52  ;;  %v305_v41 = vld [vmem:[#allocation3 + $0xb8] sm:$0x1]  ;;  %v401_v36 = vld [vmem:[#allocation3 + $0xb8] sm:$0x80]  ;;  %v282_v17 = vsel %vm7923_vm2, 0, %v281_v63  ;;  %3946 = vrot.lane.b32.xlu1 %v10287_v39, %s7560_s18  ;;  %3944 = vrot.lane.b32.xlu0 %v10300_v18, %s7560_s18 }
 0x381   :  { %v302_v16 = vld [vmem:[#allocation3 + $0xb0] sm:$0x1]  ;;  %v398_v31 = vld [vmem:[#allocation3 + $0xb0] sm:$0x80]  ;;  %277 = vst [vmem:[#allocation3 + $0x68] sm:$0x1] %v276_v28 }
 0x382   :  { %373 = vst [vmem:[#allocation3 + $0x68] sm:$0x80] %v372_v35  ;;  %274 = vst [vmem:[#allocation3 + $0x60] sm:$0x1] %v273_v51  ;;  %v378_v29 = vsel %vm7971_vm5, 0, %v377_v5  ;;  %v279_v6 = vsel %vm7923_vm2, 0, %v278_v53 }
 0x383   :  { %370 = vst [vmem:[#allocation3 + $0x60] sm:$0x80] %v369_v58  ;;  %v375_v52 = vsel %vm7971_vm5, 0, %v374_v47  ;;  %v311_v49 = vld [vmem:[#allocation3 + $0xc8] sm:$0x1]  ;;  %v288_v63 = vsel %vm7923_vm2, 0, %v287_v50 }
 0x384   :  { %v407_v38 = vld [vmem:[#allocation3 + $0xc8] sm:$0x80]  ;;  %v308_v43 = vld [vmem:[#allocation3 + $0xc0] sm:$0x1]  ;;  %283 = vst [vmem:[#allocation3 + $0x78] sm:$0x1] %v282_v17  ;;  %3409 = vrot.lane.b32.xlu1 %v10066_v12, %s7559_s28  ;;  %3407 = vrot.lane.b32.xlu0 %v10072_v26, %s7559_s28 }
 0x385   :  { %379 = vst [vmem:[#allocation3 + $0x78] sm:$0x80] %v378_v29  ;;  %280 = vst [vmem:[#allocation3 + $0x70] sm:$0x1] %v279_v6  ;;  %v384_v5 = vsel %vm7971_vm5, 0, %v383_v19  ;;  %v285_v53 = vsel %vm7923_vm2, 0, %v284_v24 }
 0x386   :  { %376 = vst [vmem:[#allocation3 + $0x70] sm:$0x80] %v375_v52  ;;  %v381_v47 = vsel %vm7971_vm5, 0, %v380_v27  ;;  %v404_v23 = vld [vmem:[#allocation3 + $0xc0] sm:$0x80]  ;;  %v294_v50 = vsel %vm7923_vm2, 0, %v293_v54 }
 0x387   :  { %289 = vst [vmem:[#allocation3 + $0x88] sm:$0x1] %v288_v63  ;;  %385 = vst [vmem:[#allocation3 + $0x88] sm:$0x80] %v384_v5  ;;  %v390_v19 = vsel %vm7971_vm5, 0, %v389_v60  ;;  %v291_v24 = vsel %vm7923_vm2, 0, %v290_v48 }
 0x388   :  { %286 = vst [vmem:[#allocation3 + $0x80] sm:$0x1] %v285_v53  ;;  %382 = vst [vmem:[#allocation3 + $0x80] sm:$0x80] %v381_v47  ;;  %v387_v27 = vsel %vm7971_vm5, 0, %v386_v0  ;;  %v300_v35 = vsel %vm7923_vm2, 0, %v299_v45 }
 0x389   :  { %v317_v28 = vld [vmem:[#allocation3 + $0xd8] sm:$0x1]  ;;  %295 = vst [vmem:[#allocation3 + $0x98] sm:$0x1] %v294_v50  ;;  %391 = vst [vmem:[#allocation3 + $0x98] sm:$0x80] %v390_v19 }
 0x38a   :  { %292 = vst [vmem:[#allocation3 + $0x90] sm:$0x1] %v291_v24  ;;  %388 = vst [vmem:[#allocation3 + $0x90] sm:$0x80] %v387_v27  ;;  %v396_v54 = vsel %vm7971_vm5, 0, %v395_v22  ;;  %v297_v60 = vsel %vm7923_vm2, 0, %v296_v2 }
 0x38b   :  { %v393_v48 = vsel %vm7971_vm5, 0, %v392_v33  ;;  %v413_v51 = vld [vmem:[#allocation3 + $0xd8] sm:$0x80]  ;;  %301 = vst [vmem:[#allocation3 + $0xa8] sm:$0x1] %v300_v35  ;;  %v306_v0 = vsel %vm7923_vm2, 0, %v305_v41 }
 0x38c   :  { %397 = vst [vmem:[#allocation3 + $0xa8] sm:$0x80] %v396_v54  ;;  %298 = vst [vmem:[#allocation3 + $0xa0] sm:$0x1] %v297_v60  ;;  %v402_v45 = vsel %vm7971_vm5, 0, %v401_v36  ;;  %v303_v22 = vsel %vm7923_vm2, 0, %v302_v16 }
 0x38d   :  { %394 = vst [vmem:[#allocation3 + $0xa0] sm:$0x80] %v393_v48  ;;  %v399_v2 = vsel %vm7971_vm5, 0, %v398_v31  ;;  %v314_v58 = vld [vmem:[#allocation3 + $0xd0] sm:$0x1]  ;;  %v312_v33 = vsel %vm7923_vm2, 0, %v311_v49 }
 0x38e   :  { %307 = vst [vmem:[#allocation3 + $0xb8] sm:$0x1] %v306_v0  ;;  %403 = vst [vmem:[#allocation3 + $0xb8] sm:$0x80] %v402_v45  ;;  %v408_v41 = vsel %vm7971_vm5, 0, %v407_v38  ;;  %v309_v36 = vsel %vm7923_vm2, 0, %v308_v43 }
 0x38f   :  { %304 = vst [vmem:[#allocation3 + $0xb0] sm:$0x1] %v303_v22  ;;  %400 = vst [vmem:[#allocation3 + $0xb0] sm:$0x80] %v399_v2  ;;  %v405_v16 = vsel %vm7971_vm5, 0, %v404_v23  ;;  %v318_v39 = vsel %vm7923_vm2, 0, %v317_v28 }
 0x390   :  { %v410_v31 = vld [vmem:[#allocation3 + $0xd0] sm:$0x80]  ;;  %313 = vst [vmem:[#allocation3 + $0xc8] sm:$0x1] %v312_v33  ;;  %409 = vst [vmem:[#allocation3 + $0xc8] sm:$0x80] %v408_v41 }
 0x391   :  { %310 = vst [vmem:[#allocation3 + $0xc0] sm:$0x1] %v309_v36  ;;  %406 = vst [vmem:[#allocation3 + $0xc0] sm:$0x80] %v405_v16  ;;  %v414_v17 = vsel %vm7971_vm5, 0, %v413_v51  ;;  %v315_v29 = vsel %vm7923_vm2, 0, %v314_v58 }
 0x392   :  { %v411_v6 = vsel %vm7971_vm5, 0, %v410_v31  ;;  %v13225_v52 = vshll.u32 %v10026_v13, 16  ;;  %319 = vst [vmem:[#allocation3 + $0xd8] sm:$0x1] %v318_v39  ;;  %415 = vst [vmem:[#allocation3 + $0xd8] sm:$0x80] %v414_v17 }
 0x393   :  { %316 = vst [vmem:[#allocation3 + $0xd0] sm:$0x1] %v315_v29  ;;  %412 = vst [vmem:[#allocation3 + $0xd0] sm:$0x80] %v411_v6  ;;  %v13226_v18 = vshll.u32 %v10032_v8, 16  ;;  %v13227_v5 = vshrl.u32 %v10026_v13, 16 }
 0x394   :  { %v3886_v49 = vrot.slane %v13225_v52, 1  ;;  %v323_v43 = vld [vmem:[#allocation3 + $0xe8] sm:$0x1]  ;;  %v419_v63 = vld [vmem:[#allocation3 + $0xe8] sm:$0x80]  ;;  %v13228_v50 = vshrl.u32 %v10032_v8, 16 }
 0x395   :  { %v3884_v38 = vrot.slane %v13226_v18, 1  ;;  %v324_v47 = vsel %vm7923_vm2, 0, %v323_v43  ;;  %v420_v23 = vsel %vm7971_vm5, 0, %v419_v63  ;;  %v320_v24 = vld [vmem:[#allocation3 + $0xe0] sm:$0x1]  ;;  %v13229_v35 = vshll.u32 %v10038_v7, 16  ;;  %v3366_v18 = vpop.permute.xlu1 %3365 }
 0x396   :  { %v3887_v53 = vor.u32 %v3886_v49, %v13227_v5  ;;  %325 = vst [vmem:[#allocation3 + $0xe8] sm:$0x1] %v324_v47  ;;  %421 = vst [vmem:[#allocation3 + $0xe8] sm:$0x80] %v420_v23  ;;  %v416_v27 = vld [vmem:[#allocation3 + $0xe0] sm:$0x80] }
 0x397   :  { %v3885_v19 = vor.u32 %v3884_v38, %v13228_v50  ;;  %v321_v28 = vsel %vm7923_vm2, 0, %v320_v24  ;;  %v417_v13 = vsel %vm7971_vm5, 0, %v416_v27  ;;  %v3890_v8 = vrot.slane %v13229_v35, 1  ;;  %v329_v48 = vld [vmem:[#allocation3 + $0xf8] sm:$0x1]  ;;  %3462 = vst.msk [vmem:[#allocation3 + $0x18] sm:$0xff] %vm754_vm7, %v3366_v18 }
 0x398   :  { %3950 = vrot.lane.b32.xlu1 %v3887_v53, %s7560_s18  ;;  %322 = vst [vmem:[#allocation3 + $0xe0] sm:$0x1] %v321_v28  ;;  %418 = vst [vmem:[#allocation3 + $0xe0] sm:$0x80] %v417_v13  ;;  %v13230_v54 = vshll.u32 %v10044_v32, 16  ;;  %v13231_v0 = vshrl.u32 %v10038_v7, 16 }
 0x399   :  { %3948 = vrot.lane.b32.xlu0 %v3885_v19, %s7560_s18  ;;  %v425_v51 = vld [vmem:[#allocation3 + $0xf8] sm:$0x80]  ;;  %v330_v22 = vsel %vm7923_vm2, 0, %v329_v48  ;;  %v13232_v58 = vshrl.u32 %v10044_v32, 16  ;;  %v326_v41 = vld [vmem:[#allocation3 + $0xf0] sm:$0x1] }
 0x39a   :  { %v3888_v60 = vrot.slane %v13230_v54, 1  ;;  %v3891_v45 = vor.u32 %v3890_v8, %v13231_v0  ;;  %v426_v2 = vsel %vm7971_vm5, 0, %v425_v51  ;;  %331 = vst [vmem:[#allocation3 + $0xf8] sm:$0x1] %v330_v22  ;;  %v422_v36 = vld [vmem:[#allocation3 + $0xf0] sm:$0x80] }
 0x39b   :  { %427 = vst [vmem:[#allocation3 + $0xf8] sm:$0x80] %v426_v2  ;;  %v327_v16 = vsel %vm7923_vm2, 0, %v326_v41  ;;  %v423_v7 = vsel %vm7971_vm5, 0, %v422_v36  ;;  %v13233_v31 = vshll.u32 %v10066_v12, 16  ;;  %v13234_v39 = vshll.u32 %v10072_v26, 16 }
 0x39c   :  { %3413 = vrot.lane.b32.xlu1 %v10086_v4, %s7559_s28  ;;  %v3889_v33 = vor.u32 %v3888_v60, %v13232_v58  ;;  %328 = vst [vmem:[#allocation3 + $0xf0] sm:$0x1] %v327_v16  ;;  %424 = vst [vmem:[#allocation3 + $0xf0] sm:$0x80] %v423_v7  ;;  %v335_v29 = vld [vmem:[#allocation3 + $0x108] sm:$0x1] }
 0x39d   :  { %3411 = vrot.lane.b32.xlu0 %v10090_v10, %s7559_s28  ;;  %v3894_v32 = vrot.slane %v13233_v31, 1  ;;  %v3892_v17 = vrot.slane %v13234_v39, 1  ;;  %v431_v6 = vld [vmem:[#allocation3 + $0x108] sm:$0x80]  ;;  %v13235_v52 = vshrl.u32 %v10066_v12, 16  ;;  %v336_v38 = vsel %vm7923_vm2, 0, %v335_v29 }
 0x39e   :  { %v432_v43 = vsel %vm7971_vm5, 0, %v431_v6  ;;  %v13236_v63 = vshrl.u32 %v10072_v26, 16  ;;  %337 = vst [vmem:[#allocation3 + $0x108] sm:$0x1] %v336_v38  ;;  %v332_v53 = vld [vmem:[#allocation3 + $0x100] sm:$0x1] }
 0x39f   :  { %v3895_v49 = vor.u32 %v3894_v32, %v13235_v52  ;;  %433 = vst [vmem:[#allocation3 + $0x108] sm:$0x80] %v432_v43  ;;  %v428_v47 = vld [vmem:[#allocation3 + $0x100] sm:$0x80]  ;;  %v333_v12 = vsel %vm7923_vm2, 0, %v332_v53  ;;  %v13237_v26 = vshll.u32 %v10086_v4, 16 }
 0x3a0   :  { %3954 = vrot.lane.b32.xlu1 %v3891_v45, %s7560_s18  ;;  %v3893_v5 = vor.u32 %v3892_v17, %v13236_v63  ;;  %v429_v23 = vsel %vm7971_vm5, 0, %v428_v47  ;;  %334 = vst [vmem:[#allocation3 + $0x100] sm:$0x1] %v333_v12  ;;  %v13238_v19 = vshll.u32 %v10090_v10, 16  ;;  %v13239_v46 = vshrl.u32 %v10086_v4, 16  ;;  %v3755_v52 = vld [vmem:[#allocation3 + $0x18] sm:$0xff] }
 0x3a1   :  { %3952 = vrot.lane.b32.xlu0 %v3889_v33, %s7560_s18  ;;  %430 = vst [vmem:[#allocation3 + $0x100] sm:$0x80] %v429_v23  ;;  %v3898_v50 = vrot.slane %v13237_v26, 1  ;;  %v13240_v27 = vshrl.u32 %v10090_v10, 16  ;;  %v13241_v13 = vshll.u32 %v10103_v21, 16  ;;  %v13242_v8 = vshll.u32 %v10105_v57, 16  ;;  %v3364_v60 = vpop.permute.xlu0 %3363  ;;  %v3370_v58 = vpop.permute.xlu1 %3369 }
 0x3a2   :  { %v3896_v24 = vrot.slane %v13238_v19, 1  ;;  %3461 = vst.msk [vmem:[#allocation3 + $0x10] sm:$0xff] %vm754_vm7, %v3364_v60  ;;  %v13243_v4 = vshrl.u32 %v10103_v21, 16  ;;  %v13244_v48 = vshll.u32 %v10145_v56, 16  ;;  %v13245_v0 = vshrl.u32 %v10105_v57, 16  ;;  %3464 = vst.msk [vmem:[#allocation3 + $0x28] sm:$0xff] %vm754_vm7, %v3370_v58 }
 0x3a3   :  { %v3899_v14 = vor.u32 %v3898_v50, %v13239_v46  ;;  %v3902_v35 = vrot.slane %v13241_v13, 1  ;;  %v3900_v54 = vrot.slane %v13242_v8, 1  ;;  %v13246_v22 = vshll.u32 %v10147_v34, 16  ;;  %v13255_v53 = vld [vmem:[#allocation20_spill] sm:$0xff] }
 0x3a4   :  { %3417 = vrot.lane.b32.xlu1 %v10103_v21, %s7559_s28  ;;  %v3897_v28 = vor.u32 %v3896_v24, %v13240_v27  ;;  %v3906_v51 = vrot.slane %v13244_v48, 1  ;;  %v13247_v33 = vshrl.u32 %v10145_v56, 16  ;;  %v13248_v21 = vshll.u32 %v10161_v42, 16 }
 0x3a5   :  { %3415 = vrot.lane.b32.xlu0 %v10105_v57, %s7559_s28  ;;  %v3903_v10 = vor.u32 %v3902_v35, %v13243_v4  ;;  %v3901_v45 = vor.u32 %v3900_v54, %v13245_v0  ;;  %v3904_v2 = vrot.slane %v13246_v22, 1  ;;  %v3368_v16 = vpop.permute.xlu0 %3367  ;;  %v13249_v57 = vshrl.u32 %v10147_v34, 16 }
 0x3a6   :  { %v3907_v41 = vor.u32 %v3906_v51, %v13247_v33  ;;  %v3910_v36 = vrot.slane %v13248_v21, 1  ;;  %v13250_v31 = vshll.u32 %v13206_v40, 16  ;;  %3463 = vst.msk [vmem:[#allocation3 + $0x20] sm:$0xff] %vm754_vm7, %v3368_v16  ;;  %v13251_v39 = vshrl.u32 %v10161_v42, 16 }
 0x3a7   :  { %v3905_v7 = vor.u32 %v3904_v2, %v13249_v57  ;;  %v13252_v6 = vshrl.u32 %v13206_v40, 16  ;;  %v4671_v12 = vsel %vm1573_vm6, %v10253_v62, 0 }
 0x3a8   :  { %3958 = vrot.lane.b32.xlu1 %v3895_v49, %s7560_s18  ;;  %v3908_v32 = vrot.slane %v13250_v31, 1  ;;  %v3911_v17 = vor.u32 %v3910_v36, %v13251_v39 }
 0x3a9   :  { %3956 = vrot.lane.b32.xlu0 %v3893_v5, %s7560_s18  ;;  %v3372_v29 = vpop.permute.xlu0 %3371  ;;  %v3752_v49 = vld [vmem:[#allocation3 + $0x10] sm:$0xff]  ;;  %v3761_v50 = vld [vmem:[#allocation3 + $0x28] sm:$0xff] }
 0x3aa   :  { %3465 = vst.msk [vmem:[#allocation3 + $0x30] sm:$0xff] %vm754_vm7, %v3372_v29  ;;  %v3762_v19 = vsel %vm8351_vm13, %v9835_v25, %v3761_v50 }
 0x3ac   :  { %3421 = vrot.lane.b32.xlu1 %v10145_v56, %s7559_s28  ;;  %v3374_v56 = vpop.permute.xlu1 %3373 }
 0x3ad   :  { %3419 = vrot.lane.b32.xlu0 %v10147_v34, %s7559_s28  ;;  %3466 = vst.msk [vmem:[#allocation3 + $0x38] sm:$0xff] %vm754_vm7, %v3374_v56  ;;  %v3909_v34 = vor.u32 %v3908_v32, %v13252_v6  ;;  %v3913_v5 = vpop.permute.xlu0 %3912  ;;  %v3758_v62 = vld [vmem:[#allocation3 + $0x20] sm:$0xff] }
 0x3b0   :  { %3962 = vrot.lane.b32.xlu1 %v3899_v14, %s7560_s18  ;;  %v3915_v18 = vpop.permute.xlu1 %3914  ;;  %v3759_v14 = vsel %vm8351_vm13, %v9849_v37, %v3758_v62 }
 0x3b1   :  { %3960 = vrot.lane.b32.xlu0 %v3897_v28, %s7560_s18  ;;  %v3376_v26 = vpop.permute.xlu0 %3375  ;;  %v3764_v35 = vld [vmem:[#allocation3 + $0x30] sm:$0xff] }
 0x3b2   :  { %3467 = vst.msk [vmem:[#allocation3 + $0x40] sm:$0xff] %vm754_vm7, %v3376_v26  ;;  %v3765_v4 = vsel %vm8351_vm13, %v9874_v59, %v3764_v35 }
 0x3b4   :  { %3425 = vrot.lane.b32.xlu1 %v10161_v42, %s7559_s28  ;;  %v3756_v42 = vsel %vm8351_vm13, %v9815_v30, %v3755_v52  ;;  %v10519_v30 = vld [vmem:[%s12824_s4 + $0x10] sm:$0x3f]   ;;  %v3378_v23 = vpop.permute.xlu1 %3377  ;;  %v3767_v37 = vld [vmem:[#allocation3 + $0x38] sm:$0xff] }
 0x3b5   :  { %3423 = vrot.lane.b32.xlu0 %v13206_v40, %s7559_s28  ;;  %v4015_v63 = vsel %vm8357_vm14, %v3915_v18, %v3756_v42  ;;  %v3753_v40 = vsel %vm8351_vm13, %v13255_v53, %v3752_v49  ;;  %3468 = vst.msk [vmem:[#allocation3 + $0x48] sm:$0xff] %vm754_vm7, %v3378_v23  ;;  %v3917_v27 = vpop.permute.xlu0 %3916  ;;  %v3768_v8 = vsel %vm8351_vm13, %v9867_v9, %v3767_v37  ;;  %v13257_v23 = vld [vmem:[#allocation24_spill] sm:$0xff]  ;;  %v5100_v38 = vsel %vm1573_vm6, %v10519_v30, 0 }
 0x3b6   :  { %4016 = vst [vmem:[#allocation3 + $0x18] sm:$0xff] %v4015_v63  ;;  %v10512_v47 = vsel %vm8357_vm14, %v3913_v5, %v3753_v40  ;;  %v10542_v28 = vsel %vm8357_vm14, %v3917_v27, %v3759_v14  ;;  %v13256_v5 = vld [vmem:[#allocation22_spill] sm:$0xff] }
 0x3b7   :  { %4013 = vst [vmem:[#allocation3 + $0x10] sm:$0xff] %v10512_v47  ;;  %7056 = vmatprep.mubr.msk.bf16.mxu1 %vm31_vm12, %v10512_v47  ;;  %4019 = vst [vmem:[#allocation3 + $0x20] sm:$0xff] %v10542_v28 }
 0x3b8   :  { %3966 = vrot.lane.b32.xlu1 %v3903_v10, %s7560_s18  ;;  %7057 = vmatmul.mubr.msk.bf16.vlgmr.msra.gmra.mrb[0].mxu1 %vm31_vm12, %v4015_v63  ;;  %v3919_v24 = vpop.permute.xlu1 %3918 }
 0x3b9   :  { %3964 = vrot.lane.b32.xlu0 %v3901_v45, %s7560_s18  ;;  %7121 = vmatpush3.bf16.msra.mxu1 %v4671_v12  ;;  %v10534_v46 = vsel %vm8357_vm14, %v3919_v24, %v3762_v19  ;;  %v3380_v13 = vpop.permute.xlu0 %3379  ;;  %v3770_v0 = vld [vmem:[#allocation3 + $0x40] sm:$0xff] }
 0x3ba   :  { %7513 = vmatprep.subr.msk.bf16.mxu1 %vm1573_vm6, %v10519_v30  ;;  %4022 = vst [vmem:[#allocation3 + $0x28] sm:$0xff] %v10534_v46  ;;  %7060 = vmatprep.mubr.msk.bf16.mxu1 %vm31_vm12, %v10542_v28  ;;  %3469 = vst.msk [vmem:[#allocation3 + $0x50] sm:$0xff] %vm754_vm7, %v3380_v13  ;;  %v3771_v58 = vsel %vm8351_vm13, %v9902_v20, %v3770_v0 }
 0x3bc   :  { %3970 = vrot.lane.b32.xlu1 %v3907_v41, %s7560_s18  ;;  %v3382_v25 = vpop.permute.xlu1 %3381  ;;  %v3773_v59 = vld [vmem:[#allocation3 + $0x48] sm:$0xff] }
 0x3bd   :  { %3968 = vrot.lane.b32.xlu0 %v3905_v7, %s7560_s18  ;;  %3470 = vst.msk [vmem:[#allocation3 + $0x58] sm:$0xff] %vm754_vm7, %v3382_v25  ;;  %v3921_v10 = vpop.permute.xlu0 %3920  ;;  %v3774_v45 = vsel %vm8351_vm13, %v9889_v1, %v3773_v59  ;;  %v13258_v25 = vld [vmem:[#allocation23_spill] sm:$0xff] }
 0x3be   :  { %v10564_v48 = vsel %vm8357_vm14, %v3921_v10, %v3765_v4  ;;  %v4110_v43 = vld [vmem:[#allocation3 + $0x18] sm:$0xff] }
 0x3bf   :  { %4025 = vst [vmem:[#allocation3 + $0x30] sm:$0xff] %v10564_v48 }
 0x3c0   :  { %3974 = vrot.lane.b32.xlu1 %v3911_v17, %s7560_s18  ;;  %7061 = vmatmul.mubr.msk.bf16.gmra.mrb[4].mxu1 %vm31_vm12, %v10534_v46  ;;  %v3923_v54 = vpop.permute.xlu1 %3922 }
 0x3c1   :  { %3972 = vrot.lane.b32.xlu0 %v3909_v34, %s7560_s18  ;;  %v10556_v60 = vsel %vm8357_vm14, %v3923_v54, %v3768_v8  ;;  %7064 = vmatprep.mubr.msk.bf16.mxu1 %vm31_vm12, %v10564_v48  ;;  %v3384_v51 = vpop.permute.xlu0 %3383  ;;  %v3776_v36 = vld [vmem:[#allocation3 + $0x50] sm:$0xff]  ;;  %v13259_v8 = vld [vmem:[#allocation25_spill] sm:$0xff] }
 0x3c2   :  { %4028 = vst [vmem:[#allocation3 + $0x38] sm:$0xff] %v10556_v60  ;;  %3471 = vst.msk [vmem:[#allocation3 + $0x60] sm:$0xff] %vm754_vm7, %v3384_v51  ;;  %v3777_v31 = vsel %vm8351_vm13, %v9930_v3, %v3776_v36  ;;  %v4964_v30 = vld [vmem:[#allocation3 + $0x28] sm:$0xff] }
 0x3c4   :  { %v3386_v9 = vpop.permute.xlu1 %3385  ;;  %v3779_v20 = vld [vmem:[#allocation3 + $0x58] sm:$0xff] }
 0x3c5   :  { %3472 = vst.msk [vmem:[#allocation3 + $0x68] sm:$0xff] %vm754_vm7, %v3386_v9  ;;  %v3925_v33 = vpop.permute.xlu0 %3924  ;;  %v3780_v16 = vsel %vm8351_vm13, %v9919_v55, %v3779_v20 }
 0x3c6   :  { %v10586_v41 = vsel %vm8357_vm14, %v3925_v33, %v3771_v58 }
 0x3c7   :  { %4031 = vst [vmem:[#allocation3 + $0x40] sm:$0xff] %v10586_v41 }
 0x3c8   :  { %7065 = vmatmul.mubr.msk.bf16.gmra.mrb[8].mxu1 %vm31_vm12, %v10556_v60  ;;  %v3927_v22 = vpop.permute.xlu1 %3926 }
 0x3c9   :  { %v10578_v2 = vsel %vm8357_vm14, %v3927_v22, %v3774_v45  ;;  %7068 = vmatprep.mubr.msk.bf16.mxu1 %vm31_vm12, %v10586_v41  ;;  %v3388_v21 = vpop.permute.xlu0 %3387  ;;  %v3782_v17 = vld [vmem:[#allocation3 + $0x60] sm:$0xff]  ;;  %v13260_v45 = vld [vmem:[#allocation27_spill] sm:$0xff] }
 0x3ca   :  { %4034 = vst [vmem:[#allocation3 + $0x48] sm:$0xff] %v10578_v2  ;;  %3473 = vst.msk [vmem:[#allocation3 + $0x70] sm:$0xff] %vm754_vm7, %v3388_v21  ;;  %v3783_v52 = vsel %vm8351_vm13, %v9963_v44, %v3782_v17 }
 0x3cc   :  { %v3390_v1 = vpop.permute.xlu1 %3389  ;;  %v3785_v3 = vld [vmem:[#allocation3 + $0x68] sm:$0xff] }
 0x3cd   :  { %3474 = vst.msk [vmem:[#allocation3 + $0x78] sm:$0xff] %vm754_vm7, %v3390_v1  ;;  %v3929_v32 = vpop.permute.xlu0 %3928  ;;  %v3786_v29 = vsel %vm8351_vm13, %v9948_v15, %v3785_v3  ;;  %v13261_v1 = vld [vmem:[#allocation29_spill] sm:$0xff] }
 0x3ce   :  { %v10608_v56 = vsel %vm8357_vm14, %v3929_v32, %v3777_v31 }
 0x3cf   :  { %4037 = vst [vmem:[#allocation3 + $0x50] sm:$0xff] %v10608_v56 }
 0x3d0   :  { %7069 = vmatmul.mubr.msk.bf16.gmra.mrb[12].mxu1 %vm31_vm12, %v10578_v2  ;;  %v3931_v57 = vpop.permute.xlu1 %3930 }
 0x3d1   :  { %v10600_v7 = vsel %vm8357_vm14, %v3931_v57, %v3780_v16  ;;  %7072 = vmatprep.mubr.msk.bf16.mxu1 %vm31_vm12, %v10608_v56  ;;  %v3392_v39 = vpop.permute.xlu0 %3391  ;;  %v3788_v63 = vld [vmem:[#allocation3 + $0x70] sm:$0xff] }
 0x3d2   :  { %4040 = vst [vmem:[#allocation3 + $0x58] sm:$0xff] %v10600_v7  ;;  %3475 = vst.msk [vmem:[#allocation3 + $0x80] sm:$0xff] %vm754_vm7, %v3392_v39  ;;  %v3789_v26 = vsel %vm8351_vm13, %v13257_v23, %v3788_v63 }
 0x3d4   :  { %v3394_v55 = vpop.permute.xlu1 %3393  ;;  %v3791_v44 = vld [vmem:[#allocation3 + $0x78] sm:$0xff] }
 0x3d5   :  { %3476 = vst.msk [vmem:[#allocation3 + $0x88] sm:$0xff] %vm754_vm7, %v3394_v55  ;;  %v3933_v49 = vpop.permute.xlu0 %3932  ;;  %v3792_v53 = vsel %vm8351_vm13, %v13256_v5, %v3791_v44  ;;  %v13262_v55 = vld [vmem:[#allocation26_spill] sm:$0xff] }
 0x3d6   :  { %v10630_v18 = vsel %vm8357_vm14, %v3933_v49, %v3783_v52  ;;  %v13264_v5 = vld [vmem:[#allocation30_spill] sm:$0xff] }
 0x3d7   :  { %4043 = vst [vmem:[#allocation3 + $0x60] sm:$0xff] %v10630_v18 }
 0x3d8   :  { %7073 = vmatmul.mubr.msk.bf16.gmra.mrb[16].mxu1 %vm31_vm12, %v10600_v7  ;;  %v3935_v6 = vpop.permute.xlu1 %3934 }
 0x3d9   :  { %v10622_v34 = vsel %vm8357_vm14, %v3935_v6, %v3786_v29  ;;  %7076 = vmatprep.mubr.msk.bf16.mxu1 %vm31_vm12, %v10630_v18  ;;  %v3396_v42 = vpop.permute.xlu0 %3395  ;;  %v3794_v27 = vld [vmem:[#allocation3 + $0x80] sm:$0xff] }
 0x3da   :  { %4046 = vst [vmem:[#allocation3 + $0x68] sm:$0xff] %v10622_v34  ;;  %3477 = vst.msk [vmem:[#allocation3 + $0x90] sm:$0xff] %vm754_vm7, %v3396_v42  ;;  %v3795_v54 = vsel %vm8351_vm13, %v13259_v8, %v3794_v27  ;;  %v13263_v29 = vld [vmem:[#allocation28_spill] sm:$0xff] }
 0x3dc   :  { %v3398_v15 = vpop.permute.xlu1 %3397  ;;  %v3797_v14 = vld [vmem:[#allocation3 + $0x88] sm:$0xff] }
 0x3dd   :  { %3478 = vst.msk [vmem:[#allocation3 + $0x98] sm:$0xff] %vm754_vm7, %v3398_v15  ;;  %v3798_v13 = vsel %vm8351_vm13, %v13258_v25, %v3797_v14 }
 0x3de   :  { %v3937_v50 = vpop.permute.xlu0 %3936 }
 0x3df   :  { %v10652_v62 = vsel %vm8357_vm14, %v3937_v50, %v3789_v26  ;;  %v13265_v26 = vld [vmem:[#allocation31_spill] sm:$0xff] }
 0x3e0   :  { %7077 = vmatmul.mubr.msk.bf16.gmra.mrb[20].mxu1 %vm31_vm12, %v10622_v34  ;;  %v3939_v40 = vpop.permute.xlu1 %3938  ;;  %4049 = vst [vmem:[#allocation3 + $0x70] sm:$0xff] %v10652_v62 }
 0x3e1   :  { %v10644_v12 = vsel %vm8357_vm14, %v3939_v40, %v3792_v53  ;;  %7080 = vmatprep.mubr.msk.bf16.mxu1 %vm31_vm12, %v10652_v62  ;;  %v3800_v0 = vld [vmem:[#allocation3 + $0x90] sm:$0xff] }
 0x3e2   :  { %4052 = vst [vmem:[#allocation3 + $0x78] sm:$0xff] %v10644_v12  ;;  %v3400_v24 = vpop.permute.xlu0 %3399  ;;  %v3801_v21 = vsel %vm8351_vm13, %v13261_v1, %v3800_v0 }
 0x3e3   :  { %3479 = vst.msk [vmem:[#allocation3 + $0xa0] sm:$0xff] %vm754_vm7, %v3400_v24 }
 0x3e4   :  { %v3402_v19 = vpop.permute.xlu1 %3401  ;;  %v3803_v59 = vld [vmem:[#allocation3 + $0x98] sm:$0xff] }
 0x3e5   :  { %3480 = vst.msk [vmem:[#allocation3 + $0xa8] sm:$0xff] %vm754_vm7, %v3402_v19  ;;  %v3804_v22 = vsel %vm8351_vm13, %v13260_v45, %v3803_v59 }
 0x3e8   :  { %7081 = vmatmul.mubr.msk.bf16.gmra.mrb[24].mxu1 %vm31_vm12, %v10644_v12 }
 0x3ea   :  { %v3943_v37 = vpop.permute.xlu1 %3942  ;;  %v3941_v4 = vpop.permute.xlu0 %3940  ;;  %v3806_v32 = vld [vmem:[#allocation3 + $0xa0] sm:$0xff] }
 0x3eb   :  { %v10666_v35 = vsel %vm8357_vm14, %v3943_v37, %v3798_v13  ;;  %v10674_v10 = vsel %vm8357_vm14, %v3941_v4, %v3795_v54  ;;  %v3807_v6 = vsel %vm8351_vm13, %v13263_v29, %v3806_v32  ;;  %v13266_v37 = vld [vmem:[#allocation5_spill] sm:$0xff] }
 0x3ec   :  { %4058 = vst [vmem:[#allocation3 + $0x88] sm:$0xff] %v10666_v35  ;;  %4055 = vst [vmem:[#allocation3 + $0x80] sm:$0xff] %v10674_v10  ;;  %7084 = vmatprep.mubr.msk.bf16.mxu1 %vm31_vm12, %v10674_v10  ;;  %v3809_v31 = vld [vmem:[#allocation3 + $0xa8] sm:$0xff] }
 0x3ed   :  { %v3810_v39 = vsel %vm8351_vm13, %v13262_v55, %v3809_v31  ;;  %v13269_v31 = vld [vmem:[#allocation11_spill] sm:$0xff] }
 0x3ee   :  { %v3406_v9 = vpop.permute.xlu1 %3405  ;;  %v3404_v51 = vpop.permute.xlu0 %3403 }
 0x3ef   :  { %3482 = vst.msk [vmem:[#allocation3 + $0xb8] sm:$0xff] %vm754_vm7, %v3406_v9  ;;  %3481 = vst.msk [vmem:[#allocation3 + $0xb0] sm:$0xff] %vm754_vm7, %v3404_v51  ;;  %v13267_v9 = vld [vmem:[#allocation7_spill] sm:$0xff] }
 0x3f0   :  { %7085 = vmatmul.mubr.msk.bf16.gmra.mrb[28].mxu1 %vm31_vm12, %v10666_v35 }
 0x3f2   :  { %v3947_v58 = vpop.permute.xlu1 %3946  ;;  %v3945_v20 = vpop.permute.xlu0 %3944 }
 0x3f3   :  { %v10688_v33 = vsel %vm8357_vm14, %v3947_v58, %v3804_v22  ;;  %v10696_v36 = vsel %vm8357_vm14, %v3945_v20, %v3801_v21  ;;  %v13268_v21 = vld [vmem:[#allocation9_spill] sm:$0xff] }
 0x3f4   :  { %4064 = vst [vmem:[#allocation3 + $0x98] sm:$0xff] %v10688_v33  ;;  %4061 = vst [vmem:[#allocation3 + $0x90] sm:$0xff] %v10696_v36  ;;  %7088 = vmatprep.mubr.msk.bf16.mxu1 %vm31_vm12, %v10696_v36 }
 0x3f6   :  { %v3410_v16 = vpop.permute.xlu1 %3409  ;;  %v3408_v57 = vpop.permute.xlu0 %3407  ;;  %v3815_v44 = vld [vmem:[#allocation3 + $0xb8] sm:$0xff]  ;;  %v3812_v63 = vld [vmem:[#allocation3 + $0xb0] sm:$0xff] }
 0x3f7   :  { %3484 = vst.msk [vmem:[#allocation3 + $0xc8] sm:$0xff] %vm754_vm7, %v3410_v16  ;;  %3483 = vst.msk [vmem:[#allocation3 + $0xc0] sm:$0xff] %vm754_vm7, %v3408_v57  ;;  %v3816_v53 = vsel %vm8351_vm13, %v13264_v5, %v3815_v44  ;;  %v3813_v50 = vsel %vm8351_vm13, %v13265_v26, %v3812_v63  ;;  %v13271_v5 = vld [vmem:[#allocation10_spill] sm:$0xff] }
 0x3f8   :  { %7089 = vmatmul.mubr.msk.bf16.gmra.mrb[32].mxu1 %vm31_vm12, %v10688_v33 }
 0x3fe   :  { %v3821_v25 = vld [vmem:[#allocation3 + $0xc8] sm:$0xff]  ;;  %v3818_v13 = vld [vmem:[#allocation3 + $0xc0] sm:$0xff] }
 0x3ff   :  { %v3822_v8 = vsel %vm8351_vm13, %v13266_v37, %v3821_v25  ;;  %v3819_v51 = vsel %vm8351_vm13, %v13267_v9, %v3818_v13  ;;  %v13273_v37 = vld [vmem:[#allocation17_spill] sm:$0xff] }
 0x40a   :  { %v3951_v3 = vpop.permute.xlu1 %3950 }
 0x40b   :  { %v10710_v17 = vsel %vm8357_vm14, %v3951_v3, %v3810_v39  ;;  %v3949_v52 = vpop.permute.xlu0 %3948 }
 0x40c   :  { %4070 = vst [vmem:[#allocation3 + $0xa8] sm:$0xff] %v10710_v17  ;;  %v10718_v49 = vsel %vm8357_vm14, %v3949_v52, %v3807_v6 }
 0x40d   :  { %4067 = vst [vmem:[#allocation3 + $0xa0] sm:$0xff] %v10718_v49  ;;  %7092 = vmatprep.mubr.msk.bf16.mxu1 %vm31_vm12, %v10718_v49 }
 0x40e   :  { %v3414_v15 = vpop.permute.xlu1 %3413  ;;  %7093 = vmatmul.mubr.msk.bf16.gmra.mrb[36].mxu1 %vm31_vm12, %v10710_v17 }
 0x40f   :  { %3486 = vst.msk [vmem:[#allocation3 + $0xd8] sm:$0xff] %vm754_vm7, %v3414_v15  ;;  %v3412_v42 = vpop.permute.xlu0 %3411  ;;  %v13270_v15 = vld [vmem:[#allocation8_spill] sm:$0xff] }
 0x410   :  { %3485 = vst.msk [vmem:[#allocation3 + $0xd0] sm:$0xff] %vm754_vm7, %v3412_v42 }
 0x412   :  { %v3955_v40 = vpop.permute.xlu1 %3954 }
 0x413   :  { %v10732_v23 = vsel %vm8357_vm14, %v3955_v40, %v3816_v53  ;;  %v3953_v19 = vpop.permute.xlu0 %3952 }
 0x414   :  { %4076 = vst [vmem:[#allocation3 + $0xb8] sm:$0xff] %v10732_v23  ;;  %v10740_v24 = vsel %vm8357_vm14, %v3953_v19, %v3813_v50 }
 0x415   :  { %4073 = vst [vmem:[#allocation3 + $0xb0] sm:$0xff] %v10740_v24  ;;  %7096 = vmatprep.mubr.msk.bf16.mxu1 %vm31_vm12, %v10740_v24 }
 0x416   :  { %v3418_v14 = vpop.permute.xlu1 %3417  ;;  %7097 = vmatmul.mubr.msk.bf16.gmra.mrb[40].mxu1 %vm31_vm12, %v10732_v23  ;;  %v3827_v58 = vld [vmem:[#allocation3 + $0xd8] sm:$0xff] }
 0x417   :  { %3488 = vst.msk [vmem:[#allocation3 + $0xe8] sm:$0xff] %vm754_vm7, %v3418_v14  ;;  %v3416_v27 = vpop.permute.xlu0 %3415  ;;  %v3824_v1 = vld [vmem:[#allocation3 + $0xd0] sm:$0xff]  ;;  %v3828_v20 = vsel %vm8351_vm13, %v13268_v21, %v3827_v58  ;;  %v13272_v14 = vld [vmem:[#allocation15_spill] sm:$0xff] }
 0x418   :  { %3487 = vst.msk [vmem:[#allocation3 + $0xe0] sm:$0xff] %vm754_vm7, %v3416_v27  ;;  %v3825_v32 = vsel %vm8351_vm13, %v13269_v31, %v3824_v1 }
 0x41a   :  { %v3959_v54 = vpop.permute.xlu1 %3958 }
 0x41b   :  { %v10754_v4 = vsel %vm8357_vm14, %v3959_v54, %v3822_v8  ;;  %v3957_v59 = vpop.permute.xlu0 %3956 }
 0x41c   :  { %4082 = vst [vmem:[#allocation3 + $0xc8] sm:$0xff] %v10754_v4  ;;  %v10762_v0 = vsel %vm8357_vm14, %v3957_v59, %v3819_v51 }
 0x41d   :  { %4079 = vst [vmem:[#allocation3 + $0xc0] sm:$0xff] %v10762_v0  ;;  %7100 = vmatprep.mubr.msk.bf16.mxu1 %vm31_vm12, %v10762_v0 }
 0x41e   :  { %v3422_v45 = vpop.permute.xlu1 %3421  ;;  %7101 = vmatmul.mubr.msk.bf16.gmra.mrb[44].mxu1 %vm31_vm12, %v10754_v4  ;;  %v3833_v6 = vld [vmem:[#allocation3 + $0xe8] sm:$0xff] }
 0x41f   :  { %3490 = vst.msk [vmem:[#allocation3 + $0xf8] sm:$0xff] %vm754_vm7, %v3422_v45  ;;  %v3420_v22 = vpop.permute.xlu0 %3419  ;;  %v3830_v52 = vld [vmem:[#allocation3 + $0xe0] sm:$0xff]  ;;  %v3834_v42 = vsel %vm8351_vm13, %v13270_v15, %v3833_v6 }
 0x420   :  { %3489 = vst.msk [vmem:[#allocation3 + $0xf0] sm:$0xff] %vm754_vm7, %v3420_v22  ;;  %v3831_v53 = vsel %vm8351_vm13, %v13271_v5, %v3830_v52 }
 0x422   :  { %v3963_v16 = vpop.permute.xlu1 %3962 }
 0x423   :  { %v10776_v57 = vsel %vm8357_vm14, %v3963_v16, %v3828_v20  ;;  %v3961_v55 = vpop.permute.xlu0 %3960 }
 0x424   :  { %4088 = vst [vmem:[#allocation3 + $0xd8] sm:$0xff] %v10776_v57  ;;  %v10784_v39 = vsel %vm8357_vm14, %v3961_v55, %v3825_v32 }
 0x425   :  { %4085 = vst [vmem:[#allocation3 + $0xd0] sm:$0xff] %v10784_v39  ;;  %7104 = vmatprep.mubr.msk.bf16.mxu1 %vm31_vm12, %v10784_v39 }
 0x426   :  { %v3426_v3 = vpop.permute.xlu1 %3425  ;;  %7105 = vmatmul.mubr.msk.bf16.gmra.mrb[48].mxu1 %vm31_vm12, %v10776_v57  ;;  %v3839_v26 = vld [vmem:[#allocation3 + $0xf8] sm:$0xff] }
 0x427   :  { %3492 = vst.msk [vmem:[#allocation3 + $0x108] sm:$0xff] %vm754_vm7, %v3426_v3  ;;  %v3424_v29 = vpop.permute.xlu0 %3423  ;;  %v3836_v19 = vld [vmem:[#allocation3 + $0xf0] sm:$0xff]  ;;  %v3840_v27 = vsel %vm8351_vm13, %v13272_v14, %v3839_v26 }
 0x428   :  { %3491 = vst.msk [vmem:[#allocation3 + $0x100] sm:$0xff] %vm754_vm7, %v3424_v29  ;;  %v3837_v8 = vsel %vm8351_vm13, %v13273_v37, %v3836_v19 }
 0x42a   :  { %v3967_v44 = vpop.permute.xlu1 %3966 }
 0x42b   :  { %v10798_v63 = vsel %vm8357_vm14, %v3967_v44, %v3834_v42  ;;  %v3965_v40 = vpop.permute.xlu0 %3964 }
 0x42c   :  { %4094 = vst [vmem:[#allocation3 + $0xe8] sm:$0xff] %v10798_v63  ;;  %v10806_v50 = vsel %vm8357_vm14, %v3965_v40, %v3831_v53 }
 0x42d   :  { %4091 = vst [vmem:[#allocation3 + $0xe0] sm:$0xff] %v10806_v50  ;;  %7108 = vmatprep.mubr.msk.bf16.mxu1 %vm31_vm12, %v10806_v50 }
 0x42e   :  { %v3971_v25 = vpop.permute.xlu1 %3970  ;;  %7109 = vmatmul.mubr.msk.bf16.gmra.mrb[52].mxu1 %vm31_vm12, %v10798_v63  ;;  %v3845_v9 = vld [vmem:[#allocation3 + $0x108] sm:$0xff] }
 0x42f   :  { %v10818_v13 = vsel %vm8357_vm14, %v3971_v25, %v3840_v27  ;;  %v3969_v54 = vpop.permute.xlu0 %3968  ;;  %v3842_v59 = vld [vmem:[#allocation3 + $0x100] sm:$0xff]  ;;  %v3846_v45 = vsel %vm8351_vm13, %v10278_v61, %v3845_v9 }
 0x430   :  { %4100 = vst [vmem:[#allocation3 + $0xf8] sm:$0xff] %v10818_v13  ;;  %v10826_v51 = vsel %vm8357_vm14, %v3969_v54, %v3837_v8  ;;  %v3843_v1 = vsel %vm8351_vm13, %v10291_v11, %v3842_v59  ;;  %v4107_v61 = vld [vmem:[#allocation3] sm:$0xff]  ;;  %v4108_v11 = vld [vmem:[#allocation3 + $0x8] sm:$0xff] }
 0x431   :  { %4097 = vst [vmem:[#allocation3 + $0xf0] sm:$0xff] %v10826_v51  ;;  %7112 = vmatprep.mubr.msk.bf16.mxu1 %vm31_vm12, %v10826_v51 }
 0x432   :  { %v3975_v22 = vpop.permute.xlu1 %3974 }
 0x433   :  { %v10836_v58 = vsel %vm8357_vm14, %v3975_v22, %v3846_v45  ;;  %v3973_v21 = vpop.permute.xlu0 %3972 }
 0x434   :  { %4106 = vst [vmem:[#allocation3 + $0x108] sm:$0xff] %v10836_v58  ;;  %v10844_v20 = vsel %vm8357_vm14, %v3973_v21, %v3843_v1 }
 0x435   :  { %4103 = vst [vmem:[#allocation3 + $0x100] sm:$0xff] %v10844_v20 }
 0x436   :  { %7113 = vmatmul.mubr.msk.bf16.gmra.mrb[56].mxu1 %vm31_vm12, %v10818_v13 }
 0x437   :  { %7116 = vmatprep.mubr.msk.bf16.mxu1 %vm31_vm12, %v10844_v20 }
 0x43e   :  { %7117 = vmatmul.mubr.msk.bf16.gmra.mrb[60].mxu1 %vm31_vm12, %v10836_v58 }
 0x43f   :  { %7122 = vmatprep.mubr.msk.bf16.mxu1 %vm31_vm12, %v4107_v61 }
 0x446   :  { %7123 = vmatmul.mubr.msk.bf16.vlgmr.msra.gmra.mrb[0].mxu1 %vm31_vm12, %v4108_v11 }
 0x447   :  { %7187 = vmatpush3.bf16.msra.mxu1 %v5100_v38  ;;  %7126 = vmatprep.mubr.msk.bf16.mxu1 %vm31_vm12, %v10512_v47  ;;  %v4963_v47 = vld [vmem:[#allocation3 + $0x20] sm:$0xff] }
 0x44e   :  { %7127 = vmatmul.mubr.msk.bf16.gmra.mrb[4].mxu1 %vm31_vm12, %v4110_v43 }
 0x44f   :  { %7130 = vmatprep.mubr.msk.bf16.mxu1 %vm31_vm12, %v10542_v28  ;;  %v4994_v28 = vld [vmem:[#allocation3 + $0x118] sm:$0xff] }
 0x456   :  { %7131 = vmatmul.mubr.msk.bf16.gmra.mrb[8].mxu1 %vm31_vm12, %v10534_v46  ;;  %v4993_v46 = vld [vmem:[#allocation3 + $0x110] sm:$0xff] }
 0x457   :  { %7134 = vmatprep.mubr.msk.bf16.mxu1 %vm31_vm12, %v10564_v48 }
 0x45e   :  { %7135 = vmatmul.mubr.msk.bf16.gmra.mrb[12].mxu1 %vm31_vm12, %v10556_v60 }
 0x45f   :  { %7138 = vmatprep.mubr.msk.bf16.mxu1 %vm31_vm12, %v10586_v41 }
 0x466   :  { %7139 = vmatmul.mubr.msk.bf16.gmra.mrb[16].mxu1 %vm31_vm12, %v10578_v2 }
 0x467   :  { %7142 = vmatprep.mubr.msk.bf16.mxu1 %vm31_vm12, %v10608_v56 }
 0x46e   :  { %7143 = vmatmul.mubr.msk.bf16.gmra.mrb[20].mxu1 %vm31_vm12, %v10600_v7 }
 0x46f   :  { %7146 = vmatprep.mubr.msk.bf16.mxu1 %vm31_vm12, %v10630_v18 }
 0x476   :  { %7147 = vmatmul.mubr.msk.bf16.gmra.mrb[24].mxu1 %vm31_vm12, %v10622_v34 }
 0x477   :  { %7150 = vmatprep.mubr.msk.bf16.mxu1 %vm31_vm12, %v10652_v62 }
 0x47e   :  { %7151 = vmatmul.mubr.msk.bf16.gmra.mrb[28].mxu1 %vm31_vm12, %v10644_v12 }
 0x47f   :  { %7154 = vmatprep.mubr.msk.bf16.mxu1 %vm31_vm12, %v10674_v10 }
 0x486   :  { %7155 = vmatmul.mubr.msk.bf16.gmra.mrb[32].mxu1 %vm31_vm12, %v10666_v35 }
 0x487   :  { %7158 = vmatprep.mubr.msk.bf16.mxu1 %vm31_vm12, %v10696_v36 }
 0x48e   :  { %7159 = vmatmul.mubr.msk.bf16.gmra.mrb[36].mxu1 %vm31_vm12, %v10688_v33 }
 0x48f   :  { %7162 = vmatprep.mubr.msk.bf16.mxu1 %vm31_vm12, %v10718_v49 }
 0x496   :  { %7163 = vmatmul.mubr.msk.bf16.gmra.mrb[40].mxu1 %vm31_vm12, %v10710_v17 }
 0x497   :  { %7166 = vmatprep.mubr.msk.bf16.mxu1 %vm31_vm12, %v10740_v24 }
 0x49e   :  { %7167 = vmatmul.mubr.msk.bf16.gmra.mrb[44].mxu1 %vm31_vm12, %v10732_v23 }
 0x49f   :  { %7170 = vmatprep.mubr.msk.bf16.mxu1 %vm31_vm12, %v10762_v0 }
 0x4a6   :  { %7171 = vmatmul.mubr.msk.bf16.gmra.mrb[48].mxu1 %vm31_vm12, %v10754_v4 }
 0x4a7   :  { %7174 = vmatprep.mubr.msk.bf16.mxu1 %vm31_vm12, %v10784_v39 }
 0x4ae   :  { %7175 = vmatmul.mubr.msk.bf16.gmra.mrb[52].mxu1 %vm31_vm12, %v10776_v57 }
 0x4af   :  { %7178 = vmatprep.mubr.msk.bf16.mxu1 %vm31_vm12, %v10806_v50 }
 0x4b6   :  { %7179 = vmatmul.mubr.msk.bf16.gmra.mrb[56].mxu1 %vm31_vm12, %v10798_v63 }
 0x4b7   :  { %7182 = vmatprep.mubr.msk.bf16.mxu1 %vm31_vm12, %v10826_v51 }
 0x4be   :  { %7183 = vmatmul.mubr.msk.bf16.gmra.mrb[60].mxu1 %vm31_vm12, %v10818_v13 }
 0x4bf   :  { %7188 = vmatprep.mubr.msk.bf16.mxu1 %vm31_vm12, %v4963_v47 }
 0x4c6   :  { %7189 = vmatmul.mubr.msk.bf16.vlgmr.msra.gmra.mrb[0].mxu1 %vm31_vm12, %v4964_v30 }
 0x4c7   :  { %7192 = vmatprep.mubr.msk.bf16.mxu1 %vm31_vm12, %v10564_v48 }
 0x4ce   :  { %7193 = vmatmul.mubr.msk.bf16.gmra.mrb[4].mxu1 %vm31_vm12, %v10556_v60 }
 0x4cf   :  { %7196 = vmatprep.mubr.msk.bf16.mxu1 %vm31_vm12, %v10586_v41 }
 0x4d6   :  { %7197 = vmatmul.mubr.msk.bf16.gmra.mrb[8].mxu1 %vm31_vm12, %v10578_v2 }
 0x4d7   :  { %7200 = vmatprep.mubr.msk.bf16.mxu1 %vm31_vm12, %v10608_v56 }
 0x4de   :  { %7201 = vmatmul.mubr.msk.bf16.gmra.mrb[12].mxu1 %vm31_vm12, %v10600_v7 }
 0x4df   :  { %7204 = vmatprep.mubr.msk.bf16.mxu1 %vm31_vm12, %v10630_v18 }
 0x4e6   :  { %7205 = vmatmul.mubr.msk.bf16.gmra.mrb[16].mxu1 %vm31_vm12, %v10622_v34 }
 0x4e7   :  { %7208 = vmatprep.mubr.msk.bf16.mxu1 %vm31_vm12, %v10652_v62 }
 0x4ee   :  { %7209 = vmatmul.mubr.msk.bf16.gmra.mrb[20].mxu1 %vm31_vm12, %v10644_v12 }
 0x4ef   :  { %7212 = vmatprep.mubr.msk.bf16.mxu1 %vm31_vm12, %v10674_v10 }
 0x4f6   :  { %7213 = vmatmul.mubr.msk.bf16.gmra.mrb[24].mxu1 %vm31_vm12, %v10666_v35 }
 0x4f7   :  { %7216 = vmatprep.mubr.msk.bf16.mxu1 %vm31_vm12, %v10696_v36 }
 0x4fe   :  { %7217 = vmatmul.mubr.msk.bf16.gmra.mrb[28].mxu1 %vm31_vm12, %v10688_v33 }
 0x4ff   :  { %7220 = vmatprep.mubr.msk.bf16.mxu1 %vm31_vm12, %v10718_v49 }
 0x506   :  { %7221 = vmatmul.mubr.msk.bf16.gmra.mrb[32].mxu1 %vm31_vm12, %v10710_v17 }
 0x507   :  { %7224 = vmatprep.mubr.msk.bf16.mxu1 %vm31_vm12, %v10740_v24 }
 0x50e   :  { %7225 = vmatmul.mubr.msk.bf16.gmra.mrb[36].mxu1 %vm31_vm12, %v10732_v23 }
 0x50f   :  { %7228 = vmatprep.mubr.msk.bf16.mxu1 %vm31_vm12, %v10762_v0 }
 0x516   :  { %7229 = vmatmul.mubr.msk.bf16.gmra.mrb[40].mxu1 %vm31_vm12, %v10754_v4 }
 0x517   :  { %7232 = vmatprep.mubr.msk.bf16.mxu1 %vm31_vm12, %v10784_v39 }
 0x51e   :  { %7233 = vmatmul.mubr.msk.bf16.gmra.mrb[44].mxu1 %vm31_vm12, %v10776_v57 }
 0x51f   :  { %7236 = vmatprep.mubr.msk.bf16.mxu1 %vm31_vm12, %v10806_v50 }
 0x526   :  { %7237 = vmatmul.mubr.msk.bf16.gmra.mrb[48].mxu1 %vm31_vm12, %v10798_v63 }
 0x527   :  { %7240 = vmatprep.mubr.msk.bf16.mxu1 %vm31_vm12, %v10826_v51 }
 0x52e   :  { %7241 = vmatmul.mubr.msk.bf16.gmra.mrb[52].mxu1 %vm31_vm12, %v10818_v13 }
 0x52f   :  { %7244 = vmatprep.mubr.msk.bf16.mxu1 %vm31_vm12, %v10844_v20 }
 0x536   :  { %7245 = vmatmul.mubr.msk.bf16.gmra.mrb[56].mxu1 %vm31_vm12, %v10836_v58 }
 0x537   :  { %7248 = vmatprep.mubr.msk.bf16.mxu1 %vm31_vm12, %v4993_v46 }
 0x53e   :  { %7249 = vmatmul.mubr.msk.bf16.gmra.mrb[60].mxu1 %vm31_vm12, %v4994_v28 }
 0x599   :  { %v10976_v60 = vpop.f32.mrb[0].mxu1 }
 0x59a   :  { %v10978_v48 = vpop.f32.mrb[1].mxu1  ;;  %v5593_v56 = vmul.f32 %v10976_v60, %v10976_v60  ;;  %v5460_v35 = vsel %vm1043_vm8, %v10976_v60, 0.0 }
 0x59b   :  { %v5591_v2 = vmul.f32 %v10978_v48, %v10978_v48  ;;  %v10982_v41 = vpop.f32.mrb[2].mxu1  ;;  %v5457_v34 = vsel %vm1043_vm8, %v10978_v48, 0.0 }
 0x59c   :  { %v10984_v7 = vpop.f32.mrb[3].mxu1  ;;  %v5594_v33 = vmul.f32 %v10982_v41, %v10982_v41  ;;  %v5658_v23 = vsel %vm1043_vm8, %v5593_v56, 0.0  ;;  %v5462_v24 = vsel %vm1043_vm8, %v10982_v41, 0.0 }
 0x59d   :  { %v5458_v18 = vsel %vm1043_vm8, %v10984_v7, 0.0  ;;  %v5592_v12 = vmul.f32 %v10984_v7, %v10984_v7  ;;  %v5655_v10 = vsel %vm1043_vm8, %v5591_v2, 0.0 }
 0x59e   :  { %v5459_v62 = vadd.f32 %v5458_v18, %v5457_v34  ;;  %v5660_v31 = vsel %vm1043_vm8, %v5594_v33, 0.0 }
 0x59f   :  { %v5656_v36 = vsel %vm1043_vm8, %v5592_v12, 0.0 }
 0x5a0   :  { %v5461_v17 = vadd.f32 %v5460_v35, %v5459_v62  ;;  %v5657_v49 = vadd.f32 %v5656_v36, %v5655_v10 }
 0x5a1   :  { %v11003_v4 = vpop.f32.mrb[4].mxu1 }
 0x5a2   :  { %v5659_v0 = vadd.f32 %v5658_v23, %v5657_v49  ;;  %v11005_v16 = vpop.f32.mrb[5].mxu1  ;;  %v5463_v57 = vadd.f32 %v5462_v24, %v5461_v17  ;;  %v5597_v52 = vmul.f32 %v11003_v4, %v11003_v4  ;;  %v5468_v53 = vsel %vm1043_vm8, %v11003_v4, 0.0 }
 0x5a3   :  { %v5464_v32 = vsel %vm1043_vm8, %v11005_v16, 0.0  ;;  %v5595_v55 = vmul.f32 %v11005_v16, %v11005_v16  ;;  %v11012_v39 = vpop.f32.mrb[6].mxu1 }
 0x5a4   :  { %v5465_v3 = vadd.f32 %v5464_v32, %v5463_v57  ;;  %v5661_v29 = vadd.f32 %v5660_v31, %v5659_v0  ;;  %v11014_v6 = vpop.f32.mrb[7].mxu1  ;;  %v5598_v40 = vmul.f32 %v11012_v39, %v11012_v39  ;;  %v5666_v14 = vsel %vm1043_vm8, %v5597_v52, 0.0 }
 0x5a5   :  { %v5662_v15 = vsel %vm1043_vm8, %v5595_v55, 0.0  ;;  %v5466_v42 = vsel %vm1043_vm8, %v11014_v6, 0.0  ;;  %v5596_v44 = vmul.f32 %v11014_v6, %v11014_v6  ;;  %v5470_v27 = vsel %vm1043_vm8, %v11012_v39, 0.0 }
 0x5a6   :  { %v5663_v63 = vadd.f32 %v5662_v15, %v5661_v29  ;;  %v5467_v5 = vadd.f32 %v5466_v42, %v5465_v3  ;;  %v5668_v54 = vsel %vm1043_vm8, %v5598_v40, 0.0 }
 0x5a7   :  { %v5664_v26 = vsel %vm1043_vm8, %v5596_v44, 0.0 }
 0x5a8   :  { %v5469_v50 = vadd.f32 %v5468_v53, %v5467_v5  ;;  %v5665_v19 = vadd.f32 %v5664_v26, %v5663_v63 }
 0x5a9   :  { %v11031_v25 = vpop.f32.mrb[8].mxu1 }
 0x5aa   :  { %v5667_v13 = vadd.f32 %v5666_v14, %v5665_v19  ;;  %v11033_v37 = vpop.f32.mrb[9].mxu1  ;;  %v5471_v8 = vadd.f32 %v5470_v27, %v5469_v50  ;;  %v5601_v1 = vmul.f32 %v11031_v25, %v11031_v25  ;;  %v5476_v43 = vsel %vm1043_vm8, %v11031_v25, 0.0 }
 0x5ab   :  { %v5472_v9 = vsel %vm1043_vm8, %v11033_v37, 0.0  ;;  %v5599_v51 = vmul.f32 %v11033_v37, %v11033_v37  ;;  %v11040_v59 = vpop.f32.mrb[10].mxu1 }
 0x5ac   :  { %v5473_v45 = vadd.f32 %v5472_v9, %v5471_v8  ;;  %v5669_v22 = vadd.f32 %v5668_v54, %v5667_v13  ;;  %v11042_v58 = vpop.f32.mrb[11].mxu1  ;;  %v5602_v47 = vmul.f32 %v11040_v59, %v11040_v59  ;;  %v5674_v2 = vsel %vm1043_vm8, %v5601_v1, 0.0 }
 0x5ad   :  { %v5670_v21 = vsel %vm1043_vm8, %v5599_v51, 0.0  ;;  %v5474_v20 = vsel %vm1043_vm8, %v11042_v58, 0.0  ;;  %v5600_v61 = vmul.f32 %v11042_v58, %v11042_v58  ;;  %v5478_v56 = vsel %vm1043_vm8, %v11040_v59, 0.0 }
 0x5ae   :  { %v5671_v11 = vadd.f32 %v5670_v21, %v5669_v22  ;;  %v5475_v38 = vadd.f32 %v5474_v20, %v5473_v45  ;;  %v5676_v35 = vsel %vm1043_vm8, %v5602_v47, 0.0 }
 0x5af   :  { %v5672_v30 = vsel %vm1043_vm8, %v5600_v61, 0.0 }
 0x5b0   :  { %v5477_v46 = vadd.f32 %v5476_v43, %v5475_v38  ;;  %v5673_v28 = vadd.f32 %v5672_v30, %v5671_v11 }
 0x5b1   :  { %v11059_v34 = vpop.f32.mrb[12].mxu1 }
 0x5b2   :  { %v5675_v18 = vadd.f32 %v5674_v2, %v5673_v28  ;;  %v11061_v12 = vpop.f32.mrb[13].mxu1  ;;  %v5479_v62 = vadd.f32 %v5478_v56, %v5477_v46  ;;  %v5605_v24 = vmul.f32 %v11059_v34, %v11059_v34  ;;  %v5484_v3 = vsel %vm1043_vm8, %v11059_v34, 0.0 }
 0x5b3   :  { %v5480_v10 = vsel %vm1043_vm8, %v11061_v12, 0.0  ;;  %v5603_v33 = vmul.f32 %v11061_v12, %v11061_v12  ;;  %v11068_v36 = vpop.f32.mrb[14].mxu1 }
 0x5b4   :  { %v5481_v17 = vadd.f32 %v5480_v10, %v5479_v62  ;;  %v5677_v49 = vadd.f32 %v5676_v35, %v5675_v18  ;;  %v11070_v23 = vpop.f32.mrb[15].mxu1  ;;  %v5606_v29 = vmul.f32 %v11068_v36, %v11068_v36  ;;  %v5682_v44 = vsel %vm1043_vm8, %v5605_v24, 0.0 }
 0x5b5   :  { %v5678_v0 = vsel %vm1043_vm8, %v5603_v33, 0.0  ;;  %v5482_v57 = vsel %vm1043_vm8, %v11070_v23, 0.0  ;;  %v5604_v31 = vmul.f32 %v11070_v23, %v11070_v23  ;;  %v5486_v63 = vsel %vm1043_vm8, %v11068_v36, 0.0 }
 0x5b6   :  { %v5679_v32 = vadd.f32 %v5678_v0, %v5677_v49  ;;  %v5483_v55 = vadd.f32 %v5482_v57, %v5481_v17  ;;  %v5684_v50 = vsel %vm1043_vm8, %v5606_v29, 0.0 }
 0x5b7   :  { %v5680_v52 = vsel %vm1043_vm8, %v5604_v31, 0.0 }
 0x5b8   :  { %v5485_v15 = vadd.f32 %v5484_v3, %v5483_v55  ;;  %v5681_v42 = vadd.f32 %v5680_v52, %v5679_v32 }
 0x5b9   :  { %v11087_v5 = vpop.f32.mrb[16].mxu1 }
 0x5ba   :  { %v5683_v53 = vadd.f32 %v5682_v44, %v5681_v42  ;;  %v11089_v40 = vpop.f32.mrb[17].mxu1  ;;  %v5487_v26 = vadd.f32 %v5486_v63, %v5485_v15  ;;  %v5609_v9 = vmul.f32 %v11087_v5, %v11087_v5  ;;  %v5492_v20 = vsel %vm1043_vm8, %v11087_v5, 0.0 }
 0x5bb   :  { %v5488_v19 = vsel %vm1043_vm8, %v11089_v40, 0.0  ;;  %v5607_v14 = vmul.f32 %v11089_v40, %v11089_v40  ;;  %v11096_v27 = vpop.f32.mrb[18].mxu1 }
 0x5bc   :  { %v5489_v13 = vadd.f32 %v5488_v19, %v5487_v26  ;;  %v5685_v8 = vadd.f32 %v5684_v50, %v5683_v53  ;;  %v11098_v54 = vpop.f32.mrb[19].mxu1  ;;  %v5610_v61 = vmul.f32 %v11096_v27, %v11096_v27  ;;  %v5690_v47 = vsel %vm1043_vm8, %v5609_v9, 0.0 }
 0x5bd   :  { %v5686_v51 = vsel %vm1043_vm8, %v5607_v14, 0.0  ;;  %v5490_v45 = vsel %vm1043_vm8, %v11098_v54, 0.0  ;;  %v5608_v22 = vmul.f32 %v11098_v54, %v11098_v54  ;;  %v5494_v30 = vsel %vm1043_vm8, %v11096_v27, 0.0 }
 0x5be   :  { %v5687_v1 = vadd.f32 %v5686_v51, %v5685_v8  ;;  %v5491_v21 = vadd.f32 %v5490_v45, %v5489_v13  ;;  %v5692_v18 = vsel %vm1043_vm8, %v5610_v61, 0.0 }
 0x5bf   :  { %v5688_v11 = vsel %vm1043_vm8, %v5608_v22, 0.0 }
 0x5c0   :  { %v5493_v38 = vadd.f32 %v5492_v20, %v5491_v21  ;;  %v5689_v43 = vadd.f32 %v5688_v11, %v5687_v1 }
 0x5c1   :  { %v11115_v46 = vpop.f32.mrb[20].mxu1 }
 0x5c2   :  { %v5691_v28 = vadd.f32 %v5690_v47, %v5689_v43  ;;  %v11117_v2 = vpop.f32.mrb[21].mxu1  ;;  %v5495_v56 = vadd.f32 %v5494_v30, %v5493_v38  ;;  %v5613_v24 = vmul.f32 %v11115_v46, %v11115_v46  ;;  %v5500_v3 = vsel %vm1043_vm8, %v11115_v46, 0.0 }
 0x5c3   :  { %v5496_v62 = vsel %vm1043_vm8, %v11117_v2, 0.0  ;;  %v5611_v35 = vmul.f32 %v11117_v2, %v11117_v2  ;;  %v11124_v10 = vpop.f32.mrb[22].mxu1 }
 0x5c4   :  { %v5497_v33 = vadd.f32 %v5496_v62, %v5495_v56  ;;  %v5693_v17 = vadd.f32 %v5692_v18, %v5691_v28  ;;  %v11126_v49 = vpop.f32.mrb[23].mxu1  ;;  %v5614_v29 = vmul.f32 %v11124_v10, %v11124_v10  ;;  %v5698_v44 = vsel %vm1043_vm8, %v5613_v24, 0.0 }
 0x5c5   :  { %v5694_v0 = vsel %vm1043_vm8, %v5611_v35, 0.0  ;;  %v5498_v57 = vsel %vm1043_vm8, %v11126_v49, 0.0  ;;  %v5612_v31 = vmul.f32 %v11126_v49, %v11126_v49  ;;  %v5502_v63 = vsel %vm1043_vm8, %v11124_v10, 0.0 }
 0x5c6   :  { %v5695_v32 = vadd.f32 %v5694_v0, %v5693_v17  ;;  %v5499_v55 = vadd.f32 %v5498_v57, %v5497_v33  ;;  %v5700_v14 = vsel %vm1043_vm8, %v5614_v29, 0.0 }
 0x5c7   :  { %v5696_v52 = vsel %vm1043_vm8, %v5612_v31, 0.0 }
 0x5c8   :  { %v5501_v15 = vadd.f32 %v5500_v3, %v5499_v55  ;;  %v5697_v42 = vadd.f32 %v5696_v52, %v5695_v32 }
 0x5c9   :  { %v11143_v53 = vpop.f32.mrb[24].mxu1 }
 0x5ca   :  { %v5699_v26 = vadd.f32 %v5698_v44, %v5697_v42  ;;  %v11145_v50 = vpop.f32.mrb[25].mxu1  ;;  %v5503_v19 = vadd.f32 %v5502_v63, %v5501_v15  ;;  %v5617_v1 = vmul.f32 %v11143_v53, %v11143_v53  ;;  %v5508_v43 = vsel %vm1043_vm8, %v11143_v53, 0.0 }
 0x5cb   :  { %v5504_v13 = vsel %vm1043_vm8, %v11145_v50, 0.0  ;;  %v5615_v8 = vmul.f32 %v11145_v50, %v11145_v50  ;;  %v11152_v9 = vpop.f32.mrb[26].mxu1 }
 0x5cc   :  { %v5505_v51 = vadd.f32 %v5504_v13, %v5503_v19  ;;  %v5701_v45 = vadd.f32 %v5700_v14, %v5699_v26  ;;  %v11154_v22 = vpop.f32.mrb[27].mxu1  ;;  %v5618_v47 = vmul.f32 %v11152_v9, %v11152_v9  ;;  %v5706_v18 = vsel %vm1043_vm8, %v5617_v1, 0.0 }
 0x5cd   :  { %v5702_v21 = vsel %vm1043_vm8, %v5615_v8, 0.0  ;;  %v5506_v20 = vsel %vm1043_vm8, %v11154_v22, 0.0  ;;  %v5616_v61 = vmul.f32 %v11154_v22, %v11154_v22  ;;  %v5510_v62 = vsel %vm1043_vm8, %v11152_v9, 0.0 }
 0x5ce   :  { %v5703_v11 = vadd.f32 %v5702_v21, %v5701_v45  ;;  %v5507_v38 = vadd.f32 %v5506_v20, %v5505_v51  ;;  %v5708_v0 = vsel %vm1043_vm8, %v5618_v47, 0.0 }
 0x5cf   :  { %v5704_v30 = vsel %vm1043_vm8, %v5616_v61, 0.0 }
 0x5d0   :  { %v5509_v28 = vadd.f32 %v5508_v43, %v5507_v38  ;;  %v5705_v56 = vadd.f32 %v5704_v30, %v5703_v11 }
 0x5d1   :  { %v11171_v35 = vpop.f32.mrb[28].mxu1 }
 0x5d2   :  { %v5707_v33 = vadd.f32 %v5706_v18, %v5705_v56  ;;  %v11173_v17 = vpop.f32.mrb[29].mxu1  ;;  %v5511_v24 = vadd.f32 %v5510_v62, %v5509_v28  ;;  %v5621_v52 = vmul.f32 %v11171_v35, %v11171_v35  ;;  %v5516_v19 = vsel %vm1043_vm8, %v11171_v35, 0.0 }
 0x5d3   :  { %v5512_v57 = vsel %vm1043_vm8, %v11173_v17, 0.0  ;;  %v5619_v31 = vmul.f32 %v11173_v17, %v11173_v17  ;;  %v11180_v32 = vpop.f32.mrb[30].mxu1 }
 0x5d4   :  { %v5513_v55 = vadd.f32 %v5512_v57, %v5511_v24  ;;  %v5709_v3 = vadd.f32 %v5708_v0, %v5707_v33  ;;  %v11182_v29 = vpop.f32.mrb[31].mxu1  ;;  %v5622_v14 = vmul.f32 %v11180_v32, %v11180_v32  ;;  %v5714_v45 = vsel %vm1043_vm8, %v5621_v52, 0.0 }
 0x5d5   :  { %v5710_v15 = vsel %vm1043_vm8, %v5619_v31, 0.0  ;;  %v5514_v42 = vsel %vm1043_vm8, %v11182_v29, 0.0  ;;  %v5620_v44 = vmul.f32 %v11182_v29, %v11182_v29  ;;  %v5518_v1 = vsel %vm1043_vm8, %v11180_v32, 0.0 }
 0x5d6   :  { %v5711_v63 = vadd.f32 %v5710_v15, %v5709_v3  ;;  %v5515_v26 = vadd.f32 %v5514_v42, %v5513_v55  ;;  %v5716_v38 = vsel %vm1043_vm8, %v5622_v14, 0.0 }
 0x5d7   :  { %v5712_v13 = vsel %vm1043_vm8, %v5620_v44, 0.0 }
 0x5d8   :  { %v5517_v8 = vadd.f32 %v5516_v19, %v5515_v26  ;;  %v5713_v51 = vadd.f32 %v5712_v13, %v5711_v63 }
 0x5d9   :  { %v11199_v21 = vpop.f32.mrb[32].mxu1 }
 0x5da   :  { %v5715_v20 = vadd.f32 %v5714_v45, %v5713_v51  ;;  %v11201_v61 = vpop.f32.mrb[33].mxu1  ;;  %v5519_v11 = vadd.f32 %v5518_v1, %v5517_v8  ;;  %v5625_v62 = vmul.f32 %v11199_v21, %v11199_v21  ;;  %v5524_v55 = vsel %vm1043_vm8, %v11199_v21, 0.0 }
 0x5db   :  { %v5520_v43 = vsel %vm1043_vm8, %v11201_v61, 0.0  ;;  %v5623_v47 = vmul.f32 %v11201_v61, %v11201_v61  ;;  %v11208_v30 = vpop.f32.mrb[34].mxu1 }
 0x5dc   :  { %v5521_v28 = vadd.f32 %v5520_v43, %v5519_v11  ;;  %v5717_v56 = vadd.f32 %v5716_v38, %v5715_v20  ;;  %v11210_v18 = vpop.f32.mrb[35].mxu1  ;;  %v5626_v3 = vmul.f32 %v11208_v30, %v11208_v30  ;;  %v5722_v44 = vsel %vm1043_vm8, %v5625_v62, 0.0 }
 0x5dd   :  { %v5718_v33 = vsel %vm1043_vm8, %v5623_v47, 0.0  ;;  %v5522_v24 = vsel %vm1043_vm8, %v11210_v18, 0.0  ;;  %v5624_v0 = vmul.f32 %v11210_v18, %v11210_v18  ;;  %v5526_v63 = vsel %vm1043_vm8, %v11208_v30, 0.0 }
 0x5de   :  { %v5719_v57 = vadd.f32 %v5718_v33, %v5717_v56  ;;  %v5523_v31 = vadd.f32 %v5522_v24, %v5521_v28  ;;  %v5724_v8 = vsel %vm1043_vm8, %v5626_v3, 0.0 }
 0x5df   :  { %v5720_v52 = vsel %vm1043_vm8, %v5624_v0, 0.0 }
 0x5e0   :  { %v5525_v15 = vadd.f32 %v5524_v55, %v5523_v31  ;;  %v5721_v42 = vadd.f32 %v5720_v52, %v5719_v57 }
 0x5e1   :  { %v11227_v26 = vpop.f32.mrb[36].mxu1 }
 0x5e2   :  { %v5723_v19 = vadd.f32 %v5722_v44, %v5721_v42  ;;  %v11229_v14 = vpop.f32.mrb[37].mxu1  ;;  %v5527_v13 = vadd.f32 %v5526_v63, %v5525_v15  ;;  %v5629_v43 = vmul.f32 %v11227_v26, %v11227_v26  ;;  %v5532_v24 = vsel %vm1043_vm8, %v11227_v26, 0.0 }
 0x5e3   :  { %v5528_v51 = vsel %vm1043_vm8, %v11229_v14, 0.0  ;;  %v5627_v45 = vmul.f32 %v11229_v14, %v11229_v14  ;;  %v11236_v1 = vpop.f32.mrb[38].mxu1 }
 0x5e4   :  { %v5529_v20 = vadd.f32 %v5528_v51, %v5527_v13  ;;  %v5725_v11 = vadd.f32 %v5724_v8, %v5723_v19  ;;  %v11238_v38 = vpop.f32.mrb[39].mxu1  ;;  %v5630_v0 = vmul.f32 %v11236_v1, %v11236_v1  ;;  %v5730_v3 = vsel %vm1043_vm8, %v5629_v43, 0.0 }
 0x5e5   :  { %v5726_v47 = vsel %vm1043_vm8, %v5627_v45, 0.0  ;;  %v5530_v28 = vsel %vm1043_vm8, %v11238_v38, 0.0  ;;  %v5628_v56 = vmul.f32 %v11238_v38, %v11238_v38  ;;  %v5534_v52 = vsel %vm1043_vm8, %v11236_v1, 0.0 }
 0x5e6   :  { %v5727_v62 = vadd.f32 %v5726_v47, %v5725_v11  ;;  %v5531_v33 = vadd.f32 %v5530_v28, %v5529_v20  ;;  %v5732_v19 = vsel %vm1043_vm8, %v5630_v0, 0.0 }
 0x5e7   :  { %v5728_v57 = vsel %vm1043_vm8, %v5628_v56, 0.0 }
 0x5e8   :  { %v5533_v31 = vadd.f32 %v5532_v24, %v5531_v33  ;;  %v5729_v55 = vadd.f32 %v5728_v57, %v5727_v62 }
 0x5e9   :  { %v11255_v15 = vpop.f32.mrb[40].mxu1 }
 0x5ea   :  { %13274 = vst [vmem:[#allocation14_spill] sm:$0xff] %v11255_v15  ;;  %v5731_v42 = vadd.f32 %v5730_v3, %v5729_v55  ;;  %v11257_v44 = vpop.f32.mrb[41].mxu1  ;;  %v5535_v63 = vadd.f32 %v5534_v52, %v5533_v31  ;;  %v5633_v43 = vmul.f32 %v11255_v15, %v11255_v15  ;;  %v5540_v24 = vsel %vm1043_vm8, %v11255_v15, 0.0 }
 0x5eb   :  { %v5536_v13 = vsel %vm1043_vm8, %v11257_v44, 0.0  ;;  %v5631_v8 = vmul.f32 %v11257_v44, %v11257_v44  ;;  %v11264_v51 = vpop.f32.mrb[42].mxu1 }
 0x5ec   :  { %13275 = vst [vmem:[#allocation16_spill] sm:$0xff] %v11264_v51  ;;  %v5537_v45 = vadd.f32 %v5536_v13, %v5535_v63  ;;  %v5733_v20 = vadd.f32 %v5732_v19, %v5731_v42  ;;  %v11266_v11 = vpop.f32.mrb[43].mxu1  ;;  %v5634_v0 = vmul.f32 %v11264_v51, %v11264_v51  ;;  %v5738_v3 = vsel %vm1043_vm8, %v5633_v43, 0.0 }
 0x5ed   :  { %13276 = vst [vmem:[#allocation19_spill] sm:$0xff] %v11266_v11  ;;  %v5734_v47 = vsel %vm1043_vm8, %v5631_v8, 0.0  ;;  %v5538_v28 = vsel %vm1043_vm8, %v11266_v11, 0.0  ;;  %v5632_v56 = vmul.f32 %v11266_v11, %v11266_v11  ;;  %v5542_v52 = vsel %vm1043_vm8, %v11264_v51, 0.0 }
 0x5ee   :  { %v5735_v62 = vadd.f32 %v5734_v47, %v5733_v20  ;;  %v5539_v33 = vadd.f32 %v5538_v28, %v5537_v45  ;;  %v5740_v8 = vsel %vm1043_vm8, %v5634_v0, 0.0 }
 0x5ef   :  { %v5736_v57 = vsel %vm1043_vm8, %v5632_v56, 0.0 }
 0x5f0   :  { %v5541_v31 = vadd.f32 %v5540_v24, %v5539_v33  ;;  %v5737_v55 = vadd.f32 %v5736_v57, %v5735_v62 }
 0x5f1   :  { %v11283_v42 = vpop.f32.mrb[44].mxu1 }
 0x5f2   :  { %13277 = vst [vmem:[#allocation21_spill] sm:$0xff] %v11283_v42  ;;  %v5739_v63 = vadd.f32 %v5738_v3, %v5737_v55  ;;  %v11285_v19 = vpop.f32.mrb[45].mxu1  ;;  %v5543_v13 = vadd.f32 %v5542_v52, %v5541_v31  ;;  %v5637_v62 = vmul.f32 %v11283_v42, %v11283_v42  ;;  %v5548_v55 = vsel %vm1043_vm8, %v11283_v42, 0.0 }
 0x5f3   :  { %13278 = vst [vmem:[#allocation18_spill] sm:$0xff] %v11285_v19  ;;  %v5544_v45 = vsel %vm1043_vm8, %v11285_v19, 0.0  ;;  %v5635_v20 = vmul.f32 %v11285_v19, %v11285_v19  ;;  %v11292_v47 = vpop.f32.mrb[46].mxu1 }
 0x5f4   :  { %13279 = vst [vmem:[#allocation4_spill] sm:$0xff] %v11292_v47  ;;  %v5545_v43 = vadd.f32 %v5544_v45, %v5543_v13  ;;  %v5741_v28 = vadd.f32 %v5740_v8, %v5739_v63  ;;  %v11294_v56 = vpop.f32.mrb[47].mxu1  ;;  %v5638_v3 = vmul.f32 %v11292_v47, %v11292_v47  ;;  %v5746_v8 = vsel %vm1043_vm8, %v5637_v62, 0.0 }
 0x5f5   :  { %13280 = vst [vmem:[#allocation6_spill] sm:$0xff] %v11294_v56  ;;  %v5742_v33 = vsel %vm1043_vm8, %v5635_v20, 0.0  ;;  %v5546_v24 = vsel %vm1043_vm8, %v11294_v56, 0.0  ;;  %v5636_v0 = vmul.f32 %v11294_v56, %v11294_v56  ;;  %v5550_v45 = vsel %vm1043_vm8, %v11292_v47, 0.0 }
 0x5f6   :  { %v5743_v57 = vadd.f32 %v5742_v33, %v5741_v28  ;;  %v5547_v31 = vadd.f32 %v5546_v24, %v5545_v43  ;;  %v5748_v33 = vsel %vm1043_vm8, %v5638_v3, 0.0 }
 0x5f7   :  { %v5744_v52 = vsel %vm1043_vm8, %v5636_v0, 0.0 }
 0x5f8   :  { %v5549_v63 = vadd.f32 %v5548_v55, %v5547_v31  ;;  %v5745_v13 = vadd.f32 %v5744_v52, %v5743_v57 }
 0x5f9   :  { %v11311_v20 = vpop.f32.mrb[48].mxu1 }
 0x5fa   :  { %13281 = vst [vmem:[#allocation33_spill] sm:$0xff] %v11311_v20  ;;  %v5747_v56 = vadd.f32 %v5746_v8, %v5745_v13  ;;  %v11313_v28 = vpop.f32.mrb[49].mxu1  ;;  %v5551_v43 = vadd.f32 %v5550_v45, %v5549_v63  ;;  %v5641_v52 = vmul.f32 %v11311_v20, %v11311_v20 }
 0x5fb   :  { %13282 = vst [vmem:[#allocation12_spill] sm:$0xff] %v11313_v28  ;;  %v5552_v24 = vsel %vm1043_vm8, %v11313_v28, 0.0  ;;  %v5639_v0 = vmul.f32 %v11313_v28, %v11313_v28  ;;  %v11320_v57 = vpop.f32.mrb[50].mxu1  ;;  %v5556_v28 = vsel %vm1043_vm8, %v11311_v20, 0.0 }
 0x5fc   :  { %13283 = vst [vmem:[#allocation13_spill] sm:$0xff] %v11320_v57  ;;  %v5553_v62 = vadd.f32 %v5552_v24, %v5551_v43  ;;  %v5749_v31 = vadd.f32 %v5748_v33, %v5747_v56  ;;  %v11322_v55 = vpop.f32.mrb[51].mxu1  ;;  %v5642_v56 = vmul.f32 %v11320_v57, %v11320_v57  ;;  %v5558_v47 = vsel %vm1043_vm8, %v11320_v57, 0.0 }
 0x5fd   :  { %13284 = vst [vmem:[#allocation20_spill] sm:$0xff] %v11322_v55  ;;  %v5750_v13 = vsel %vm1043_vm8, %v5639_v0, 0.0  ;;  %v5554_v3 = vsel %vm1043_vm8, %v11322_v55, 0.0  ;;  %v5640_v63 = vmul.f32 %v11322_v55, %v11322_v55  ;;  %v5754_v0 = vsel %vm1043_vm8, %v5641_v52, 0.0 }
 0x5fe   :  { %v5751_v8 = vadd.f32 %v5750_v13, %v5749_v31  ;;  %v5555_v45 = vadd.f32 %v5554_v3, %v5553_v62  ;;  %v5756_v13 = vsel %vm1043_vm8, %v5642_v56, 0.0 }
 0x5ff   :  { %v5752_v43 = vsel %vm1043_vm8, %v5640_v63, 0.0 }
 0x600   :  { %v5557_v33 = vadd.f32 %v5556_v28, %v5555_v45  ;;  %v5753_v24 = vadd.f32 %v5752_v43, %v5751_v8 }
 0x601   :  { %v11339_v42 = vpop.f32.mrb[52].mxu1 }
 0x602   :  { %13285 = vst [vmem:[#allocation22_spill] sm:$0xff] %v11339_v42  ;;  %v5755_v55 = vadd.f32 %v5754_v0, %v5753_v24  ;;  %v11341_v31 = vpop.f32.mrb[53].mxu1  ;;  %v5559_v62 = vadd.f32 %v5558_v47, %v5557_v33  ;;  %v5645_v43 = vmul.f32 %v11339_v42, %v11339_v42 }
 0x603   :  { %13286 = vst [vmem:[#allocation24_spill] sm:$0xff] %v11341_v31  ;;  %v5560_v3 = vsel %vm1043_vm8, %v11341_v31, 0.0  ;;  %v5643_v28 = vmul.f32 %v11341_v31, %v11341_v31  ;;  %v11348_v63 = vpop.f32.mrb[54].mxu1  ;;  %v5564_v31 = vsel %vm1043_vm8, %v11339_v42, 0.0 }
 0x604   :  { %13287 = vst [vmem:[#allocation23_spill] sm:$0xff] %v11348_v63  ;;  %v5561_v52 = vadd.f32 %v5560_v3, %v5559_v62  ;;  %v5757_v8 = vadd.f32 %v5756_v13, %v5755_v55  ;;  %v11350_v45 = vpop.f32.mrb[55].mxu1  ;;  %v5646_v55 = vmul.f32 %v11348_v63, %v11348_v63  ;;  %v5566_v57 = vsel %vm1043_vm8, %v11348_v63, 0.0 }
 0x605   :  { %13288 = vst [vmem:[#allocation25_spill] sm:$0xff] %v11350_v45  ;;  %v5758_v24 = vsel %vm1043_vm8, %v5643_v28, 0.0  ;;  %v5562_v47 = vsel %vm1043_vm8, %v11350_v45, 0.0  ;;  %v5644_v56 = vmul.f32 %v11350_v45, %v11350_v45  ;;  %v5762_v28 = vsel %vm1043_vm8, %v5645_v43, 0.0 }
 0x606   :  { %v5759_v33 = vadd.f32 %v5758_v24, %v5757_v8  ;;  %v5563_v0 = vadd.f32 %v5562_v47, %v5561_v52  ;;  %v5764_v24 = vsel %vm1043_vm8, %v5646_v55, 0.0 }
 0x607   :  { %v5760_v62 = vsel %vm1043_vm8, %v5644_v56, 0.0 }
 0x608   :  { %v5565_v13 = vadd.f32 %v5564_v31, %v5563_v0  ;;  %v5761_v3 = vadd.f32 %v5760_v62, %v5759_v33 }
 0x609   :  { %v11367_v20 = vpop.f32.mrb[56].mxu1 }
 0x60a   :  { %13289 = vst [vmem:[#allocation27_spill] sm:$0xff] %v11367_v20  ;;  %v5763_v45 = vadd.f32 %v5762_v28, %v5761_v3  ;;  %v11369_v8 = vpop.f32.mrb[57].mxu1  ;;  %v5567_v52 = vadd.f32 %v5566_v57, %v5565_v13  ;;  %v5649_v62 = vmul.f32 %v11367_v20, %v11367_v20 }
 0x60b   :  { %13290 = vst [vmem:[#allocation29_spill] sm:$0xff] %v11369_v8  ;;  %v5568_v47 = vsel %vm1043_vm8, %v11369_v8, 0.0  ;;  %v5647_v31 = vmul.f32 %v11369_v8, %v11369_v8  ;;  %v11376_v56 = vpop.f32.mrb[58].mxu1  ;;  %v5572_v8 = vsel %vm1043_vm8, %v11367_v20, 0.0 }
 0x60c   :  { %13291 = vst [vmem:[#allocation26_spill] sm:$0xff] %v11376_v56  ;;  %v5569_v43 = vadd.f32 %v5568_v47, %v5567_v52  ;;  %v5765_v33 = vadd.f32 %v5764_v24, %v5763_v45  ;;  %v11378_v0 = vpop.f32.mrb[59].mxu1  ;;  %v5650_v45 = vmul.f32 %v11376_v56, %v11376_v56  ;;  %v5574_v63 = vsel %vm1043_vm8, %v11376_v56, 0.0 }
 0x60d   :  { %13292 = vst [vmem:[#allocation28_spill] sm:$0xff] %v11378_v0  ;;  %v5766_v3 = vsel %vm1043_vm8, %v5647_v31, 0.0  ;;  %v5570_v57 = vsel %vm1043_vm8, %v11378_v0, 0.0  ;;  %v5648_v55 = vmul.f32 %v11378_v0, %v11378_v0  ;;  %v5770_v31 = vsel %vm1043_vm8, %v5649_v62, 0.0 }
 0x60e   :  { %v5767_v13 = vadd.f32 %v5766_v3, %v5765_v33  ;;  %v5571_v28 = vadd.f32 %v5570_v57, %v5569_v43  ;;  %v5772_v3 = vsel %vm1043_vm8, %v5650_v45, 0.0 }
 0x60f   :  { %v5768_v52 = vsel %vm1043_vm8, %v5648_v55, 0.0 }
 0x610   :  { %v5573_v24 = vadd.f32 %v5572_v8, %v5571_v28  ;;  %v5769_v47 = vadd.f32 %v5768_v52, %v5767_v13 }
 0x611   :  { %v11395_v42 = vpop.f32.mrb[60].mxu1 }
 0x612   :  { %13293 = vst [vmem:[#allocation30_spill] sm:$0xff] %v11395_v42  ;;  %v5771_v0 = vadd.f32 %v5770_v31, %v5769_v47  ;;  %v11397_v33 = vpop.f32.mrb[61].mxu1  ;;  %v5575_v43 = vadd.f32 %v5574_v63, %v5573_v24  ;;  %v5653_v52 = vmul.f32 %v11395_v42, %v11395_v42 }
 0x613   :  { %13294 = vst [vmem:[#allocation31_spill] sm:$0xff] %v11397_v33  ;;  %v5576_v57 = vsel %vm1043_vm8, %v11397_v33, 0.0  ;;  %v5651_v8 = vmul.f32 %v11397_v33, %v11397_v33  ;;  %v11404_v55 = vpop.f32.mrb[62].mxu1  ;;  %v5580_v33 = vsel %vm1043_vm8, %v11395_v42, 0.0 }
 0x614   :  { %13295 = vst [vmem:[#allocation5_spill] sm:$0xff] %v11404_v55  ;;  %v5577_v62 = vadd.f32 %v5576_v57, %v5575_v43  ;;  %v5773_v13 = vadd.f32 %v5772_v3, %v5771_v0  ;;  %v11406_v28 = vpop.f32.mrb[63].mxu1  ;;  %v5654_v0 = vmul.f32 %v11404_v55, %v11404_v55  ;;  %v5582_v56 = vsel %vm1043_vm8, %v11404_v55, 0.0 }
 0x615   :  { %13296 = vst [vmem:[#allocation7_spill] sm:$0xff] %v11406_v28  ;;  %v5774_v47 = vsel %vm1043_vm8, %v5651_v8, 0.0  ;;  %v5578_v63 = vsel %vm1043_vm8, %v11406_v28, 0.0  ;;  %v5652_v45 = vmul.f32 %v11406_v28, %v11406_v28  ;;  %v5778_v8 = vsel %vm1043_vm8, %v5653_v52, 0.0 }
 0x616   :  { %v5775_v24 = vadd.f32 %v5774_v47, %v5773_v13  ;;  %v5579_v31 = vadd.f32 %v5578_v63, %v5577_v62  ;;  %v5780_v13 = vsel %vm1043_vm8, %v5654_v0, 0.0 }
 0x617   :  { %v5776_v43 = vsel %vm1043_vm8, %v5652_v45, 0.0 }
 0x618   :  { %v5581_v3 = vadd.f32 %v5580_v33, %v5579_v31  ;;  %v5777_v57 = vadd.f32 %v5776_v43, %v5775_v24 }
 0x61a   :  { %v5583_v20 = vadd.f32 %v5582_v56, %v5581_v3  ;;  %v5779_v19 = vadd.f32 %v5778_v8, %v5777_v57  ;;  %v11462_v57 = vld [vmem:[%s12820_s0 + $0x30] sm:$0xff]   ;;  %v11532_v8 = vld [vmem:[%s12820_s0 + $0x80] sm:$0xff]  }
 0x61b   :  { %13303 = vst [vmem:[#allocation34_spill] sm:$0xff] %v11462_v57  ;;  %13313 = vst [vmem:[#allocation44_spill] sm:$0xff] %v11532_v8  ;;  %v11594_v57 = vld [vmem:[%s12820_s0 + $0xc0] sm:$0xff]   ;;  %v13336_v8 = vld [vmem:[#allocation33_spill] sm:$0xff] }
 0x61c   :  { %v5584_v62 = vrot.slane %v5583_v20, 4  ;;  %v5781_v47 = vadd.f32 %v5780_v13, %v5779_v19  ;;  %13321 = vst [vmem:[#allocation52_spill] sm:$0xff] %v11594_v57  ;;  %v13327_v57 = vld [vmem:[#allocation6_spill] sm:$0xff] }
 0x61e   :  { %v5585_v63 = vadd.f32 %v5584_v62, %v5583_v20  ;;  %v5782_v42 = vrot.slane %v5781_v47, 4  ;;  %v11451_v20 = vld [vmem:[%s12820_s0 + $0x20] sm:$0xff]   ;;  %v11518_v62 = vld [vmem:[%s12820_s0 + $0x70] sm:$0xff]  }
 0x61f   :  { %13301 = vst [vmem:[#allocation15_spill] sm:$0xff] %v11451_v20  ;;  %13311 = vst [vmem:[#allocation42_spill] sm:$0xff] %v11518_v62  ;;  %v13322_v62 = vld [vmem:[#allocation32_spill] sm:$0xff]  ;;  %v13338_v20 = vld [vmem:[#allocation13_spill] sm:$0xff] }
 0x620   :  { %v5586_v28 = vrot.slane %v5585_v63, 2  ;;  %v5783_v51 = vadd.f32 %v5782_v42, %v5781_v47  ;;  %v11431_v42 = vld [vmem:[%s12820_s0] sm:$0xff]  }
 0x621   :  { %13297 = vst [vmem:[#allocation9_spill] sm:$0xff] %v11431_v42  ;;  %v11567_v47 = vld [vmem:[%s12820_s0 + $0xa0] sm:$0xff]   ;;  %v13346_v42 = vld [vmem:[#allocation23_spill] sm:$0xff] }
 0x622   :  { %v5587_v15 = vadd.f32 %v5586_v28, %v5585_v63  ;;  %v5784_v11 = vrot.slane %v5783_v51, 2  ;;  %v11457_v28 = vld [vmem:[%s12820_s0 + $0x28] sm:$0xff]   ;;  %v11471_v63 = vld [vmem:[%s12820_s0 + $0x38] sm:$0xff]   ;;  %13317 = vst [vmem:[#allocation48_spill] sm:$0xff] %v11567_v47  ;;  %v13334_v47 = vld [vmem:[#allocation20_spill] sm:$0xff] }
 0x623   :  { %13302 = vst [vmem:[#allocation17_spill] sm:$0xff] %v11457_v28  ;;  %13304 = vst [vmem:[#allocation35_spill] sm:$0xff] %v11471_v63  ;;  %v11581_v28 = vld [vmem:[%s12820_s0 + $0xb0] sm:$0xff]  }
 0x624   :  { %v5588_v45 = vrot.slane %v5587_v15, 1  ;;  %v5785_v33 = vadd.f32 %v5784_v11, %v5783_v51  ;;  %v11441_v51 = vld [vmem:[%s12820_s0 + $0x10] sm:$0xff]   ;;  %v11446_v11 = vld [vmem:[%s12820_s0 + $0x18] sm:$0xff]   ;;  %13319 = vst [vmem:[#allocation50_spill] sm:$0xff] %v11581_v28  ;;  %v13330_v28 = vld [vmem:[#allocation4_spill] sm:$0xff] }
 0x625   :  { %13299 = vst [vmem:[#allocation8_spill] sm:$0xff] %v11441_v51  ;;  %13300 = vst [vmem:[#allocation10_spill] sm:$0xff] %v11446_v11  ;;  %v13324_v63 = vld [vmem:[#allocation14_spill] sm:$0xff]  ;;  %v13340_v11 = vld [vmem:[#allocation24_spill] sm:$0xff] }
 0x626   :  { %v5589_v24 = vadd.f32 %v5588_v45, %v5587_v15  ;;  %v5786_v31 = vrot.slane %v5785_v33, 1  ;;  %v11436_v15 = vld [vmem:[%s12820_s0 + $0x8] sm:$0xff]   ;;  %v11476_v45 = vld [vmem:[%s12820_s0 + $0x40] sm:$0xff]  }
 0x627   :  { %13298 = vst [vmem:[#allocation11_spill] sm:$0xff] %v11436_v15  ;;  %13305 = vst [vmem:[#allocation36_spill] sm:$0xff] %v11476_v45  ;;  %v11589_v45 = vld [vmem:[%s12820_s0 + $0xb8] sm:$0xff]   ;;  %v13342_v51 = vld [vmem:[#allocation25_spill] sm:$0xff] }
 0x628   :  { %v11424_v52 = vmul.f32 0.001953125, %v5589_v24  ;;  %v5787_v43 = vadd.f32 %v5786_v31, %v5785_v33  ;;  %v11504_v33 = vld [vmem:[%s12820_s0 + $0x60] sm:$0xff]   ;;  %v11513_v31 = vld [vmem:[%s12820_s0 + $0x68] sm:$0xff]   ;;  %v11527_v24 = vld [vmem:[%s12820_s0 + $0x78] sm:$0xff]   ;;  %13320 = vst [vmem:[#allocation51_spill] sm:$0xff] %v11589_v45 }
 0x629   :  { %13309 = vst [vmem:[#allocation40_spill] sm:$0xff] %v11504_v33  ;;  %13310 = vst [vmem:[#allocation41_spill] sm:$0xff] %v11513_v31  ;;  %v13328_v45 = vld [vmem:[#allocation21_spill] sm:$0xff]  ;;  %v13344_v15 = vld [vmem:[#allocation22_spill] sm:$0xff] }
 0x62a   :  { %v5788_v55 = vmul.f32 0.001953125, %v5787_v43  ;;  %v5789_v56 = vmul.f32 %v11424_v52, %v11424_v52  ;;  %v11499_v43 = vld [vmem:[%s12820_s0 + $0x58] sm:$0xff]   ;;  %13312 = vst [vmem:[#allocation43_spill] sm:$0xff] %v11527_v24 }
 0x62b   :  { %13308 = vst [vmem:[#allocation39_spill] sm:$0xff] %v11499_v43  ;;  %v11572_v43 = vld [vmem:[%s12820_s0 + $0xa8] sm:$0xff]  }
 0x62c   :  { %v5790_v0 = vsub.f32 %v5788_v55, %v5789_v56  ;;  %v11485_v56 = vld [vmem:[%s12820_s0 + $0x48] sm:$0xff]   ;;  %v5455_v55 = vld [vmem:[%s12825_s5] sm:$0x1]  ;;  %13318 = vst [vmem:[#allocation49_spill] sm:$0xff] %v11572_v43 }
 0x62d   :  { %13306 = vst [vmem:[#allocation37_spill] sm:$0xff] %v11485_v56  ;;  %v11546_v56 = vld [vmem:[%s12820_s0 + $0x90] sm:$0xff]   ;;  %v13332_v43 = vld [vmem:[#allocation12_spill] sm:$0xff] }
 0x62e   :  { %v5791_v3 = vmax.f32 %v5790_v0, 0.0  ;;  %v11490_v0 = vld [vmem:[%s12820_s0 + $0x50] sm:$0xff]   ;;  %13315 = vst [vmem:[#allocation46_spill] sm:$0xff] %v11546_v56  ;;  %v13325_v56 = vld [vmem:[#allocation16_spill] sm:$0xff] }
 0x62f   :  { %13307 = vst [vmem:[#allocation38_spill] sm:$0xff] %v11490_v0  ;;  %v11558_v0 = vld [vmem:[%s12820_s0 + $0x98] sm:$0xff]  }
 0x630   :  { %v5792_v19 = vadd.f32 1e-05, %v5791_v3  ;;  %13316 = vst [vmem:[#allocation47_spill] sm:$0xff] %v11558_v0  ;;  %v13326_v0 = vld [vmem:[#allocation18_spill] sm:$0xff] }
 0x632   :  { %7557 = vrsqrt.f32 %v5792_v19  ;;  %v11541_v19 = vld [vmem:[%s12820_s0 + $0x88] sm:$0xff]  }
 0x633   :  { %13314 = vst [vmem:[#allocation45_spill] sm:$0xff] %v11541_v19 }
 0x63c   :  { %v7558_v3 = vpop.eup %7557 }
 0x63d   :  { %v5794_v24 = vmul.f32 %v7558_v3, %v5455_v55  ;;  %v13323_v3 = vld [vmem:[#allocation19_spill] sm:$0xff] }
 0x63f   :  { %v11601_v33 = vrot.slane %v5794_v24, %v13322_v62  ;;  %v11604_v13 = vmul.f32 %v5794_v24, %v11424_v52 }
 0x641   :  { %v11614_v31 = vmul.f32 %v11601_v33, %v10978_v48  ;;  %v11618_v52 = vmul.f32 %v11601_v33, %v10984_v7  ;;  %v11622_v24 = vmul.f32 %v10976_v60, %v11601_v33  ;;  %v11626_v19 = vmul.f32 %v10982_v41, %v11601_v33 }
 0x642   :  { %v11630_v55 = vmul.f32 %v11601_v33, %v11005_v16  ;;  %v11634_v48 = vmul.f32 %v11601_v33, %v11014_v6  ;;  %v11638_v7 = vmul.f32 %v11003_v4, %v11601_v33  ;;  %v11642_v60 = vmul.f32 %v11012_v39, %v11601_v33 }
 0x643   :  { %v11646_v41 = vmul.f32 %v11601_v33, %v11033_v37  ;;  %v11650_v16 = vmul.f32 %v11601_v33, %v11042_v58  ;;  %v11654_v6 = vmul.f32 %v11031_v25, %v11601_v33  ;;  %v11658_v4 = vmul.f32 %v11040_v59, %v11601_v33 }
 0x644   :  { %v11662_v39 = vmul.f32 %v11601_v33, %v11061_v12  ;;  %v11666_v37 = vmul.f32 %v11601_v33, %v11070_v23  ;;  %v11670_v58 = vmul.f32 %v11059_v34, %v11601_v33  ;;  %v11674_v25 = vmul.f32 %v11068_v36, %v11601_v33 }
 0x645   :  { %v11678_v59 = vmul.f32 %v11601_v33, %v11089_v40  ;;  %v11682_v12 = vmul.f32 %v11601_v33, %v11098_v54  ;;  %v11686_v23 = vmul.f32 %v11087_v5, %v11601_v33  ;;  %v11690_v34 = vmul.f32 %v11096_v27, %v11601_v33 }
 0x646   :  { %v11694_v36 = vmul.f32 %v11601_v33, %v11117_v2  ;;  %v11698_v40 = vmul.f32 %v11601_v33, %v11126_v49  ;;  %v11702_v54 = vmul.f32 %v11115_v46, %v11601_v33  ;;  %v11706_v5 = vmul.f32 %v11124_v10, %v11601_v33 }
 0x647   :  { %v11710_v27 = vmul.f32 %v11601_v33, %v11145_v50  ;;  %v11714_v2 = vmul.f32 %v11601_v33, %v11154_v22  ;;  %v11718_v49 = vmul.f32 %v11143_v53, %v11601_v33  ;;  %v11722_v46 = vmul.f32 %v11152_v9, %v11601_v33 }
 0x648   :  { %v11726_v10 = vmul.f32 %v11601_v33, %v11173_v17  ;;  %v11730_v50 = vmul.f32 %v11601_v33, %v11182_v29  ;;  %v11734_v22 = vmul.f32 %v11171_v35, %v11601_v33  ;;  %v11738_v53 = vmul.f32 %v11180_v32, %v11601_v33 }
 0x649   :  { %v11742_v9 = vmul.f32 %v11601_v33, %v11201_v61  ;;  %v11746_v17 = vmul.f32 %v11601_v33, %v11210_v18  ;;  %v11750_v29 = vmul.f32 %v11199_v21, %v11601_v33  ;;  %v11754_v35 = vmul.f32 %v11208_v30, %v11601_v33 }
 0x64a   :  { %v11758_v32 = vmul.f32 %v11601_v33, %v11229_v14  ;;  %v11762_v61 = vmul.f32 %v11601_v33, %v11238_v38  ;;  %v11766_v18 = vmul.f32 %v11227_v26, %v11601_v33  ;;  %v11770_v21 = vmul.f32 %v11236_v1, %v11601_v33 }
 0x64b   :  { %v11774_v30 = vmul.f32 %v11601_v33, %v11257_v44  ;;  %v11778_v14 = vmul.f32 %v11601_v33, %v13323_v3  ;;  %v11782_v38 = vmul.f32 %v13324_v63, %v11601_v33  ;;  %v11786_v26 = vmul.f32 %v13325_v56, %v11601_v33 }
 0x64c   :  { %v11790_v1 = vmul.f32 %v11601_v33, %v13326_v0  ;;  %v11794_v44 = vmul.f32 %v11601_v33, %v13327_v57  ;;  %v11798_v3 = vmul.f32 %v13328_v45, %v11601_v33  ;;  %v11802_v63 = vmul.f32 %v13330_v28, %v11601_v33  ;;  %v5456_v28 = vld [vmem:[%s12826_s6] sm:$0x1] }
 0x64d   :  { %v11806_v56 = vmul.f32 %v11601_v33, %v13332_v43  ;;  %v11810_v0 = vmul.f32 %v11601_v33, %v13334_v47  ;;  %v11814_v57 = vmul.f32 %v13336_v8, %v11601_v33  ;;  %v11818_v45 = vmul.f32 %v13338_v20, %v11601_v33 }
 0x64e   :  { %13329 = vst [vmem:[#allocation32_spill] sm:$0xff] %v11798_v3  ;;  %13331 = vst [vmem:[#allocation19_spill] sm:$0xff] %v11802_v63  ;;  %v11825_v43 = vmul.f32 %v11601_v33, %v13340_v11  ;;  %v11829_v47 = vmul.f32 %v11601_v33, %v13342_v51  ;;  %v11833_v8 = vmul.f32 %v13344_v15, %v11601_v33  ;;  %v11847_v11 = vld [vmem:[%s12820_s0 + $0xd0] sm:$0xff]   ;;  %v13350_v51 = vld [vmem:[#allocation29_spill] sm:$0xff] }
 0x64f   :  { %13333 = vst [vmem:[#allocation14_spill] sm:$0xff] %v11806_v56  ;;  %13335 = vst [vmem:[#allocation16_spill] sm:$0xff] %v11810_v0  ;;  %v11837_v20 = vmul.f32 %v13346_v42, %v11601_v33  ;;  %v13352_v15 = vld [vmem:[#allocation28_spill] sm:$0xff]  ;;  %v13354_v42 = vld [vmem:[#allocation27_spill] sm:$0xff] }
 0x650   :  { %13337 = vst [vmem:[#allocation18_spill] sm:$0xff] %v11814_v57  ;;  %13339 = vst [vmem:[#allocation6_spill] sm:$0xff] %v11818_v45  ;;  %v11842_v45 = vld [vmem:[%s12820_s0 + $0xc8] sm:$0xff]   ;;  %v11868_v0 = vld [vmem:[%s12820_s0 + $0xd8] sm:$0xff]  }
 0x651   :  { %13341 = vst [vmem:[#allocation21_spill] sm:$0xff] %v11825_v43  ;;  %13343 = vst [vmem:[#allocation4_spill] sm:$0xff] %v11829_v47  ;;  %v11851_v47 = vmul.f32 %v11601_v33, %v13350_v51  ;;  %v13356_v43 = vld [vmem:[#allocation26_spill] sm:$0xff]  ;;  %v11873_v51 = vld [vmem:[%s12820_s0 + $0xe0] sm:$0xff]  }
 0x652   :  { %13345 = vst [vmem:[#allocation12_spill] sm:$0xff] %v11833_v8  ;;  %13347 = vst [vmem:[#allocation20_spill] sm:$0xff] %v11837_v20  ;;  %v11855_v8 = vmul.f32 %v11601_v33, %v13352_v15  ;;  %v11859_v20 = vmul.f32 %v13354_v42, %v11601_v33  ;;  %v11863_v57 = vmul.f32 %v13356_v43, %v11601_v33  ;;  %v13360_v15 = vld [vmem:[#allocation31_spill] sm:$0xff]  ;;  %v13364_v43 = vld [vmem:[#allocation30_spill] sm:$0xff] }
 0x653   :  { %13348 = vst [vmem:[#allocation33_spill] sm:$0xff] %v11842_v45  ;;  %13349 = vst [vmem:[#allocation13_spill] sm:$0xff] %v11847_v11  ;;  %v13362_v42 = vld [vmem:[#allocation7_spill] sm:$0xff]  ;;  %v11894_v63 = vld [vmem:[%s12820_s0 + $0xe8] sm:$0xff]  }
 0x654   :  { %13351 = vst [vmem:[#allocation24_spill] sm:$0xff] %v11851_v47  ;;  %13353 = vst [vmem:[#allocation25_spill] sm:$0xff] %v11855_v8  ;;  %v11877_v8 = vmul.f32 %v11601_v33, %v13360_v15  ;;  %v13366_v47 = vld [vmem:[#allocation5_spill] sm:$0xff]  ;;  %v5866_v15 = vsub.f32 %v5456_v28, %v11604_v13  ;;  %v13371_v13 = vmov %v11798_v3 }
 0x655   :  { %13355 = vst [vmem:[#allocation22_spill] sm:$0xff] %v11859_v20  ;;  %13357 = vst [vmem:[#allocation23_spill] sm:$0xff] %v11863_v57  ;;  %v11881_v20 = vmul.f32 %v11601_v33, %v13362_v42  ;;  %v11885_v57 = vmul.f32 %v13364_v43, %v11601_v33  ;;  %v11889_v56 = vmul.f32 %v13366_v47, %v11601_v33  ;;  %v11903_v43 = vld [vmem:[%s12820_s0 + $0xf0] sm:$0xff]   ;;  %v11908_v33 = vld [vmem:[%s12820_s0 + $0xf8] sm:$0xff]  }
 0x656   :  { %13358 = vst [vmem:[#allocation29_spill] sm:$0xff] %v11868_v0  ;;  %13359 = vst [vmem:[#allocation28_spill] sm:$0xff] %v11873_v51  ;;  %v13372_v3 = vld [vmem:[#allocation19_spill] sm:$0xff]  ;;  %v13374_v45 = vld [vmem:[#allocation16_spill] sm:$0xff] }
 0x657   :  { %13361 = vst [vmem:[#allocation27_spill] sm:$0xff] %v11877_v8  ;;  %13363 = vst [vmem:[#allocation26_spill] sm:$0xff] %v11881_v20  ;;  %v11915_v20 = vrot.slane %v5866_v15, %v13322_v62  ;;  %v13375_v8 = vld [vmem:[#allocation18_spill] sm:$0xff] }
 0x658   :  { %13365 = vst [vmem:[#allocation31_spill] sm:$0xff] %v11885_v57  ;;  %13367 = vst [vmem:[#allocation7_spill] sm:$0xff] %v11889_v56  ;;  %v13373_v56 = vld [vmem:[#allocation14_spill] sm:$0xff] }
 0x659   :  { %13368 = vst [vmem:[#allocation30_spill] sm:$0xff] %v11894_v63  ;;  %13369 = vst [vmem:[#allocation5_spill] sm:$0xff] %v11903_v43  ;;  %v11926_v42 = vadd.f32 %v11915_v20, %v11614_v31  ;;  %v11930_v62 = vadd.f32 %v11915_v20, %v11618_v52  ;;  %v11934_v15 = vadd.f32 %v11915_v20, %v11622_v24  ;;  %v13376_v28 = vld [vmem:[#allocation6_spill] sm:$0xff]  ;;  %v13380_v43 = vld [vmem:[#allocation4_spill] sm:$0xff] }
 0x65a   :  { %13370 = vst [vmem:[#allocation53_spill] sm:$0xff] %v11908_v33  ;;  %v11938_v57 = vadd.f32 %v11915_v20, %v11626_v19  ;;  %v11942_v47 = vadd.f32 %v11915_v20, %v11630_v55  ;;  %v11946_v31 = vadd.f32 %v11915_v20, %v11634_v48  ;;  %v11950_v52 = vadd.f32 %v11915_v20, %v11638_v7  ;;  %v13378_v33 = vld [vmem:[#allocation21_spill] sm:$0xff]  ;;  %v13382_v63 = vld [vmem:[#allocation12_spill] sm:$0xff] }
 0x65b   :  { %v11954_v24 = vadd.f32 %v11915_v20, %v11642_v60  ;;  %v11958_v19 = vadd.f32 %v11915_v20, %v11646_v41  ;;  %v11962_v55 = vadd.f32 %v11915_v20, %v11650_v16  ;;  %v11966_v48 = vadd.f32 %v11915_v20, %v11654_v6  ;;  %v13384_v51 = vld [vmem:[#allocation20_spill] sm:$0xff]  ;;  %v13388_v11 = vld [vmem:[#allocation25_spill] sm:$0xff] }
 0x65c   :  { %v11970_v7 = vadd.f32 %v11915_v20, %v11658_v4  ;;  %v11974_v60 = vadd.f32 %v11915_v20, %v11662_v39  ;;  %v11978_v41 = vadd.f32 %v11915_v20, %v11666_v37  ;;  %v11982_v16 = vadd.f32 %v11915_v20, %v11670_v58  ;;  %v13386_v0 = vld [vmem:[#allocation24_spill] sm:$0xff] }
 0x65d   :  { %v11986_v6 = vadd.f32 %v11915_v20, %v11674_v25  ;;  %v11990_v4 = vadd.f32 %v11915_v20, %v11678_v59  ;;  %v11994_v39 = vadd.f32 %v11915_v20, %v11682_v12  ;;  %v11998_v37 = vadd.f32 %v11915_v20, %v11686_v23 }
 0x65e   :  { %v12002_v58 = vadd.f32 %v11915_v20, %v11690_v34  ;;  %v12006_v25 = vadd.f32 %v11915_v20, %v11694_v36  ;;  %v12010_v59 = vadd.f32 %v11915_v20, %v11698_v40  ;;  %v12014_v12 = vadd.f32 %v11915_v20, %v11702_v54 }
 0x65f   :  { %v12018_v23 = vadd.f32 %v11915_v20, %v11706_v5  ;;  %v12022_v34 = vadd.f32 %v11915_v20, %v11710_v27  ;;  %v12026_v36 = vadd.f32 %v11915_v20, %v11714_v2  ;;  %v12030_v40 = vadd.f32 %v11915_v20, %v11718_v49 }
 0x660   :  { %v12034_v54 = vadd.f32 %v11915_v20, %v11722_v46  ;;  %v12038_v5 = vadd.f32 %v11915_v20, %v11726_v10  ;;  %v12042_v27 = vadd.f32 %v11915_v20, %v11730_v50  ;;  %v12046_v2 = vadd.f32 %v11915_v20, %v11734_v22 }
 0x661   :  { %v12050_v49 = vadd.f32 %v11915_v20, %v11738_v53  ;;  %v12054_v46 = vadd.f32 %v11915_v20, %v11742_v9  ;;  %v12058_v10 = vadd.f32 %v11915_v20, %v11746_v17  ;;  %v12062_v50 = vadd.f32 %v11915_v20, %v11750_v29 }
 0x662   :  { %v12066_v22 = vadd.f32 %v11915_v20, %v11754_v35  ;;  %v12070_v53 = vadd.f32 %v11915_v20, %v11758_v32  ;;  %v12074_v9 = vadd.f32 %v11915_v20, %v11762_v61  ;;  %v12078_v17 = vadd.f32 %v11915_v20, %v11766_v18 }
 0x663   :  { %v12082_v29 = vadd.f32 %v11915_v20, %v11770_v21  ;;  %v12086_v35 = vadd.f32 %v11915_v20, %v11774_v30  ;;  %v12090_v32 = vadd.f32 %v11915_v20, %v11778_v14  ;;  %v12094_v61 = vadd.f32 %v11915_v20, %v11782_v38 }
 0x664   :  { %v12098_v18 = vadd.f32 %v11915_v20, %v11786_v26  ;;  %v12102_v21 = vadd.f32 %v11915_v20, %v11790_v1  ;;  %v12106_v30 = vadd.f32 %v11915_v20, %v11794_v44  ;;  %v12110_v14 = vadd.f32 %v11915_v20, %v13371_v13 }
 0x665   :  { %v12114_v38 = vadd.f32 %v11915_v20, %v13372_v3  ;;  %v12118_v26 = vadd.f32 %v11915_v20, %v13373_v56  ;;  %v12122_v1 = vadd.f32 %v11915_v20, %v13374_v45  ;;  %v12126_v44 = vadd.f32 %v11915_v20, %v13375_v8 }
 0x666   :  { %v12130_v13 = vadd.f32 %v11915_v20, %v13376_v28  ;;  %v12134_v3 = vadd.f32 %v11915_v20, %v13378_v33  ;;  %v12138_v56 = vadd.f32 %v11915_v20, %v13380_v43  ;;  %v12142_v45 = vadd.f32 %v11915_v20, %v13382_v63 }
 0x667   :  { %v12146_v8 = vadd.f32 %v11915_v20, %v13384_v51  ;;  %v12150_v28 = vadd.f32 %v11915_v20, %v13386_v0  ;;  %v12154_v33 = vadd.f32 %v11915_v20, %v13388_v11 }
 0x668   :  { %13377 = vst [vmem:[#allocation32_spill] sm:$0xff] %v12130_v13  ;;  %13379 = vst [vmem:[#allocation19_spill] sm:$0xff] %v12134_v3  ;;  %v13390_v3 = vld [vmem:[#allocation22_spill] sm:$0xff] }
 0x669   :  { %13381 = vst [vmem:[#allocation14_spill] sm:$0xff] %v12138_v56  ;;  %13383 = vst [vmem:[#allocation16_spill] sm:$0xff] %v12142_v45  ;;  %v12158_v43 = vadd.f32 %v11915_v20, %v13390_v3  ;;  %v13392_v56 = vld [vmem:[#allocation23_spill] sm:$0xff] }
 0x66a   :  { %13385 = vst [vmem:[#allocation18_spill] sm:$0xff] %v12146_v8  ;;  %13387 = vst [vmem:[#allocation6_spill] sm:$0xff] %v12150_v28  ;;  %v12162_v63 = vadd.f32 %v11915_v20, %v13392_v56  ;;  %v13394_v45 = vld [vmem:[#allocation27_spill] sm:$0xff]  ;;  %v13396_v8 = vld [vmem:[#allocation26_spill] sm:$0xff] }
 0x66b   :  { %13389 = vst [vmem:[#allocation21_spill] sm:$0xff] %v12154_v33  ;;  %13391 = vst [vmem:[#allocation4_spill] sm:$0xff] %v12158_v43  ;;  %v12166_v51 = vadd.f32 %v11915_v20, %v13394_v45  ;;  %v12170_v0 = vadd.f32 %v11915_v20, %v13396_v8  ;;  %v13398_v28 = vld [vmem:[#allocation31_spill] sm:$0xff]  ;;  %v13401_v43 = vld [vmem:[#allocation9_spill] sm:$0xff] }
 0x66c   :  { %13393 = vst [vmem:[#allocation12_spill] sm:$0xff] %v12162_v63  ;;  %v12174_v11 = vadd.f32 %v11915_v20, %v13398_v28  ;;  %v13399_v33 = vld [vmem:[#allocation7_spill] sm:$0xff]  ;;  %v13402_v56 = vunpack.c.l.bf16 %v13401_v43  ;;  %v13403_v45 = vunpack.c.h.bf16 %v13401_v43 }
 0x66d   :  { %13395 = vst [vmem:[#allocation20_spill] sm:$0xff] %v12166_v51  ;;  %13397 = vst [vmem:[#allocation24_spill] sm:$0xff] %v12170_v0  ;;  %v12178_v3 = vadd.f32 %v11915_v20, %v13399_v33  ;;  %v13404_v8 = vld [vmem:[#allocation11_spill] sm:$0xff]  ;;  %v13407_v33 = vld [vmem:[#allocation8_spill] sm:$0xff] }
 0x66e   :  { %v12183_v63 = vadd.f32 %v13402_v56, %v11926_v42  ;;  %v12188_v51 = vadd.f32 %v13403_v45, %v11930_v62  ;;  %v13405_v0 = vunpack.c.l.bf16 %v13404_v8  ;;  %v13406_v28 = vunpack.c.h.bf16 %v13404_v8  ;;  %v13410_v56 = vld [vmem:[#allocation10_spill] sm:$0xff]  ;;  %v13413_v8 = vld [vmem:[#allocation15_spill] sm:$0xff] }
 0x66f   :  { %13400 = vst [vmem:[#allocation25_spill] sm:$0xff] %v12178_v3  ;;  %v13408_v3 = vunpack.c.l.bf16 %v13407_v33  ;;  %v13409_v43 = vunpack.c.h.bf16 %v13407_v33  ;;  %v13411_v45 = vunpack.c.l.bf16 %v13410_v56  ;;  %v13416_v33 = vld [vmem:[#allocation17_spill] sm:$0xff] }
 0x670   :  { %v12193_v13 = vadd.f32 %v13405_v0, %v11934_v15  ;;  %v12198_v20 = vadd.f32 %v13406_v28, %v11938_v57  ;;  %v13412_v0 = vunpack.c.h.bf16 %v13410_v56  ;;  %v13414_v28 = vunpack.c.l.bf16 %v13413_v8 }
 0x671   :  { %v12203_v42 = vadd.f32 %v13408_v3, %v11942_v47  ;;  %v12208_v62 = vadd.f32 %v13409_v43, %v11946_v31  ;;  %v12213_v15 = vadd.f32 %v13411_v45, %v11950_v52  ;;  %v13415_v3 = vunpack.c.h.bf16 %v13413_v8  ;;  %v13419_v45 = vld [vmem:[#allocation34_spill] sm:$0xff] }
 0x672   :  { %v12218_v57 = vadd.f32 %v13412_v0, %v11954_v24  ;;  %v12223_v47 = vadd.f32 %v13414_v28, %v11958_v19  ;;  %v13417_v43 = vunpack.c.l.bf16 %v13416_v33  ;;  %v13418_v56 = vunpack.c.h.bf16 %v13416_v33  ;;  %v13422_v28 = vld [vmem:[#allocation35_spill] sm:$0xff] }
 0x673   :  { %v12228_v31 = vadd.f32 %v13415_v3, %v11962_v55  ;;  %v13420_v0 = vunpack.c.l.bf16 %v13419_v45  ;;  %v13421_v8 = vunpack.c.h.bf16 %v13419_v45  ;;  %v13423_v3 = vunpack.c.l.bf16 %v13422_v28 }
 0x674   :  { %v12233_v52 = vadd.f32 %v13417_v43, %v11966_v48  ;;  %v12238_v24 = vadd.f32 %v13418_v56, %v11970_v7  ;;  %v13424_v33 = vunpack.c.h.bf16 %v13422_v28  ;;  %v13425_v43 = vld [vmem:[#allocation36_spill] sm:$0xff] }
 0x675   :  { %v12243_v19 = vadd.f32 %v13420_v0, %v11974_v60  ;;  %v12248_v55 = vadd.f32 %v13421_v8, %v11978_v41  ;;  %v12253_v48 = vadd.f32 %v13423_v3, %v11982_v16  ;;  %v13426_v56 = vunpack.c.l.bf16 %v13425_v43  ;;  %v13428_v0 = vld [vmem:[#allocation37_spill] sm:$0xff]  ;;  %v13431_v3 = vld [vmem:[#allocation38_spill] sm:$0xff] }
 0x676   :  { %v12258_v7 = vadd.f32 %v13424_v33, %v11986_v6  ;;  %v13427_v45 = vunpack.c.h.bf16 %v13425_v43  ;;  %v13429_v8 = vunpack.c.l.bf16 %v13428_v0  ;;  %v13430_v28 = vunpack.c.h.bf16 %v13428_v0 }
 0x677   :  { %v12263_v60 = vadd.f32 %v13426_v56, %v11990_v4  ;;  %v13432_v33 = vunpack.c.l.bf16 %v13431_v3  ;;  %v13433_v43 = vunpack.c.h.bf16 %v13431_v3  ;;  %v13434_v56 = vld [vmem:[#allocation39_spill] sm:$0xff] }
 0x678   :  { %v12268_v41 = vadd.f32 %v13427_v45, %v11994_v39  ;;  %v12273_v16 = vadd.f32 %v13429_v8, %v11998_v37  ;;  %v12278_v6 = vadd.f32 %v13430_v28, %v12002_v58  ;;  %v13435_v45 = vunpack.c.l.bf16 %v13434_v56  ;;  %v13437_v8 = vld [vmem:[#allocation40_spill] sm:$0xff] }
 0x679   :  { %v12283_v4 = vadd.f32 %v13432_v33, %v12006_v25  ;;  %v12288_v39 = vadd.f32 %v13433_v43, %v12010_v59  ;;  %v13436_v0 = vunpack.c.h.bf16 %v13434_v56  ;;  %v13438_v28 = vunpack.c.l.bf16 %v13437_v8  ;;  %v13440_v33 = vld [vmem:[#allocation41_spill] sm:$0xff] }
 0x67a   :  { %v12293_v37 = vadd.f32 %v13435_v45, %v12014_v12  ;;  %v13439_v3 = vunpack.c.h.bf16 %v13437_v8  ;;  %v13441_v43 = vunpack.c.l.bf16 %v13440_v33  ;;  %v13442_v56 = vunpack.c.h.bf16 %v13440_v33  ;;  %v13443_v45 = vld [vmem:[#allocation42_spill] sm:$0xff] }
 0x67b   :  { %v12298_v58 = vadd.f32 %v13436_v0, %v12018_v23  ;;  %v12303_v25 = vadd.f32 %v13438_v28, %v12022_v34  ;;  %v13444_v0 = vunpack.c.l.bf16 %v13443_v45  ;;  %v13445_v8 = vunpack.c.h.bf16 %v13443_v45  ;;  %v13446_v28 = vld [vmem:[#allocation43_spill] sm:$0xff] }
 0x67c   :  { %v12308_v59 = vadd.f32 %v13439_v3, %v12026_v36  ;;  %v12313_v12 = vadd.f32 %v13441_v43, %v12030_v40  ;;  %v12318_v23 = vadd.f32 %v13442_v56, %v12034_v54  ;;  %v13447_v3 = vunpack.c.l.bf16 %v13446_v28  ;;  %v13449_v43 = vld [vmem:[#allocation44_spill] sm:$0xff] }
 0x67d   :  { %v12323_v34 = vadd.f32 %v13444_v0, %v12038_v5  ;;  %v12328_v36 = vadd.f32 %v13445_v8, %v12042_v27  ;;  %v13448_v33 = vunpack.c.h.bf16 %v13446_v28  ;;  %v13450_v56 = vunpack.c.l.bf16 %v13449_v43  ;;  %v13452_v0 = vld [vmem:[#allocation45_spill] sm:$0xff] }
 0x67e   :  { %v12333_v40 = vadd.f32 %v13447_v3, %v12046_v2  ;;  %v13451_v45 = vunpack.c.h.bf16 %v13449_v43  ;;  %v13453_v8 = vunpack.c.l.bf16 %v13452_v0  ;;  %v13454_v28 = vunpack.c.h.bf16 %v13452_v0  ;;  %v13455_v3 = vld [vmem:[#allocation46_spill] sm:$0xff] }
 0x67f   :  { %v12338_v54 = vadd.f32 %v13448_v33, %v12050_v49  ;;  %v12343_v5 = vadd.f32 %v13450_v56, %v12054_v46  ;;  %v13456_v33 = vunpack.c.l.bf16 %v13455_v3  ;;  %v13457_v43 = vunpack.c.h.bf16 %v13455_v3  ;;  %v13458_v56 = vld [vmem:[#allocation47_spill] sm:$0xff] }
 0x680   :  { %v12348_v27 = vadd.f32 %v13451_v45, %v12058_v10  ;;  %v12353_v2 = vadd.f32 %v13453_v8, %v12062_v50  ;;  %v12358_v49 = vadd.f32 %v13454_v28, %v12066_v22  ;;  %v13459_v45 = vunpack.c.l.bf16 %v13458_v56  ;;  %v13461_v8 = vld [vmem:[#allocation48_spill] sm:$0xff] }
 0x681   :  { %v12363_v46 = vadd.f32 %v13456_v33, %v12070_v53  ;;  %v12368_v10 = vadd.f32 %v13457_v43, %v12074_v9  ;;  %v13460_v0 = vunpack.c.h.bf16 %v13458_v56  ;;  %v13462_v28 = vunpack.c.l.bf16 %v13461_v8  ;;  %v13464_v33 = vld [vmem:[#allocation49_spill] sm:$0xff] }
 0x682   :  { %v12373_v50 = vadd.f32 %v13459_v45, %v12078_v17  ;;  %v13463_v3 = vunpack.c.h.bf16 %v13461_v8  ;;  %v13465_v43 = vunpack.c.l.bf16 %v13464_v33  ;;  %v13466_v56 = vunpack.c.h.bf16 %v13464_v33  ;;  %v13467_v45 = vld [vmem:[#allocation50_spill] sm:$0xff] }
 0x683   :  { %v12378_v22 = vadd.f32 %v13460_v0, %v12082_v29  ;;  %v12383_v53 = vadd.f32 %v13462_v28, %v12086_v35  ;;  %v13468_v0 = vunpack.c.l.bf16 %v13467_v45  ;;  %v13469_v8 = vunpack.c.h.bf16 %v13467_v45  ;;  %v13470_v28 = vld [vmem:[#allocation51_spill] sm:$0xff] }
 0x684   :  { %v12388_v9 = vadd.f32 %v13463_v3, %v12090_v32  ;;  %v12393_v17 = vadd.f32 %v13465_v43, %v12094_v61  ;;  %v12398_v29 = vadd.f32 %v13466_v56, %v12098_v18  ;;  %v13471_v3 = vunpack.c.l.bf16 %v13470_v28  ;;  %v13475_v43 = vld [vmem:[#allocation52_spill] sm:$0xff] }
 0x685   :  { %v12403_v35 = vadd.f32 %v13468_v0, %v12102_v21  ;;  %v12408_v32 = vadd.f32 %v13469_v8, %v12106_v30  ;;  %v13473_v33 = vunpack.c.h.bf16 %v13470_v28  ;;  %v13476_v56 = vunpack.c.l.bf16 %v13475_v43  ;;  %v13480_v0 = vld [vmem:[#allocation33_spill] sm:$0xff] }
 0x686   :  { %v12413_v61 = vadd.f32 %v13471_v3, %v12110_v14  ;;  %v13478_v45 = vunpack.c.h.bf16 %v13475_v43  ;;  %v13481_v8 = vunpack.c.l.bf16 %v13480_v0  ;;  %v13483_v3 = vld [vmem:[#allocation32_spill] sm:$0xff]  ;;  %v13484_v28 = vunpack.c.h.bf16 %v13480_v0 }
 0x687   :  { %v12418_v18 = vadd.f32 %v13473_v33, %v12114_v38  ;;  %v12423_v21 = vadd.f32 %v13476_v56, %v12118_v26  ;;  %v13486_v33 = vld [vmem:[#allocation19_spill] sm:$0xff]  ;;  %v13490_v56 = vld [vmem:[#allocation14_spill] sm:$0xff] }
 0x688   :  { %13472 = vst [vmem:[#allocation22_spill] sm:$0xff] %v12413_v61  ;;  %v12428_v30 = vadd.f32 %v13478_v45, %v12122_v1  ;;  %v12433_v14 = vadd.f32 %v13481_v8, %v12126_v44  ;;  %v12438_v38 = vadd.f32 %v13484_v28, %v13483_v3  ;;  %v13493_v45 = vld [vmem:[#allocation16_spill] sm:$0xff]  ;;  %v13497_v8 = vld [vmem:[#allocation18_spill] sm:$0xff] }
 0x689   :  { %13474 = vst [vmem:[#allocation23_spill] sm:$0xff] %v12418_v18  ;;  %13477 = vst [vmem:[#allocation27_spill] sm:$0xff] %v12423_v21  ;;  %v13487_v18 = vld [vmem:[#allocation13_spill] sm:$0xff]  ;;  %v13500_v28 = vld [vmem:[#allocation6_spill] sm:$0xff] }
 0x68a   :  { %13479 = vst [vmem:[#allocation26_spill] sm:$0xff] %v12428_v30  ;;  %13482 = vst [vmem:[#allocation31_spill] sm:$0xff] %v12433_v14  ;;  %v13488_v61 = vunpack.c.l.bf16 %v13487_v18  ;;  %v13491_v43 = vunpack.c.h.bf16 %v13487_v18  ;;  %v13494_v30 = vld [vmem:[#allocation29_spill] sm:$0xff] }
 0x68b   :  { %13485 = vst [vmem:[#allocation7_spill] sm:$0xff] %v12438_v38  ;;  %v13495_v21 = vunpack.c.l.bf16 %v13494_v30  ;;  %v13498_v0 = vunpack.c.h.bf16 %v13494_v30  ;;  %v13501_v38 = vld [vmem:[#allocation28_spill] sm:$0xff] }
 0x68c   :  { %v12443_v26 = vadd.f32 %v13488_v61, %v13486_v33  ;;  %v12448_v1 = vadd.f32 %v13491_v43, %v13490_v56  ;;  %v13502_v14 = vunpack.c.l.bf16 %v13501_v38  ;;  %v13503_v33 = vld [vmem:[#allocation21_spill] sm:$0xff]  ;;  %v13504_v18 = vunpack.c.h.bf16 %v13501_v38  ;;  %v13506_v43 = vld [vmem:[#allocation4_spill] sm:$0xff] }
 0x68d   :  { %v12453_v44 = vadd.f32 %v13495_v21, %v13493_v45  ;;  %v12458_v3 = vadd.f32 %v13498_v0, %v13497_v8  ;;  %v13509_v45 = vld [vmem:[#allocation12_spill] sm:$0xff] }
 0x68e   :  { %13489 = vst [vmem:[#allocation9_spill] sm:$0xff] %v12443_v26  ;;  %13492 = vst [vmem:[#allocation11_spill] sm:$0xff] %v12448_v1  ;;  %v12463_v61 = vadd.f32 %v13502_v14, %v13500_v28  ;;  %v12468_v56 = vadd.f32 %v13504_v18, %v13503_v33  ;;  %v13507_v1 = vld [vmem:[#allocation30_spill] sm:$0xff]  ;;  %v13511_v0 = vld [vmem:[#allocation20_spill] sm:$0xff] }
 0x68f   :  { %13496 = vst [vmem:[#allocation8_spill] sm:$0xff] %v12453_v44  ;;  %13499 = vst [vmem:[#allocation10_spill] sm:$0xff] %v12458_v3  ;;  %v13508_v26 = vunpack.c.l.bf16 %v13507_v1  ;;  %v13510_v30 = vunpack.c.h.bf16 %v13507_v1  ;;  %v13512_v3 = vld [vmem:[#allocation5_spill] sm:$0xff]  ;;  %v13514_v28 = vld [vmem:[#allocation24_spill] sm:$0xff] }
 0x690   :  { %13505 = vst [vmem:[#allocation15_spill] sm:$0xff] %v12468_v56  ;;  %v13513_v44 = vunpack.c.l.bf16 %v13512_v3  ;;  %v13515_v38 = vunpack.c.h.bf16 %v13512_v3  ;;  %v13516_v18 = vld [vmem:[#allocation53_spill] sm:$0xff]  ;;  %v6132_v3 = vmax.f32 %v12198_v20, 0.0  ;;  %v6142_v20 = vmax.f32 %v12248_v55, 0.0 }
 0x691   :  { %v12473_v21 = vadd.f32 %v13508_v26, %v13506_v43  ;;  %v12478_v8 = vadd.f32 %v13510_v30, %v13509_v45  ;;  %v13517_v56 = vunpack.c.l.bf16 %v13516_v18  ;;  %v13518_v43 = vld [vmem:[#allocation25_spill] sm:$0xff]  ;;  %v13519_v1 = vunpack.c.h.bf16 %v13516_v18 }
 0x692   :  { %v12483_v14 = vadd.f32 %v13513_v44, %v13511_v0  ;;  %v12488_v33 = vadd.f32 %v13515_v38, %v13514_v28  ;;  %v6129_v30 = vmax.f32 %v12183_v63, 0.0  ;;  %v6130_v44 = vmax.f32 %v12188_v51, 0.0  ;;  %6196 = vst.msk [vmem:[%s12827_s7 + $0x18] sm:$0xff] %vm1043_vm8, %v6132_v3  ;;  %6206 = vst.msk [vmem:[%s12827_s7 + $0x68] sm:$0xff] %vm1043_vm8, %v6142_v20 }
 0x693   :  { %v12493_v26 = vadd.f32 %v13517_v56, %v12174_v11  ;;  %v12498_v45 = vadd.f32 %v13519_v1, %v13518_v43  ;;  %v6131_v0 = vmax.f32 %v12193_v13, 0.0  ;;  %v6133_v28 = vmax.f32 %v12203_v42, 0.0  ;;  %v13525_v1 = vld [vmem:[#allocation7_spill] sm:$0xff] }
 0x694   :  { %v6134_v38 = vmax.f32 %v12208_v62, 0.0  ;;  %v6135_v11 = vmax.f32 %v12213_v15, 0.0  ;;  %v6136_v56 = vmax.f32 %v12218_v57, 0.0  ;;  %v6137_v18 = vmax.f32 %v12223_v47, 0.0  ;;  %6193 = vst.msk [vmem:[%s12827_s7] sm:$0xff] %vm1043_vm8, %v6129_v30  ;;  %6194 = vst.msk [vmem:[%s12827_s7 + $0x8] sm:$0xff] %vm1043_vm8, %v6130_v44 }
 0x695   :  { %v6138_v43 = vmax.f32 %v12228_v31, 0.0  ;;  %v6139_v63 = vmax.f32 %v12233_v52, 0.0  ;;  %v6140_v51 = vmax.f32 %v12238_v24, 0.0  ;;  %6195 = vst.msk [vmem:[%s12827_s7 + $0x10] sm:$0xff] %vm1043_vm8, %v6131_v0  ;;  %v6141_v13 = vmax.f32 %v12243_v19, 0.0  ;;  %6197 = vst.msk [vmem:[%s12827_s7 + $0x20] sm:$0xff] %vm1043_vm8, %v6133_v28 }
 0x696   :  { %v6143_v42 = vmax.f32 %v12253_v48, 0.0  ;;  %v6144_v62 = vmax.f32 %v12258_v7, 0.0  ;;  %6198 = vst.msk [vmem:[%s12827_s7 + $0x28] sm:$0xff] %vm1043_vm8, %v6134_v38  ;;  %6199 = vst.msk [vmem:[%s12827_s7 + $0x30] sm:$0xff] %vm1043_vm8, %v6135_v11  ;;  %v6145_v15 = vmax.f32 %v12263_v60, 0.0  ;;  %v6146_v57 = vmax.f32 %v12268_v41, 0.0 }
 0x697   :  { %6200 = vst.msk [vmem:[%s12827_s7 + $0x38] sm:$0xff] %vm1043_vm8, %v6136_v56  ;;  %v6147_v47 = vmax.f32 %v12273_v16, 0.0  ;;  %v6148_v31 = vmax.f32 %v12278_v6, 0.0  ;;  %6201 = vst.msk [vmem:[%s12827_s7 + $0x40] sm:$0xff] %vm1043_vm8, %v6137_v18  ;;  %v6149_v52 = vmax.f32 %v12283_v4, 0.0  ;;  %v6150_v24 = vmax.f32 %v12288_v39, 0.0 }
 0x698   :  { %6202 = vst.msk [vmem:[%s12827_s7 + $0x48] sm:$0xff] %vm1043_vm8, %v6138_v43  ;;  %6203 = vst.msk [vmem:[%s12827_s7 + $0x50] sm:$0xff] %vm1043_vm8, %v6139_v63  ;;  %v6151_v19 = vmax.f32 %v12293_v37, 0.0  ;;  %v6152_v55 = vmax.f32 %v12298_v58, 0.0  ;;  %v6153_v48 = vmax.f32 %v12303_v25, 0.0  ;;  %v6154_v7 = vmax.f32 %v12308_v59, 0.0 }
 0x699   :  { %6204 = vst.msk [vmem:[%s12827_s7 + $0x58] sm:$0xff] %vm1043_vm8, %v6140_v51  ;;  %6205 = vst.msk [vmem:[%s12827_s7 + $0x60] sm:$0xff] %vm1043_vm8, %v6141_v13  ;;  %v6155_v60 = vmax.f32 %v12313_v12, 0.0  ;;  %v6156_v41 = vmax.f32 %v12318_v23, 0.0  ;;  %v6157_v16 = vmax.f32 %v12323_v34, 0.0  ;;  %v6158_v6 = vmax.f32 %v12328_v36, 0.0 }
 0x69a   :  { %6207 = vst.msk [vmem:[%s12827_s7 + $0x70] sm:$0xff] %vm1043_vm8, %v6143_v42  ;;  %6208 = vst.msk [vmem:[%s12827_s7 + $0x78] sm:$0xff] %vm1043_vm8, %v6144_v62  ;;  %v6159_v4 = vmax.f32 %v12333_v40, 0.0  ;;  %v6160_v39 = vmax.f32 %v12338_v54, 0.0  ;;  %v6161_v37 = vmax.f32 %v12343_v5, 0.0  ;;  %v6162_v58 = vmax.f32 %v12348_v27, 0.0 }
 0x69b   :  { %6209 = vst.msk [vmem:[%s12827_s7 + $0x80] sm:$0xff] %vm1043_vm8, %v6145_v15  ;;  %6210 = vst.msk [vmem:[%s12827_s7 + $0x88] sm:$0xff] %vm1043_vm8, %v6146_v57  ;;  %v6163_v25 = vmax.f32 %v12353_v2, 0.0  ;;  %v6164_v59 = vmax.f32 %v12358_v49, 0.0  ;;  %v6165_v12 = vmax.f32 %v12363_v46, 0.0  ;;  %v6166_v23 = vmax.f32 %v12368_v10, 0.0 }
 0x69c   :  { %6211 = vst.msk [vmem:[%s12827_s7 + $0x90] sm:$0xff] %vm1043_vm8, %v6147_v47  ;;  %6212 = vst.msk [vmem:[%s12827_s7 + $0x98] sm:$0xff] %vm1043_vm8, %v6148_v31  ;;  %v6167_v34 = vmax.f32 %v12373_v50, 0.0  ;;  %v6168_v36 = vmax.f32 %v12378_v22, 0.0  ;;  %v6169_v40 = vmax.f32 %v12383_v53, 0.0  ;;  %v6170_v54 = vmax.f32 %v12388_v9, 0.0 }
 0x69d   :  { %6213 = vst.msk [vmem:[%s12827_s7 + $0xa0] sm:$0xff] %vm1043_vm8, %v6149_v52  ;;  %6214 = vst.msk [vmem:[%s12827_s7 + $0xa8] sm:$0xff] %vm1043_vm8, %v6150_v24  ;;  %v6171_v5 = vmax.f32 %v12393_v17, 0.0  ;;  %v6172_v27 = vmax.f32 %v12398_v29, 0.0  ;;  %v6173_v2 = vmax.f32 %v12403_v35, 0.0  ;;  %v6174_v49 = vmax.f32 %v12408_v32, 0.0 }
 0x69e   :  { %6215 = vst.msk [vmem:[%s12827_s7 + $0xb0] sm:$0xff] %vm1043_vm8, %v6151_v19  ;;  %6216 = vst.msk [vmem:[%s12827_s7 + $0xb8] sm:$0xff] %vm1043_vm8, %v6152_v55  ;;  %v13520_v46 = vld [vmem:[#allocation22_spill] sm:$0xff]  ;;  %v13521_v50 = vld [vmem:[#allocation23_spill] sm:$0xff]  ;;  %v6180_v30 = vmax.f32 %v13525_v1, 0.0  ;;  %v6185_v43 = vmax.f32 %v12463_v61, 0.0 }
 0x69f   :  { %6217 = vst.msk [vmem:[%s12827_s7 + $0xc0] sm:$0xff] %vm1043_vm8, %v6153_v48  ;;  %6218 = vst.msk [vmem:[%s12827_s7 + $0xc8] sm:$0xff] %vm1043_vm8, %v6154_v7  ;;  %v6175_v10 = vmax.f32 %v13520_v46, 0.0  ;;  %v6176_v22 = vmax.f32 %v13521_v50, 0.0  ;;  %v13522_v53 = vld [vmem:[#allocation27_spill] sm:$0xff]  ;;  %v13523_v17 = vld [vmem:[#allocation26_spill] sm:$0xff] }
 0x6a0   :  { %6219 = vst.msk [vmem:[%s12827_s7 + $0xd0] sm:$0xff] %vm1043_vm8, %v6155_v60  ;;  %6220 = vst.msk [vmem:[%s12827_s7 + $0xd8] sm:$0xff] %vm1043_vm8, %v6156_v41  ;;  %v6177_v9 = vmax.f32 %v13522_v53, 0.0  ;;  %v6178_v29 = vmax.f32 %v13523_v17, 0.0  ;;  %v13524_v35 = vld [vmem:[#allocation31_spill] sm:$0xff]  ;;  %v13526_v44 = vld [vmem:[#allocation9_spill] sm:$0xff] }
 0x6a1   :  { %6221 = vst.msk [vmem:[%s12827_s7 + $0xe0] sm:$0xff] %vm1043_vm8, %v6157_v16  ;;  %6222 = vst.msk [vmem:[%s12827_s7 + $0xe8] sm:$0xff] %vm1043_vm8, %v6158_v6  ;;  %v6179_v32 = vmax.f32 %v13524_v35, 0.0  ;;  %v6181_v0 = vmax.f32 %v13526_v44, 0.0  ;;  %v13527_v3 = vld [vmem:[#allocation11_spill] sm:$0xff]  ;;  %v13528_v38 = vld [vmem:[#allocation8_spill] sm:$0xff] }
 0x6a2   :  { %6223 = vst.msk [vmem:[%s12827_s7 + $0xf0] sm:$0xff] %vm1043_vm8, %v6159_v4  ;;  %6224 = vst.msk [vmem:[%s12827_s7 + $0xf8] sm:$0xff] %vm1043_vm8, %v6160_v39  ;;  %v6182_v28 = vmax.f32 %v13527_v3, 0.0  ;;  %v6183_v11 = vmax.f32 %v13528_v38, 0.0  ;;  %v13529_v56 = vld [vmem:[#allocation10_spill] sm:$0xff]  ;;  %v13530_v63 = vld [vmem:[#allocation15_spill] sm:$0xff] }
 0x6a3   :  { %6225 = vst.msk [vmem:[%s12827_s7 + $0x100] sm:$0xff] %vm1043_vm8, %v6161_v37  ;;  %6226 = vst.msk [vmem:[%s12827_s7 + $0x108] sm:$0xff] %vm1043_vm8, %v6162_v58  ;;  %v6184_v18 = vmax.f32 %v13529_v56, 0.0  ;;  %v6186_v51 = vmax.f32 %v13530_v63, 0.0  ;;  %v6187_v13 = vmax.f32 %v12473_v21, 0.0  ;;  %v6188_v20 = vmax.f32 %v12478_v8, 0.0 }
 0x6a4   :  { %6227 = vst.msk [vmem:[%s12827_s7 + $0x110] sm:$0xff] %vm1043_vm8, %v6163_v25  ;;  %6228 = vst.msk [vmem:[%s12827_s7 + $0x118] sm:$0xff] %vm1043_vm8, %v6164_v59  ;;  %v6189_v61 = vmax.f32 %v12483_v14, 0.0  ;;  %v6190_v21 = vmax.f32 %v12488_v33, 0.0  ;;  %v6191_v8 = vmax.f32 %v12493_v26, 0.0  ;;  %v6192_v42 = vmax.f32 %v12498_v45, 0.0 }
 0x6a5   :  { %6229 = vst.msk [vmem:[%s12827_s7 + $0x120] sm:$0xff] %vm1043_vm8, %v6165_v12  ;;  %6230 = vst.msk [vmem:[%s12827_s7 + $0x128] sm:$0xff] %vm1043_vm8, %v6166_v23 }
 0x6a6   :  { %6231 = vst.msk [vmem:[%s12827_s7 + $0x130] sm:$0xff] %vm1043_vm8, %v6167_v34  ;;  %6232 = vst.msk [vmem:[%s12827_s7 + $0x138] sm:$0xff] %vm1043_vm8, %v6168_v36 }
 0x6a7   :  { %6233 = vst.msk [vmem:[%s12827_s7 + $0x140] sm:$0xff] %vm1043_vm8, %v6169_v40  ;;  %6234 = vst.msk [vmem:[%s12827_s7 + $0x148] sm:$0xff] %vm1043_vm8, %v6170_v54 }
 0x6a8   :  { %6235 = vst.msk [vmem:[%s12827_s7 + $0x150] sm:$0xff] %vm1043_vm8, %v6171_v5  ;;  %6236 = vst.msk [vmem:[%s12827_s7 + $0x158] sm:$0xff] %vm1043_vm8, %v6172_v27 }
 0x6a9   :  { %6237 = vst.msk [vmem:[%s12827_s7 + $0x160] sm:$0xff] %vm1043_vm8, %v6173_v2  ;;  %6238 = vst.msk [vmem:[%s12827_s7 + $0x168] sm:$0xff] %vm1043_vm8, %v6174_v49 }
 0x6aa   :  { %6239 = vst.msk [vmem:[%s12827_s7 + $0x170] sm:$0xff] %vm1043_vm8, %v6175_v10  ;;  %6240 = vst.msk [vmem:[%s12827_s7 + $0x178] sm:$0xff] %vm1043_vm8, %v6176_v22 }
 0x6ab   :  { %6241 = vst.msk [vmem:[%s12827_s7 + $0x180] sm:$0xff] %vm1043_vm8, %v6177_v9  ;;  %6242 = vst.msk [vmem:[%s12827_s7 + $0x188] sm:$0xff] %vm1043_vm8, %v6178_v29 }
 0x6ac   :  { %6243 = vst.msk [vmem:[%s12827_s7 + $0x190] sm:$0xff] %vm1043_vm8, %v6179_v32  ;;  %6244 = vst.msk [vmem:[%s12827_s7 + $0x198] sm:$0xff] %vm1043_vm8, %v6180_v30 }
 0x6ad   :  { %6245 = vst.msk [vmem:[%s12827_s7 + $0x1a0] sm:$0xff] %vm1043_vm8, %v6181_v0  ;;  %6246 = vst.msk [vmem:[%s12827_s7 + $0x1a8] sm:$0xff] %vm1043_vm8, %v6182_v28 }
 0x6ae   :  { %6247 = vst.msk [vmem:[%s12827_s7 + $0x1b0] sm:$0xff] %vm1043_vm8, %v6183_v11  ;;  %6248 = vst.msk [vmem:[%s12827_s7 + $0x1b8] sm:$0xff] %vm1043_vm8, %v6184_v18 }
 0x6af   :  { %6249 = vst.msk [vmem:[%s12827_s7 + $0x1c0] sm:$0xff] %vm1043_vm8, %v6185_v43  ;;  %6250 = vst.msk [vmem:[%s12827_s7 + $0x1c8] sm:$0xff] %vm1043_vm8, %v6186_v51 }
 0x6b0   :  { %6251 = vst.msk [vmem:[%s12827_s7 + $0x1d0] sm:$0xff] %vm1043_vm8, %v6187_v13  ;;  %6252 = vst.msk [vmem:[%s12827_s7 + $0x1d8] sm:$0xff] %vm1043_vm8, %v6188_v20 }
 0x6b1   :  { %6253 = vst.msk [vmem:[%s12827_s7 + $0x1e0] sm:$0xff] %vm1043_vm8, %v6189_v61  ;;  %6254 = vst.msk [vmem:[%s12827_s7 + $0x1e8] sm:$0xff] %vm1043_vm8, %v6190_v21 }
 0x6b2   :  { %6255 = vst.msk [vmem:[%s12827_s7 + $0x1f0] sm:$0xff] %vm1043_vm8, %v6191_v8  ;;  %6256 = vst.msk [vmem:[%s12827_s7 + $0x1f8] sm:$0xff] %vm1043_vm8, %v6192_v42 }

</bundles_post_ra>
